<compile_context>
chip_gen: v5e
topology: v5e:2x2
jax: 0.10.0
libtpu: 0.0.40
codegen_flags: <defaults>
</compile_context>

<pallas_src>
import math

import jax
import jax.numpy as jnp
from jax.experimental import pallas as pl
from jax.experimental.pallas import tpu as pltpu


_VMEM_LIMIT = 32 * 1024 * 1024  # explicit scoped-VMEM limit; safe on v5e/v6e/v7x


def _pick_row_tile(n, target):
    """Largest tile <= target that divides n (keeps BlockSpecs exact)."""
    t = min(target, n)
    while n % t:
        t -= 1
    return t


# ---------------------------------------------------------------------------
# 1) Input projection: gates_x = X @ [W_ih_fwd | W_ih_bwd] + [b_fwd | b_bwd]
# ---------------------------------------------------------------------------
def _proj_kernel(x_ref, w_ref, b_ref, o_ref):
    o_ref[...] = (jnp.dot(x_ref[...], w_ref[...],
                          preferred_element_type=jnp.float32)
                  + b_ref[...]).astype(o_ref.dtype)


def proj_call(x, w, b, *, tile_rows=256):
    N, D = x.shape
    G = w.shape[1]
    tn = _pick_row_tile(N, tile_rows)
    return pl.pallas_call(
        _proj_kernel,
        out_shape=jax.ShapeDtypeStruct((N, G), jnp.float32),
        grid_spec=pltpu.PrefetchScalarGridSpec(
            num_scalar_prefetch=0,
            grid=(N // tn,),
            in_specs=[pl.BlockSpec((tn, D), lambda i: (i, 0)),
                      pl.BlockSpec((D, G), lambda i: (0, 0)),
                      pl.BlockSpec((1, G), lambda i: (0, 0))],
            out_specs=pl.BlockSpec((tn, G), lambda i: (i, 0)),
        ),
        compiler_params=pltpu.CompilerParams(
            dimension_semantics=("parallel",),
            vmem_limit_bytes=_VMEM_LIMIT),
    )(x, w, b)


# ---------------------------------------------------------------------------
# 2) Fused bidirectional LSTM recurrence (single grid step, in-kernel time loop)
# ---------------------------------------------------------------------------
def _bilstm_kernel(gx_ref, whh_ref, h0_ref, c0_ref, len_ref, feat_ref):
    T, B, _ = gx_ref.shape
    H = whh_ref.shape[1]            # whh stacked: (2, H, 4H)
    G = 4 * H

    whh_f = whh_ref[0]              # (H, 4H), resident for the whole loop
    whh_b = whh_ref[1]
    # Hoisted lane-broadcast of the lengths (compared against time indices).
    len_bh = jnp.broadcast_to(len_ref[...], (B, H))

    def cell(gates, c_prev):        # PyTorch gate order i, f, g, o
        i = jax.nn.sigmoid(gates[:, 0 * H:1 * H])
        f = jax.nn.sigmoid(gates[:, 1 * H:2 * H])
        g = jnp.tanh(gates[:, 2 * H:3 * H])
        o = jax.nn.sigmoid(gates[:, 3 * H:4 * H])
        c_new = f * c_prev + i * g
        h_new = o * jnp.tanh(c_new)
        return h_new, c_new

    def step(s, carry):
        h_f, c_f, h_b, c_b = carry
        t_f = s                     # forward-direction time index
        t_b = T - 1 - s             # backward-direction time index

        gx_f = gx_ref[t_f][:, 0:G]          # (B, 4H) fwd gates_x (+ bias)
        gx_b = gx_ref[t_b][:, G:2 * G]      # (B, 4H) bwd gates_x (+ bias)

        hf_new, cf_new = cell(
            gx_f + jnp.dot(h_f, whh_f, preferred_element_type=jnp.float32), c_f)
        hb_new, cb_new = cell(
            gx_b + jnp.dot(h_b, whh_b, preferred_element_type=jnp.float32), c_b)

        valid_f = t_f < len_bh              # (B, H) bool
        valid_b = t_b < len_bh

        # Packed-sequence semantics: state advances on valid steps only, so the
        # reverse direction picks up (h0, c0) at the last valid timestep.
        h_f = jnp.where(valid_f, hf_new, h_f)
        c_f = jnp.where(valid_f, cf_new, c_f)
        h_b = jnp.where(valid_b, hb_new, h_b)
        c_b = jnp.where(valid_b, cb_new, c_b)

        # pad_packed_sequence: padded positions read back as exact zeros.
        feat_ref[pl.ds(t_f, 1), :, 0:H] = (
            jnp.where(valid_f, hf_new, 0.0).reshape(1, B, H))
        feat_ref[pl.ds(t_b, 1), :, H:2 * H] = (
            jnp.where(valid_b, hb_new, 0.0).reshape(1, B, H))
        return h_f, c_f, h_b, c_b

    init = (h0_ref[0].astype(jnp.float32), c0_ref[0].astype(jnp.float32),
            h0_ref[1].astype(jnp.float32), c0_ref[1].astype(jnp.float32))
    jax.lax.fori_loop(0, T, step, init, unroll=True)


def bilstm_call(gx_tbg, w_hh, h0, c0, lengths_b1):
    T, B, G2 = gx_tbg.shape
    H = w_hh.shape[1]
    return pl.pallas_call(
        _bilstm_kernel,
        out_shape=jax.ShapeDtypeStruct((T, B, 2 * H), jnp.float32),
        grid_spec=pltpu.PrefetchScalarGridSpec(
            num_scalar_prefetch=0,
            grid=(1,),
            in_specs=[
                pl.BlockSpec((T, B, G2), lambda i: (0, 0, 0)),
                pl.BlockSpec((2, H, 4 * H), lambda i: (0, 0, 0)),
                pl.BlockSpec((2, B, H), lambda i: (0, 0, 0)),
                pl.BlockSpec((2, B, H), lambda i: (0, 0, 0)),
                pl.BlockSpec((B, 1), lambda i: (0, 0)),
            ],
            out_specs=pl.BlockSpec((T, B, 2 * H), lambda i: (0, 0, 0)),
        ),
        compiler_params=pltpu.CompilerParams(
            dimension_semantics=("arbitrary",),
            vmem_limit_bytes=_VMEM_LIMIT),
    )(gx_tbg, w_hh, h0, c0, lengths_b1)


# ---------------------------------------------------------------------------
# 3) Classifier MLP: ReLU(x @ W1 + b1) @ W2 + b2   (class dim padded to 128)
# ---------------------------------------------------------------------------
def _mlp_kernel(x_ref, w1_ref, b1_ref, w2_ref, b2_ref, o_ref):
    h = jnp.dot(x_ref[...], w1_ref[...],
                preferred_element_type=jnp.float32) + b1_ref[...]
    h = jnp.maximum(h, 0.0)
    o_ref[...] = (jnp.dot(h, w2_ref[...], preferred_element_type=jnp.float32)
                  + b2_ref[...]).astype(o_ref.dtype)


def mlp_call(x, w1, b1, w2, b2, *, tile_rows=256):
    N, F = x.shape
    Cp = w2.shape[1]
    tn = _pick_row_tile(N, tile_rows)
    return pl.pallas_call(
        _mlp_kernel,
        out_shape=jax.ShapeDtypeStruct((N, Cp), jnp.float32),
        grid_spec=pltpu.PrefetchScalarGridSpec(
            num_scalar_prefetch=0,
            grid=(N // tn,),
            in_specs=[pl.BlockSpec((tn, F), lambda i: (i, 0)),
                      pl.BlockSpec((F, F), lambda i: (0, 0)),
                      pl.BlockSpec((1, F), lambda i: (0, 0)),
                      pl.BlockSpec((F, Cp), lambda i: (0, 0)),
                      pl.BlockSpec((1, Cp), lambda i: (0, 0))],
            out_specs=pl.BlockSpec((tn, Cp), lambda i: (i, 0)),
        ),
        compiler_params=pltpu.CompilerParams(
            dimension_semantics=("parallel",),
            vmem_limit_bytes=_VMEM_LIMIT),
    )(x, w1, b1, w2, b2)


# ---------------------------------------------------------------------------
# Top-level forward (thin glue: one small transpose in, one out, free reshapes)
# ---------------------------------------------------------------------------
@jax.jit
def tagger_forward(params, x_btd, lengths, h0, c0):
    """x_btd: (B, T, D), lengths: (B,) int32, h0/c0: (2, B, H) -> (B*T, C)."""
    B, T, D = x_btd.shape
    H = params["w_hh_f"].shape[0]
    C = params["w2"].shape[1]

    # Stack the per-direction weights (cheap one-off XLA ops).
    w_ih_cat = jnp.concatenate([params["w_ih_f"], params["w_ih_b"]], axis=1)  # (D, 8H)
    b_cat = jnp.concatenate([params["b_f"], params["b_b"]], axis=1)           # (1, 8H)
    w_hh = jnp.stack([params["w_hh_f"], params["w_hh_b"]], axis=0)            # (2, H, 4H)

    # 1) Hoisted time-invariant input projection: one (T*B, D) @ (D, 8H) matmul.
    x_tbd = jnp.transpose(x_btd, (1, 0, 2))                                   # (T, B, D)
    gx = proj_call(x_tbd.reshape(T * B, D), w_ih_cat, b_cat).reshape(T, B, 8 * H)

    # 2) Fused bidirectional recurrence (reversal, length masking and fwd/bwd
    #    concatenation all happen in-kernel).
    feat_tbf = bilstm_call(gx, w_hh, h0, c0,
                           lengths.reshape(B, 1).astype(jnp.int32))           # (T, B, 2H)

    # 3) Classifier MLP on the flattened (B*T, 2H) features.
    feat = jnp.transpose(feat_tbf, (1, 0, 2)).reshape(B * T, 2 * H)
    c_pad = ((C + 127) // 128) * 128
    w2p = jnp.pad(params["w2"], ((0, 0), (0, c_pad - C)))
    b2p = jnp.pad(params["b2"], ((0, 0), (0, c_pad - C)))
    logits = mlp_call(feat, params["w1"], params["b1"], w2p, b2p)
    return logits[:, :C]


# ---------------------------------------------------------------------------
# Pure-JAX reference (for correctness check).
# ---------------------------------------------------------------------------
def reverse_padded(x_btd, lengths):
    """Reverse the first `lengths[b]` timesteps of each sequence; zero beyond."""
    B, T, _ = x_btd.shape
    t_idx = jnp.arange(T)
    idx = lengths[:, None] - 1 - t_idx[None, :]          # (B, T)
    valid = idx >= 0
    idx = jnp.clip(idx, 0, T - 1)
    gathered = jnp.take_along_axis(x_btd, idx[:, :, None], axis=1)
    return jnp.where(valid[:, :, None], gathered, 0.0)


def _lstm_ref(x_tbd, w_ih, w_hh, b, h0, c0):
    def step(carry, x_t):
        h, c = carry
        gates = x_t @ w_ih + h @ w_hh + b[0]
        i, f, g, o = jnp.split(gates, 4, axis=-1)
        i = jax.nn.sigmoid(i); f = jax.nn.sigmoid(f)
        g = jnp.tanh(g); o = jax.nn.sigmoid(o)
        c = f * c + i * g
        h = o * jnp.tanh(c)
        return (h, c), h
    _, ys = jax.lax.scan(step, (h0, c0), x_tbd)
    return ys


def tagger_forward_ref(params, x_btd, lengths, h0, c0):
    B, T, D = x_btd.shape
    H = params["w_hh_f"].shape[0]
    y_f = jnp.transpose(
        _lstm_ref(jnp.transpose(x_btd, (1, 0, 2)),
                  params["w_ih_f"], params["w_hh_f"], params["b_f"],
                  h0[0], c0[0]), (1, 0, 2))
    x_rev = reverse_padded(x_btd, lengths)
    y_b_rev = jnp.transpose(
        _lstm_ref(jnp.transpose(x_rev, (1, 0, 2)),
                  params["w_ih_b"], params["w_hh_b"], params["b_b"],
                  h0[1], c0[1]), (1, 0, 2))
    y_b = reverse_padded(y_b_rev, lengths)
    mask = (jnp.arange(T)[None, :] < lengths[:, None])[..., None]
    y = jnp.concatenate([jnp.where(mask, y_f, 0.0), y_b], axis=-1)
    flat = y.reshape(B * T, 2 * H)
    h = jnp.maximum(flat @ params["w1"] + params["b1"], 0.0)
    return h @ params["w2"] + params["b2"]


# ---------------------------------------------------------------------------
# Deterministic parameter construction (shapes from Tagger.__init__).
# ---------------------------------------------------------------------------
def make_params(key, input_dim, hidden_dim, class_num):
    classifier_dim = 2 * hidden_dim
    s1 = math.sqrt(6.0) / math.sqrt(hidden_dim + (input_dim + hidden_dim))
    s2 = math.sqrt(6.0) / math.sqrt(classifier_dim + classifier_dim)
    ks = jax.random.split(key, 8)

    def u(k, shape, scale):
        return jax.random.uniform(k, shape, jnp.float32, -scale, scale)

    # LSTM biases: b_ih zero, b_hh zero except forget gate = 1 (order i,f,g,o).
    b_dir = jnp.zeros((1, 4 * hidden_dim), jnp.float32)
    b_dir = b_dir.at[0, hidden_dim:2 * hidden_dim].set(1.0)

    return {
        # stored pre-transposed: (D, 4H) / (H, 4H)
        "w_ih_f": u(ks[0], (4 * hidden_dim, input_dim), s1).T,
        "w_hh_f": u(ks[1], (4 * hidden_dim, hidden_dim), s1).T,
        "b_f": b_dir,
        "w_ih_b": u(ks[2], (4 * hidden_dim, input_dim), s1).T,
        "w_hh_b": u(ks[3], (4 * hidden_dim, hidden_dim), s1).T,
        "b_b": b_dir,
        "w1": u(ks[4], (classifier_dim, classifier_dim), s2).T,   # (2H, 2H)
        "b1": jnp.zeros((1, classifier_dim), jnp.float32),
        # softmaxLayer is zero-init in the module; use small random so output
        # is non-trivial for testing.
        "w2": u(ks[5], (class_num, classifier_dim), 0.05).T,      # (2H, C)
        "b2": u(ks[6], (1, class_num), 0.05),
    }


if __name__ == "__main__":
    B, T = 2, 8
    INPUT_DIM, HIDDEN_DIM, CLASS_NUM = 32, 32, 8

    key = jax.random.PRNGKey(0)
    k_par, k_x, k_h, k_c = jax.random.split(key, 4)

    params = make_params(k_par, INPUT_DIM, HIDDEN_DIM, CLASS_NUM)
    x = jax.random.normal(k_x, (B, T, INPUT_DIM), jnp.float32)
    lengths = jnp.array([T, T - 2], jnp.int32)            # max length == T
    h0 = 0.1 * jax.random.normal(k_h, (2, B, HIDDEN_DIM), jnp.float32)
    c0 = 0.1 * jax.random.normal(k_c, (2, B, HIDDEN_DIM), jnp.float32)

    out = tagger_forward(params, x, lengths, h0, c0)
    out = jax.block_until_ready(out)

    ref = tagger_forward_ref(params, x, lengths, h0, c0)
    assert out.shape == (B * T, CLASS_NUM), out.shape
    # f32 everywhere; tolerance covers MXU-vs-XLA accumulation-order deltas.
    assert jnp.allclose(out, ref, atol=1e-4, rtol=1e-4), (
        float(jnp.max(jnp.abs(out - ref))))

    print("KERNEL_OK")
</pallas_src>

<mosaic_0001>
module attributes {stable_mosaic.version = 11 : i64} {
  func.func @_proj_kernel(%arg0: i32, %arg1: memref<16x32xf32, #tpu.memory_space<vmem>>, %arg2: memref<32x256xf32, #tpu.memory_space<vmem>>, %arg3: memref<1x256xf32, #tpu.memory_space<vmem>>, %arg4: memref<16x256xf32, #tpu.memory_space<vmem>>) attributes {dimension_semantics = [#tpu.dimension_semantics<parallel>], iteration_bounds = array<i64: 1>, scalar_prefetch = 0 : i64, scratch_operands = 0 : i64, tpu.core_type = #tpu.core_type<tc>, window_params = [{transform_indices = @transform_0, window_bounds = array<i64: 16, 32>}, {pipeline_mode = #tpu.pipeline_mode<synchronous>, transform_indices = @transform_1, window_bounds = array<i64: 32, 256>}, {pipeline_mode = #tpu.pipeline_mode<synchronous>, transform_indices = @transform_2, window_bounds = array<i64: 1, 256>}, {transform_indices = @transform_3, window_bounds = array<i64: 16, 256>}]} {
    %c0 = arith.constant 0 : index
    %c0_0 = arith.constant 0 : index
    %0 = vector.load %arg1[%c0, %c0_0] : memref<16x32xf32, #tpu.memory_space<vmem>>, vector<16x32xf32>
    %c0_1 = arith.constant 0 : index
    %c0_2 = arith.constant 0 : index
    %1 = vector.load %arg2[%c0_1, %c0_2] : memref<32x256xf32, #tpu.memory_space<vmem>>, vector<32x256xf32>
    %cst = arith.constant dense<0.000000e+00> : vector<16x256xf32>
    %2 = tpu.matmul %0, %1, %cst {dimension_numbers = #tpu.dot_dimension_numbers<[1], [0], [0], [1], [0, 0, 1, 1], [], []>} : vector<16x32xf32>, vector<32x256xf32>, vector<16x256xf32> -> vector<16x256xf32>
    %c0_3 = arith.constant 0 : index
    %c0_4 = arith.constant 0 : index
    %3 = vector.load %arg3[%c0_3, %c0_4] : memref<1x256xf32, #tpu.memory_space<vmem>>, vector<1x256xf32>
    %4 = vector.broadcast %3 : vector<1x256xf32> to vector<16x256xf32>
    %5 = arith.addf %2, %4 : vector<16x256xf32>
    %c0_5 = arith.constant 0 : index
    %c0_6 = arith.constant 0 : index
    %6 = vector.load %arg4[%c0_5, %c0_6] : memref<16x256xf32, #tpu.memory_space<vmem>>, vector<16x256xf32>
    tpu.vector_store %arg4[%c0_5, %c0_6], %5 {strides = array<i32>} : memref<16x256xf32, #tpu.memory_space<vmem>>, vector<16x256xf32>,
    return
  }
  func.func @transform_0(%arg0: i32) -> (i32, i32) {
    %c0_i32 = arith.constant 0 : i32
    %c0_i32_0 = arith.constant 0 : i32
    return %arg0, %c0_i32 : i32, i32
  }
  func.func @transform_1(%arg0: i32) -> (i32, i32) {
    %c0_i32 = arith.constant 0 : i32
    %c0_i32_0 = arith.constant 0 : i32
    %c0_i32_1 = arith.constant 0 : i32
    return %c0_i32, %c0_i32_0 : i32, i32
  }
  func.func @transform_2(%arg0: i32) -> (i32, i32) {
    %c0_i32 = arith.constant 0 : i32
    %c0_i32_0 = arith.constant 0 : i32
    %c0_i32_1 = arith.constant 0 : i32
    return %c0_i32, %c0_i32_0 : i32, i32
  }
  func.func @transform_3(%arg0: i32) -> (i32, i32) {
    %c0_i32 = arith.constant 0 : i32
    %c0_i32_0 = arith.constant 0 : i32
    return %arg0, %c0_i32 : i32, i32
  }
}

module attributes {stable_mosaic.version = 11 : i64} {
  func.func @_mlp_kernel(%arg0: i32, %arg1: memref<16x64xf32, #tpu.memory_space<vmem>>, %arg2: memref<64x64xf32, #tpu.memory_space<vmem>>, %arg3: memref<1x64xf32, #tpu.memory_space<vmem>>, %arg4: memref<64x128xf32, #tpu.memory_space<vmem>>, %arg5: memref<1x128xf32, #tpu.memory_space<vmem>>, %arg6: memref<16x128xf32, #tpu.memory_space<vmem>>) attributes {dimension_semantics = [#tpu.dimension_semantics<parallel>], iteration_bounds = array<i64: 1>, scalar_prefetch = 0 : i64, scratch_operands = 0 : i64, tpu.core_type = #tpu.core_type<tc>, window_params = [{transform_indices = @transform_0, window_bounds = array<i64: 16, 64>}, {pipeline_mode = #tpu.pipeline_mode<synchronous>, transform_indices = @transform_1, window_bounds = array<i64: 64, 64>}, {pipeline_mode = #tpu.pipeline_mode<synchronous>, transform_indices = @transform_2, window_bounds = array<i64: 1, 64>}, {pipeline_mode = #tpu.pipeline_mode<synchronous>, transform_indices = @transform_3, window_bounds = array<i64: 64, 128>}, {pipeline_mode = #tpu.pipeline_mode<synchronous>, transform_indices = @transform_4, window_bounds = array<i64: 1, 128>}, {transform_indices = @transform_5, window_bounds = array<i64: 16, 128>}]} {
    %c0 = arith.constant 0 : index
    %c0_0 = arith.constant 0 : index
    %0 = vector.load %arg1[%c0, %c0_0] : memref<16x64xf32, #tpu.memory_space<vmem>>, vector<16x64xf32>
    %c0_1 = arith.constant 0 : index
    %c0_2 = arith.constant 0 : index
    %1 = vector.load %arg2[%c0_1, %c0_2] : memref<64x64xf32, #tpu.memory_space<vmem>>, vector<64x64xf32>
    %cst = arith.constant dense<0.000000e+00> : vector<16x64xf32>
    %2 = tpu.matmul %0, %1, %cst {dimension_numbers = #tpu.dot_dimension_numbers<[1], [0], [0], [1], [0, 0, 1, 1], [], []>} : vector<16x64xf32>, vector<64x64xf32>, vector<16x64xf32> -> vector<16x64xf32>
    %c0_3 = arith.constant 0 : index
    %c0_4 = arith.constant 0 : index
    %3 = vector.load %arg3[%c0_3, %c0_4] : memref<1x64xf32, #tpu.memory_space<vmem>>, vector<1x64xf32>
    %4 = vector.broadcast %3 : vector<1x64xf32> to vector<16x64xf32>
    %5 = arith.addf %2, %4 : vector<16x64xf32>
    %cst_5 = arith.constant 0.000000e+00 : f32
    %6 = vector.broadcast %cst_5 : f32 to vector<16x64xf32>
    %7 = arith.maximumf %5, %6 : vector<16x64xf32>
    %c0_6 = arith.constant 0 : index
    %c0_7 = arith.constant 0 : index
    %8 = vector.load %arg4[%c0_6, %c0_7] : memref<64x128xf32, #tpu.memory_space<vmem>>, vector<64x128xf32>
    %cst_8 = arith.constant dense<0.000000e+00> : vector<16x128xf32>
    %9 = tpu.matmul %7, %8, %cst_8 {dimension_numbers = #tpu.dot_dimension_numbers<[1], [0], [0], [1], [0, 0, 1, 1], [], []>} : vector<16x64xf32>, vector<64x128xf32>, vector<16x128xf32> -> vector<16x128xf32>
    %c0_9 = arith.constant 0 : index
    %c0_10 = arith.constant 0 : index
    %10 = vector.load %arg5[%c0_9, %c0_10] : memref<1x128xf32, #tpu.memory_space<vmem>>, vector<1x128xf32>
    %11 = vector.broadcast %10 : vector<1x128xf32> to vector<16x128xf32>
    %12 = arith.addf %9, %11 : vector<16x128xf32>
    %c0_11 = arith.constant 0 : index
    %c0_12 = arith.constant 0 : index
    %13 = vector.load %arg6[%c0_11, %c0_12] : memref<16x128xf32, #tpu.memory_space<vmem>>, vector<16x128xf32>
    tpu.vector_store %arg6[%c0_11, %c0_12], %12 {strides = array<i32>} : memref<16x128xf32, #tpu.memory_space<vmem>>, vector<16x128xf32>,
    return
  }
  func.func @transform_0(%arg0: i32) -> (i32, i32) {
    %c0_i32 = arith.constant 0 : i32
    %c0_i32_0 = arith.constant 0 : i32
    return %arg0, %c0_i32 : i32, i32
  }
  func.func @transform_1(%arg0: i32) -> (i32, i32) {
    %c0_i32 = arith.constant 0 : i32
    %c0_i32_0 = arith.constant 0 : i32
    %c0_i32_1 = arith.constant 0 : i32
    return %c0_i32, %c0_i32_0 : i32, i32
  }
  func.func @transform_2(%arg0: i32) -> (i32, i32) {
    %c0_i32 = arith.constant 0 : i32
    %c0_i32_0 = arith.constant 0 : i32
    %c0_i32_1 = arith.constant 0 : i32
    return %c0_i32, %c0_i32_0 : i32, i32
  }
  func.func @transform_3(%arg0: i32) -> (i32, i32) {
    %c0_i32 = arith.constant 0 : i32
    %c0_i32_0 = arith.constant 0 : i32
    %c0_i32_1 = arith.constant 0 : i32
    return %c0_i32, %c0_i32_0 : i32, i32
  }
  func.func @transform_4(%arg0: i32) -> (i32, i32) {
    %c0_i32 = arith.constant 0 : i32
    %c0_i32_0 = arith.constant 0 : i32
    %c0_i32_1 = arith.constant 0 : i32
    return %c0_i32, %c0_i32_0 : i32, i32
  }
  func.func @transform_5(%arg0: i32) -> (i32, i32) {
    %c0_i32 = arith.constant 0 : i32
    %c0_i32_0 = arith.constant 0 : i32
    return %arg0, %c0_i32 : i32, i32
  }
}

module attributes {stable_mosaic.version = 11 : i64} {
  func.func @_bilstm_kernel(%arg0: i32, %arg1: memref<8x2x256xf32, #tpu.memory_space<vmem>>, %arg2: memref<2x32x128xf32, #tpu.memory_space<vmem>>, %arg3: memref<2x2x32xf32, #tpu.memory_space<vmem>>, %arg4: memref<2x2x32xf32, #tpu.memory_space<vmem>>, %arg5: memref<2x1xi32, #tpu.memory_space<vmem>>, %arg6: memref<8x2x64xf32, #tpu.memory_space<vmem>>) attributes {dimension_semantics = [#tpu.dimension_semantics<arbitrary>], iteration_bounds = array<i64: 1>, scalar_prefetch = 0 : i64, scratch_operands = 0 : i64, tpu.core_type = #tpu.core_type<tc>, window_params = [{pipeline_mode = #tpu.pipeline_mode<synchronous>, transform_indices = @transform_0, window_bounds = array<i64: 8, 2, 256>}, {pipeline_mode = #tpu.pipeline_mode<synchronous>, transform_indices = @transform_1, window_bounds = array<i64: 2, 32, 128>}, {pipeline_mode = #tpu.pipeline_mode<synchronous>, transform_indices = @transform_2, window_bounds = array<i64: 2, 2, 32>}, {pipeline_mode = #tpu.pipeline_mode<synchronous>, transform_indices = @transform_3, window_bounds = array<i64: 2, 2, 32>}, {pipeline_mode = #tpu.pipeline_mode<synchronous>, transform_indices = @transform_4, window_bounds = array<i64: 2, 1>}, {pipeline_mode = #tpu.pipeline_mode<synchronous>, transform_indices = @transform_5, window_bounds = array<i64: 8, 2, 64>}]} {
    %c0 = arith.constant 0 : index
    %c0_0 = arith.constant 0 : index
    %c0_1 = arith.constant 0 : index
    %0 = vector.load %arg2[%c0, %c0_0, %c0_1] : memref<2x32x128xf32, #tpu.memory_space<vmem>>, vector<1x32x128xf32>
    %1 = vector.shape_cast %0 : vector<1x32x128xf32> to vector<32x128xf32>
    %c1 = arith.constant 1 : index
    %c0_2 = arith.constant 0 : index
    %c0_3 = arith.constant 0 : index
    %2 = vector.load %arg2[%c1, %c0_2, %c0_3] : memref<2x32x128xf32, #tpu.memory_space<vmem>>, vector<1x32x128xf32>
    %3 = vector.shape_cast %2 : vector<1x32x128xf32> to vector<32x128xf32>
    %c0_4 = arith.constant 0 : index
    %c0_5 = arith.constant 0 : index
    %4 = vector.load %arg5[%c0_4, %c0_5] : memref<2x1xi32, #tpu.memory_space<vmem>>, vector<2x1xi32>
    %5 = vector.shape_cast %4 : vector<2x1xi32> to vector<2x1xi32>
    %6 = vector.broadcast %5 : vector<2x1xi32> to vector<2x32xi32>
    %c0_6 = arith.constant 0 : index
    %c0_7 = arith.constant 0 : index
    %c0_8 = arith.constant 0 : index
    %7 = vector.load %arg3[%c0_6, %c0_7, %c0_8] : memref<2x2x32xf32, #tpu.memory_space<vmem>>, vector<1x2x32xf32>
    %8 = vector.shape_cast %7 : vector<1x2x32xf32> to vector<2x32xf32>
    %c0_9 = arith.constant 0 : index
    %c0_10 = arith.constant 0 : index
    %c0_11 = arith.constant 0 : index
    %9 = vector.load %arg4[%c0_9, %c0_10, %c0_11] : memref<2x2x32xf32, #tpu.memory_space<vmem>>, vector<1x2x32xf32>
    %10 = vector.shape_cast %9 : vector<1x2x32xf32> to vector<2x32xf32>
    %c1_12 = arith.constant 1 : index
    %c0_13 = arith.constant 0 : index
    %c0_14 = arith.constant 0 : index
    %11 = vector.load %arg3[%c1_12, %c0_13, %c0_14] : memref<2x2x32xf32, #tpu.memory_space<vmem>>, vector<1x2x32xf32>
    %12 = vector.shape_cast %11 : vector<1x2x32xf32> to vector<2x32xf32>
    %c1_15 = arith.constant 1 : index
    %c0_16 = arith.constant 0 : index
    %c0_17 = arith.constant 0 : index
    %13 = vector.load %arg4[%c1_15, %c0_16, %c0_17] : memref<2x2x32xf32, #tpu.memory_space<vmem>>, vector<1x2x32xf32>
    %14 = vector.shape_cast %13 : vector<1x2x32xf32> to vector<2x32xf32>
    %c0_i32 = arith.constant 0 : i32
    %c7_i32 = arith.constant 7 : i32
    %15 = arith.subi %c7_i32, %c0_i32 : i32
    %16 = arith.index_cast %c0_i32 : i32 to index
    %c0_18 = arith.constant 0 : index
    %c0_19 = arith.constant 0 : index
    %17 = vector.load %arg1[%16, %c0_18, %c0_19] : memref<8x2x256xf32, #tpu.memory_space<vmem>>, vector<1x2x256xf32>
    %18 = vector.shape_cast %17 : vector<1x2x256xf32> to vector<2x256xf32>
    %19 = vector.extract_strided_slice %18 {offsets = [0, 0], sizes = [2, 128], strides = [1, 1]} : vector<2x256xf32> to vector<2x128xf32>
    %20 = arith.index_cast %15 : i32 to index
    %c0_20 = arith.constant 0 : index
    %c0_21 = arith.constant 0 : index
    %21 = vector.load %arg1[%20, %c0_20, %c0_21] : memref<8x2x256xf32, #tpu.memory_space<vmem>>, vector<1x2x256xf32>
    %22 = vector.shape_cast %21 : vector<1x2x256xf32> to vector<2x256xf32>
    %23 = vector.extract_strided_slice %22 {offsets = [0, 128], sizes = [2, 128], strides = [1, 1]} : vector<2x256xf32> to vector<2x128xf32>
    %cst = arith.constant dense<0.000000e+00> : vector<2x128xf32>
    %24 = tpu.matmul %8, %1, %cst {dimension_numbers = #tpu.dot_dimension_numbers<[1], [0], [0], [1], [0, 0, 1, 1], [], []>} : vector<2x32xf32>, vector<32x128xf32>, vector<2x128xf32> -> vector<2x128xf32>
    %25 = arith.addf %19, %24 : vector<2x128xf32>
    %26 = vector.extract_strided_slice %25 {offsets = [0, 0], sizes = [2, 32], strides = [1, 1]} : vector<2x128xf32> to vector<2x32xf32>
    %27 = arith.negf %26 : vector<2x32xf32>
    %28 = math.exp %27 : vector<2x32xf32>
    %cst_22 = arith.constant 1.000000e+00 : f32
    %29 = vector.broadcast %cst_22 : f32 to vector<2x32xf32>
    %30 = arith.addf %29, %28 : vector<2x32xf32>
    %31 = arith.divf %29, %30 : vector<2x32xf32>
    %32 = vector.extract_strided_slice %25 {offsets = [0, 32], sizes = [2, 32], strides = [1, 1]} : vector<2x128xf32> to vector<2x32xf32>
    %33 = arith.negf %32 : vector<2x32xf32>
    %34 = math.exp %33 : vector<2x32xf32>
    %cst_23 = arith.constant 1.000000e+00 : f32
    %35 = vector.broadcast %cst_23 : f32 to vector<2x32xf32>
    %36 = arith.addf %35, %34 : vector<2x32xf32>
    %37 = arith.divf %35, %36 : vector<2x32xf32>
    %38 = vector.extract_strided_slice %25 {offsets = [0, 64], sizes = [2, 32], strides = [1, 1]} : vector<2x128xf32> to vector<2x32xf32>
    %39 = math.tanh %38 : vector<2x32xf32>
    %40 = vector.extract_strided_slice %25 {offsets = [0, 96], sizes = [2, 32], strides = [1, 1]} : vector<2x128xf32> to vector<2x32xf32>
    %41 = arith.negf %40 : vector<2x32xf32>
    %42 = math.exp %41 : vector<2x32xf32>
    %cst_24 = arith.constant 1.000000e+00 : f32
    %43 = vector.broadcast %cst_24 : f32 to vector<2x32xf32>
    %44 = arith.addf %43, %42 : vector<2x32xf32>
    %45 = arith.divf %43, %44 : vector<2x32xf32>
    %46 = arith.mulf %37, %10 : vector<2x32xf32>
    %47 = arith.mulf %31, %39 : vector<2x32xf32>
    %48 = arith.addf %46, %47 : vector<2x32xf32>
    %49 = math.tanh %48 : vector<2x32xf32>
    %50 = arith.mulf %45, %49 : vector<2x32xf32>
    %cst_25 = arith.constant dense<0.000000e+00> : vector<2x128xf32>
    %51 = tpu.matmul %12, %3, %cst_25 {dimension_numbers = #tpu.dot_dimension_numbers<[1], [0], [0], [1], [0, 0, 1, 1], [], []>} : vector<2x32xf32>, vector<32x128xf32>, vector<2x128xf32> -> vector<2x128xf32>
    %52 = arith.addf %23, %51 : vector<2x128xf32>
    %53 = vector.extract_strided_slice %52 {offsets = [0, 0], sizes = [2, 32], strides = [1, 1]} : vector<2x128xf32> to vector<2x32xf32>
    %54 = arith.negf %53 : vector<2x32xf32>
    %55 = math.exp %54 : vector<2x32xf32>
    %cst_26 = arith.constant 1.000000e+00 : f32
    %56 = vector.broadcast %cst_26 : f32 to vector<2x32xf32>
    %57 = arith.addf %56, %55 : vector<2x32xf32>
    %58 = arith.divf %56, %57 : vector<2x32xf32>
    %59 = vector.extract_strided_slice %52 {offsets = [0, 32], sizes = [2, 32], strides = [1, 1]} : vector<2x128xf32> to vector<2x32xf32>
    %60 = arith.negf %59 : vector<2x32xf32>
    %61 = math.exp %60 : vector<2x32xf32>
    %cst_27 = arith.constant 1.000000e+00 : f32
    %62 = vector.broadcast %cst_27 : f32 to vector<2x32xf32>
    %63 = arith.addf %62, %61 : vector<2x32xf32>
    %64 = arith.divf %62, %63 : vector<2x32xf32>
    %65 = vector.extract_strided_slice %52 {offsets = [0, 64], sizes = [2, 32], strides = [1, 1]} : vector<2x128xf32> to vector<2x32xf32>
    %66 = math.tanh %65 : vector<2x32xf32>
    %67 = vector.extract_strided_slice %52 {offsets = [0, 96], sizes = [2, 32], strides = [1, 1]} : vector<2x128xf32> to vector<2x32xf32>
    %68 = arith.negf %67 : vector<2x32xf32>
    %69 = math.exp %68 : vector<2x32xf32>
    %cst_28 = arith.constant 1.000000e+00 : f32
    %70 = vector.broadcast %cst_28 : f32 to vector<2x32xf32>
    %71 = arith.addf %70, %69 : vector<2x32xf32>
    %72 = arith.divf %70, %71 : vector<2x32xf32>
    %73 = arith.mulf %64, %14 : vector<2x32xf32>
    %74 = arith.mulf %58, %66 : vector<2x32xf32>
    %75 = arith.addf %73, %74 : vector<2x32xf32>
    %76 = math.tanh %75 : vector<2x32xf32>
    %77 = arith.mulf %72, %76 : vector<2x32xf32>
    %78 = vector.broadcast %c0_i32 : i32 to vector<2x32xi32>
    %79 = arith.cmpi slt, %78, %6 : vector<2x32xi32>
    %80 = vector.broadcast %15 : i32 to vector<2x32xi32>
    %81 = arith.cmpi slt, %80, %6 : vector<2x32xi32>
    %82 = arith.select %79, %50, %8 : vector<2x32xi1>, vector<2x32xf32>
    %83 = arith.select %79, %48, %10 : vector<2x32xi1>, vector<2x32xf32>
    %84 = arith.select %81, %77, %12 : vector<2x32xi1>, vector<2x32xf32>
    %85 = arith.select %81, %75, %14 : vector<2x32xi1>, vector<2x32xf32>
    %cst_29 = arith.constant 0.000000e+00 : f32
    %86 = vector.broadcast %cst_29 : f32 to vector<2x32xf32>
    %87 = arith.select %79, %50, %86 : vector<2x32xi1>, vector<2x32xf32>
    %88 = vector.shape_cast %87 : vector<2x32xf32> to vector<1x2x32xf32>
    %89 = arith.index_cast %c0_i32 : i32 to index
    %c0_30 = arith.constant 0 : index
    %c0_31 = arith.constant 0 : index
    %90 = vector.load %arg6[%89, %c0_30, %c0_31] : memref<8x2x64xf32, #tpu.memory_space<vmem>>, vector<1x2x32xf32>
    tpu.vector_store %arg6[%89, %c0_30, %c0_31], %88 {strides = array<i32>} : memref<8x2x64xf32, #tpu.memory_space<vmem>>, vector<1x2x32xf32>,
    %cst_32 = arith.constant 0.000000e+00 : f32
    %91 = vector.broadcast %cst_32 : f32 to vector<2x32xf32>
    %92 = arith.select %81, %77, %91 : vector<2x32xi1>, vector<2x32xf32>
    %93 = vector.shape_cast %92 : vector<2x32xf32> to vector<1x2x32xf32>
    %94 = arith.index_cast %15 : i32 to index
    %c0_33 = arith.constant 0 : index
    %c32 = arith.constant 32 : index
    %95 = vector.load %arg6[%94, %c0_33, %c32] : memref<8x2x64xf32, #tpu.memory_space<vmem>>, vector<1x2x32xf32>
    tpu.vector_store %arg6[%94, %c0_33, %c32], %93 {strides = array<i32>} : memref<8x2x64xf32, #tpu.memory_space<vmem>>, vector<1x2x32xf32>,
    %c1_i32 = arith.constant 1 : i32
    %c7_i32_34 = arith.constant 7 : i32
    %96 = arith.subi %c7_i32_34, %c1_i32 : i32
    %97 = arith.index_cast %c1_i32 : i32 to index
    %c0_35 = arith.constant 0 : index
    %c0_36 = arith.constant 0 : index
    %98 = vector.load %arg1[%97, %c0_35, %c0_36] : memref<8x2x256xf32, #tpu.memory_space<vmem>>, vector<1x2x256xf32>
    %99 = vector.shape_cast %98 : vector<1x2x256xf32> to vector<2x256xf32>
    %100 = vector.extract_strided_slice %99 {offsets = [0, 0], sizes = [2, 128], strides = [1, 1]} : vector<2x256xf32> to vector<2x128xf32>
    %101 = arith.index_cast %96 : i32 to index
    %c0_37 = arith.constant 0 : index
    %c0_38 = arith.constant 0 : index
    %102 = vector.load %arg1[%101, %c0_37, %c0_38] : memref<8x2x256xf32, #tpu.memory_space<vmem>>, vector<1x2x256xf32>
    %103 = vector.shape_cast %102 : vector<1x2x256xf32> to vector<2x256xf32>
    %104 = vector.extract_strided_slice %103 {offsets = [0, 128], sizes = [2, 128], strides = [1, 1]} : vector<2x256xf32> to vector<2x128xf32>
    %cst_39 = arith.constant dense<0.000000e+00> : vector<2x128xf32>
    %105 = tpu.matmul %82, %1, %cst_39 {dimension_numbers = #tpu.dot_dimension_numbers<[1], [0], [0], [1], [0, 0, 1, 1], [], []>} : vector<2x32xf32>, vector<32x128xf32>, vector<2x128xf32> -> vector<2x128xf32>
    %106 = arith.addf %100, %105 : vector<2x128xf32>
    %107 = vector.extract_strided_slice %106 {offsets = [0, 0], sizes = [2, 32], strides = [1, 1]} : vector<2x128xf32> to vector<2x32xf32>
    %108 = arith.negf %107 : vector<2x32xf32>
    %109 = math.exp %108 : vector<2x32xf32>
    %cst_40 = arith.constant 1.000000e+00 : f32
    %110 = vector.broadcast %cst_40 : f32 to vector<2x32xf32>
    %111 = arith.addf %110, %109 : vector<2x32xf32>
    %112 = arith.divf %110, %111 : vector<2x32xf32>
    %113 = vector.extract_strided_slice %106 {offsets = [0, 32], sizes = [2, 32], strides = [1, 1]} : vector<2x128xf32> to vector<2x32xf32>
    %114 = arith.negf %113 : vector<2x32xf32>
    %115 = math.exp %114 : vector<2x32xf32>
    %cst_41 = arith.constant 1.000000e+00 : f32
    %116 = vector.broadcast %cst_41 : f32 to vector<2x32xf32>
    %117 = arith.addf %116, %115 : vector<2x32xf32>
    %118 = arith.divf %116, %117 : vector<2x32xf32>
    %119 = vector.extract_strided_slice %106 {offsets = [0, 64], sizes = [2, 32], strides = [1, 1]} : vector<2x128xf32> to vector<2x32xf32>
    %120 = math.tanh %119 : vector<2x32xf32>
    %121 = vector.extract_strided_slice %106 {offsets = [0, 96], sizes = [2, 32], strides = [1, 1]} : vector<2x128xf32> to vector<2x32xf32>
    %122 = arith.negf %121 : vector<2x32xf32>
    %123 = math.exp %122 : vector<2x32xf32>
    %cst_42 = arith.constant 1.000000e+00 : f32
    %124 = vector.broadcast %cst_42 : f32 to vector<2x32xf32>
    %125 = arith.addf %124, %123 : vector<2x32xf32>
    %126 = arith.divf %124, %125 : vector<2x32xf32>
    %127 = arith.mulf %118, %83 : vector<2x32xf32>
    %128 = arith.mulf %112, %120 : vector<2x32xf32>
    %129 = arith.addf %127, %128 : vector<2x32xf32>
    %130 = math.tanh %129 : vector<2x32xf32>
    %131 = arith.mulf %126, %130 : vector<2x32xf32>
    %cst_43 = arith.constant dense<0.000000e+00> : vector<2x128xf32>
    %132 = tpu.matmul %84, %3, %cst_43 {dimension_numbers = #tpu.dot_dimension_numbers<[1], [0], [0], [1], [0, 0, 1, 1], [], []>} : vector<2x32xf32>, vector<32x128xf32>, vector<2x128xf32> -> vector<2x128xf32>
    %133 = arith.addf %104, %132 : vector<2x128xf32>
    %134 = vector.extract_strided_slice %133 {offsets = [0, 0], sizes = [2, 32], strides = [1, 1]} : vector<2x128xf32> to vector<2x32xf32>
    %135 = arith.negf %134 : vector<2x32xf32>
    %136 = math.exp %135 : vector<2x32xf32>
    %cst_44 = arith.constant 1.000000e+00 : f32
    %137 = vector.broadcast %cst_44 : f32 to vector<2x32xf32>
    %138 = arith.addf %137, %136 : vector<2x32xf32>
    %139 = arith.divf %137, %138 : vector<2x32xf32>
    %140 = vector.extract_strided_slice %133 {offsets = [0, 32], sizes = [2, 32], strides = [1, 1]} : vector<2x128xf32> to vector<2x32xf32>
    %141 = arith.negf %140 : vector<2x32xf32>
    %142 = math.exp %141 : vector<2x32xf32>
    %cst_45 = arith.constant 1.000000e+00 : f32
    %143 = vector.broadcast %cst_45 : f32 to vector<2x32xf32>
    %144 = arith.addf %143, %142 : vector<2x32xf32>
    %145 = arith.divf %143, %144 : vector<2x32xf32>
    %146 = vector.extract_strided_slice %133 {offsets = [0, 64], sizes = [2, 32], strides = [1, 1]} : vector<2x128xf32> to vector<2x32xf32>
    %147 = math.tanh %146 : vector<2x32xf32>
    %148 = vector.extract_strided_slice %133 {offsets = [0, 96], sizes = [2, 32], strides = [1, 1]} : vector<2x128xf32> to vector<2x32xf32>
    %149 = arith.negf %148 : vector<2x32xf32>
    %150 = math.exp %149 : vector<2x32xf32>
    %cst_46 = arith.constant 1.000000e+00 : f32
    %151 = vector.broadcast %cst_46 : f32 to vector<2x32xf32>
    %152 = arith.addf %151, %150 : vector<2x32xf32>
    %153 = arith.divf %151, %152 : vector<2x32xf32>
    %154 = arith.mulf %145, %85 : vector<2x32xf32>
    %155 = arith.mulf %139, %147 : vector<2x32xf32>
    %156 = arith.addf %154, %155 : vector<2x32xf32>
    %157 = math.tanh %156 : vector<2x32xf32>
    %158 = arith.mulf %153, %157 : vector<2x32xf32>
    %159 = vector.broadcast %c1_i32 : i32 to vector<2x32xi32>
    %160 = arith.cmpi slt, %159, %6 : vector<2x32xi32>
    %161 = vector.broadcast %96 : i32 to vector<2x32xi32>
    %162 = arith.cmpi slt, %161, %6 : vector<2x32xi32>
    %163 = arith.select %160, %131, %82 : vector<2x32xi1>, vector<2x32xf32>
    %164 = arith.select %160, %129, %83 : vector<2x32xi1>, vector<2x32xf32>
    %165 = arith.select %162, %158, %84 : vector<2x32xi1>, vector<2x32xf32>
    %166 = arith.select %162, %156, %85 : vector<2x32xi1>, vector<2x32xf32>
    %cst_47 = arith.constant 0.000000e+00 : f32
    %167 = vector.broadcast %cst_47 : f32 to vector<2x32xf32>
    %168 = arith.select %160, %131, %167 : vector<2x32xi1>, vector<2x32xf32>
    %169 = vector.shape_cast %168 : vector<2x32xf32> to vector<1x2x32xf32>
    %170 = arith.index_cast %c1_i32 : i32 to index
    %c0_48 = arith.constant 0 : index
    %c0_49 = arith.constant 0 : index
    %171 = vector.load %arg6[%170, %c0_48, %c0_49] : memref<8x2x64xf32, #tpu.memory_space<vmem>>, vector<1x2x32xf32>
    tpu.vector_store %arg6[%170, %c0_48, %c0_49], %169 {strides = array<i32>} : memref<8x2x64xf32, #tpu.memory_space<vmem>>, vector<1x2x32xf32>,
    %cst_50 = arith.constant 0.000000e+00 : f32
    %172 = vector.broadcast %cst_50 : f32 to vector<2x32xf32>
    %173 = arith.select %162, %158, %172 : vector<2x32xi1>, vector<2x32xf32>
    %174 = vector.shape_cast %173 : vector<2x32xf32> to vector<1x2x32xf32>
    %175 = arith.index_cast %96 : i32 to index
    %c0_51 = arith.constant 0 : index
    %c32_52 = arith.constant 32 : index
    %176 = vector.load %arg6[%175, %c0_51, %c32_52] : memref<8x2x64xf32, #tpu.memory_space<vmem>>, vector<1x2x32xf32>
    tpu.vector_store %arg6[%175, %c0_51, %c32_52], %174 {strides = array<i32>} : memref<8x2x64xf32, #tpu.memory_space<vmem>>, vector<1x2x32xf32>,
    %c2_i32 = arith.constant 2 : i32
    %c7_i32_53 = arith.constant 7 : i32
    %177 = arith.subi %c7_i32_53, %c2_i32 : i32
    %178 = arith.index_cast %c2_i32 : i32 to index
    %c0_54 = arith.constant 0 : index
    %c0_55 = arith.constant 0 : index
    %179 = vector.load %arg1[%178, %c0_54, %c0_55] : memref<8x2x256xf32, #tpu.memory_space<vmem>>, vector<1x2x256xf32>
    %180 = vector.shape_cast %179 : vector<1x2x256xf32> to vector<2x256xf32>
    %181 = vector.extract_strided_slice %180 {offsets = [0, 0], sizes = [2, 128], strides = [1, 1]} : vector<2x256xf32> to vector<2x128xf32>
    %182 = arith.index_cast %177 : i32 to index
    %c0_56 = arith.constant 0 : index
    %c0_57 = arith.constant 0 : index
    %183 = vector.load %arg1[%182, %c0_56, %c0_57] : memref<8x2x256xf32, #tpu.memory_space<vmem>>, vector<1x2x256xf32>
    %184 = vector.shape_cast %183 : vector<1x2x256xf32> to vector<2x256xf32>
    %185 = vector.extract_strided_slice %184 {offsets = [0, 128], sizes = [2, 128], strides = [1, 1]} : vector<2x256xf32> to vector<2x128xf32>
    %cst_58 = arith.constant dense<0.000000e+00> : vector<2x128xf32>
    %186 = tpu.matmul %163, %1, %cst_58 {dimension_numbers = #tpu.dot_dimension_numbers<[1], [0], [0], [1], [0, 0, 1, 1], [], []>} : vector<2x32xf32>, vector<32x128xf32>, vector<2x128xf32> -> vector<2x128xf32>
    %187 = arith.addf %181, %186 : vector<2x128xf32>
    %188 = vector.extract_strided_slice %187 {offsets = [0, 0], sizes = [2, 32], strides = [1, 1]} : vector<2x128xf32> to vector<2x32xf32>
    %189 = arith.negf %188 : vector<2x32xf32>
    %190 = math.exp %189 : vector<2x32xf32>
    %cst_59 = arith.constant 1.000000e+00 : f32
    %191 = vector.broadcast %cst_59 : f32 to vector<2x32xf32>
    %192 = arith.addf %191, %190 : vector<2x32xf32>
    %193 = arith.divf %191, %192 : vector<2x32xf32>
    %194 = vector.extract_strided_slice %187 {offsets = [0, 32], sizes = [2, 32], strides = [1, 1]} : vector<2x128xf32> to vector<2x32xf32>
    %195 = arith.negf %194 : vector<2x32xf32>
    %196 = math.exp %195 : vector<2x32xf32>
    %cst_60 = arith.constant 1.000000e+00 : f32
    %197 = vector.broadcast %cst_60 : f32 to vector<2x32xf32>
    %198 = arith.addf %197, %196 : vector<2x32xf32>
    %199 = arith.divf %197, %198 : vector<2x32xf32>
    %200 = vector.extract_strided_slice %187 {offsets = [0, 64], sizes = [2, 32], strides = [1, 1]} : vector<2x128xf32> to vector<2x32xf32>
    %201 = math.tanh %200 : vector<2x32xf32>
    %202 = vector.extract_strided_slice %187 {offsets = [0, 96], sizes = [2, 32], strides = [1, 1]} : vector<2x128xf32> to vector<2x32xf32>
    %203 = arith.negf %202 : vector<2x32xf32>
    %204 = math.exp %203 : vector<2x32xf32>
    %cst_61 = arith.constant 1.000000e+00 : f32
    %205 = vector.broadcast %cst_61 : f32 to vector<2x32xf32>
    %206 = arith.addf %205, %204 : vector<2x32xf32>
    %207 = arith.divf %205, %206 : vector<2x32xf32>
    %208 = arith.mulf %199, %164 : vector<2x32xf32>
    %209 = arith.mulf %193, %201 : vector<2x32xf32>
    %210 = arith.addf %208, %209 : vector<2x32xf32>
    %211 = math.tanh %210 : vector<2x32xf32>
    %212 = arith.mulf %207, %211 : vector<2x32xf32>
    %cst_62 = arith.constant dense<0.000000e+00> : vector<2x128xf32>
    %213 = tpu.matmul %165, %3, %cst_62 {dimension_numbers = #tpu.dot_dimension_numbers<[1], [0], [0], [1], [0, 0, 1, 1], [], []>} : vector<2x32xf32>, vector<32x128xf32>, vector<2x128xf32> -> vector<2x128xf32>
    %214 = arith.addf %185, %213 : vector<2x128xf32>
    %215 = vector.extract_strided_slice %214 {offsets = [0, 0], sizes = [2, 32], strides = [1, 1]} : vector<2x128xf32> to vector<2x32xf32>
    %216 = arith.negf %215 : vector<2x32xf32>
    %217 = math.exp %216 : vector<2x32xf32>
    %cst_63 = arith.constant 1.000000e+00 : f32
    %218 = vector.broadcast %cst_63 : f32 to vector<2x32xf32>
    %219 = arith.addf %218, %217 : vector<2x32xf32>
    %220 = arith.divf %218, %219 : vector<2x32xf32>
    %221 = vector.extract_strided_slice %214 {offsets = [0, 32], sizes = [2, 32], strides = [1, 1]} : vector<2x128xf32> to vector<2x32xf32>
    %222 = arith.negf %221 : vector<2x32xf32>
    %223 = math.exp %222 : vector<2x32xf32>
    %cst_64 = arith.constant 1.000000e+00 : f32
    %224 = vector.broadcast %cst_64 : f32 to vector<2x32xf32>
    %225 = arith.addf %224, %223 : vector<2x32xf32>
    %226 = arith.divf %224, %225 : vector<2x32xf32>
    %227 = vector.extract_strided_slice %214 {offsets = [0, 64], sizes = [2, 32], strides = [1, 1]} : vector<2x128xf32> to vector<2x32xf32>
    %228 = math.tanh %227 : vector<2x32xf32>
    %229 = vector.extract_strided_slice %214 {offsets = [0, 96], sizes = [2, 32], strides = [1, 1]} : vector<2x128xf32> to vector<2x32xf32>
    %230 = arith.negf %229 : vector<2x32xf32>
    %231 = math.exp %230 : vector<2x32xf32>
    %cst_65 = arith.constant 1.000000e+00 : f32
    %232 = vector.broadcast %cst_65 : f32 to vector<2x32xf32>
    %233 = arith.addf %232, %231 : vector<2x32xf32>
    %234 = arith.divf %232, %233 : vector<2x32xf32>
    %235 = arith.mulf %226, %166 : vector<2x32xf32>
    %236 = arith.mulf %220, %228 : vector<2x32xf32>
    %237 = arith.addf %235, %236 : vector<2x32xf32>
    %238 = math.tanh %237 : vector<2x32xf32>
    %239 = arith.mulf %234, %238 : vector<2x32xf32>
    %240 = vector.broadcast %c2_i32 : i32 to vector<2x32xi32>
    %241 = arith.cmpi slt, %240, %6 : vector<2x32xi32>
    %242 = vector.broadcast %177 : i32 to vector<2x32xi32>
    %243 = arith.cmpi slt, %242, %6 : vector<2x32xi32>
    %244 = arith.select %241, %212, %163 : vector<2x32xi1>, vector<2x32xf32>
    %245 = arith.select %241, %210, %164 : vector<2x32xi1>, vector<2x32xf32>
    %246 = arith.select %243, %239, %165 : vector<2x32xi1>, vector<2x32xf32>
    %247 = arith.select %243, %237, %166 : vector<2x32xi1>, vector<2x32xf32>
    %cst_66 = arith.constant 0.000000e+00 : f32
    %248 = vector.broadcast %cst_66 : f32 to vector<2x32xf32>
    %249 = arith.select %241, %212, %248 : vector<2x32xi1>, vector<2x32xf32>
    %250 = vector.shape_cast %249 : vector<2x32xf32> to vector<1x2x32xf32>
    %251 = arith.index_cast %c2_i32 : i32 to index
    %c0_67 = arith.constant 0 : index
    %c0_68 = arith.constant 0 : index
    %252 = vector.load %arg6[%251, %c0_67, %c0_68] : memref<8x2x64xf32, #tpu.memory_space<vmem>>, vector<1x2x32xf32>
    tpu.vector_store %arg6[%251, %c0_67, %c0_68], %250 {strides = array<i32>} : memref<8x2x64xf32, #tpu.memory_space<vmem>>, vector<1x2x32xf32>,
    %cst_69 = arith.constant 0.000000e+00 : f32
    %253 = vector.broadcast %cst_69 : f32 to vector<2x32xf32>
    %254 = arith.select %243, %239, %253 : vector<2x32xi1>, vector<2x32xf32>
    %255 = vector.shape_cast %254 : vector<2x32xf32> to vector<1x2x32xf32>
    %256 = arith.index_cast %177 : i32 to index
    %c0_70 = arith.constant 0 : index
    %c32_71 = arith.constant 32 : index
    %257 = vector.load %arg6[%256, %c0_70, %c32_71] : memref<8x2x64xf32, #tpu.memory_space<vmem>>, vector<1x2x32xf32>
    tpu.vector_store %arg6[%256, %c0_70, %c32_71], %255 {strides = array<i32>} : memref<8x2x64xf32, #tpu.memory_space<vmem>>, vector<1x2x32xf32>,
    %c3_i32 = arith.constant 3 : i32
    %c7_i32_72 = arith.constant 7 : i32
    %258 = arith.subi %c7_i32_72, %c3_i32 : i32
    %259 = arith.index_cast %c3_i32 : i32 to index
    %c0_73 = arith.constant 0 : index
    %c0_74 = arith.constant 0 : index
    %260 = vector.load %arg1[%259, %c0_73, %c0_74] : memref<8x2x256xf32, #tpu.memory_space<vmem>>, vector<1x2x256xf32>
    %261 = vector.shape_cast %260 : vector<1x2x256xf32> to vector<2x256xf32>
    %262 = vector.extract_strided_slice %261 {offsets = [0, 0], sizes = [2, 128], strides = [1, 1]} : vector<2x256xf32> to vector<2x128xf32>
    %263 = arith.index_cast %258 : i32 to index
    %c0_75 = arith.constant 0 : index
    %c0_76 = arith.constant 0 : index
    %264 = vector.load %arg1[%263, %c0_75, %c0_76] : memref<8x2x256xf32, #tpu.memory_space<vmem>>, vector<1x2x256xf32>
    %265 = vector.shape_cast %264 : vector<1x2x256xf32> to vector<2x256xf32>
    %266 = vector.extract_strided_slice %265 {offsets = [0, 128], sizes = [2, 128], strides = [1, 1]} : vector<2x256xf32> to vector<2x128xf32>
    %cst_77 = arith.constant dense<0.000000e+00> : vector<2x128xf32>
    %267 = tpu.matmul %244, %1, %cst_77 {dimension_numbers = #tpu.dot_dimension_numbers<[1], [0], [0], [1], [0, 0, 1, 1], [], []>} : vector<2x32xf32>, vector<32x128xf32>, vector<2x128xf32> -> vector<2x128xf32>
    %268 = arith.addf %262, %267 : vector<2x128xf32>
    %269 = vector.extract_strided_slice %268 {offsets = [0, 0], sizes = [2, 32], strides = [1, 1]} : vector<2x128xf32> to vector<2x32xf32>
    %270 = arith.negf %269 : vector<2x32xf32>
    %271 = math.exp %270 : vector<2x32xf32>
    %cst_78 = arith.constant 1.000000e+00 : f32
    %272 = vector.broadcast %cst_78 : f32 to vector<2x32xf32>
    %273 = arith.addf %272, %271 : vector<2x32xf32>
    %274 = arith.divf %272, %273 : vector<2x32xf32>
    %275 = vector.extract_strided_slice %268 {offsets = [0, 32], sizes = [2, 32], strides = [1, 1]} : vector<2x128xf32> to vector<2x32xf32>
    %276 = arith.negf %275 : vector<2x32xf32>
    %277 = math.exp %276 : vector<2x32xf32>
    %cst_79 = arith.constant 1.000000e+00 : f32
    %278 = vector.broadcast %cst_79 : f32 to vector<2x32xf32>
    %279 = arith.addf %278, %277 : vector<2x32xf32>
    %280 = arith.divf %278, %279 : vector<2x32xf32>
    %281 = vector.extract_strided_slice %268 {offsets = [0, 64], sizes = [2, 32], strides = [1, 1]} : vector<2x128xf32> to vector<2x32xf32>
    %282 = math.tanh %281 : vector<2x32xf32>
    %283 = vector.extract_strided_slice %268 {offsets = [0, 96], sizes = [2, 32], strides = [1, 1]} : vector<2x128xf32> to vector<2x32xf32>
    %284 = arith.negf %283 : vector<2x32xf32>
    %285 = math.exp %284 : vector<2x32xf32>
    %cst_80 = arith.constant 1.000000e+00 : f32
    %286 = vector.broadcast %cst_80 : f32 to vector<2x32xf32>
    %287 = arith.addf %286, %285 : vector<2x32xf32>
    %288 = arith.divf %286, %287 : vector<2x32xf32>
    %289 = arith.mulf %280, %245 : vector<2x32xf32>
    %290 = arith.mulf %274, %282 : vector<2x32xf32>
    %291 = arith.addf %289, %290 : vector<2x32xf32>
    %292 = math.tanh %291 : vector<2x32xf32>
    %293 = arith.mulf %288, %292 : vector<2x32xf32>
    %cst_81 = arith.constant dense<0.000000e+00> : vector<2x128xf32>
    %294 = tpu.matmul %246, %3, %cst_81 {dimension_numbers = #tpu.dot_dimension_numbers<[1], [0], [0], [1], [0, 0, 1, 1], [], []>} : vector<2x32xf32>, vector<32x128xf32>, vector<2x128xf32> -> vector<2x128xf32>
    %295 = arith.addf %266, %294 : vector<2x128xf32>
    %296 = vector.extract_strided_slice %295 {offsets = [0, 0], sizes = [2, 32], strides = [1, 1]} : vector<2x128xf32> to vector<2x32xf32>
    %297 = arith.negf %296 : vector<2x32xf32>
    %298 = math.exp %297 : vector<2x32xf32>
    %cst_82 = arith.constant 1.000000e+00 : f32
    %299 = vector.broadcast %cst_82 : f32 to vector<2x32xf32>
    %300 = arith.addf %299, %298 : vector<2x32xf32>
    %301 = arith.divf %299, %300 : vector<2x32xf32>
    %302 = vector.extract_strided_slice %295 {offsets = [0, 32], sizes = [2, 32], strides = [1, 1]} : vector<2x128xf32> to vector<2x32xf32>
    %303 = arith.negf %302 : vector<2x32xf32>
    %304 = math.exp %303 : vector<2x32xf32>
    %cst_83 = arith.constant 1.000000e+00 : f32
    %305 = vector.broadcast %cst_83 : f32 to vector<2x32xf32>
    %306 = arith.addf %305, %304 : vector<2x32xf32>
    %307 = arith.divf %305, %306 : vector<2x32xf32>
    %308 = vector.extract_strided_slice %295 {offsets = [0, 64], sizes = [2, 32], strides = [1, 1]} : vector<2x128xf32> to vector<2x32xf32>
    %309 = math.tanh %308 : vector<2x32xf32>
    %310 = vector.extract_strided_slice %295 {offsets = [0, 96], sizes = [2, 32], strides = [1, 1]} : vector<2x128xf32> to vector<2x32xf32>
    %311 = arith.negf %310 : vector<2x32xf32>
    %312 = math.exp %311 : vector<2x32xf32>
    %cst_84 = arith.constant 1.000000e+00 : f32
    %313 = vector.broadcast %cst_84 : f32 to vector<2x32xf32>
    %314 = arith.addf %313, %312 : vector<2x32xf32>
    %315 = arith.divf %313, %314 : vector<2x32xf32>
    %316 = arith.mulf %307, %247 : vector<2x32xf32>
    %317 = arith.mulf %301, %309 : vector<2x32xf32>
    %318 = arith.addf %316, %317 : vector<2x32xf32>
    %319 = math.tanh %318 : vector<2x32xf32>
    %320 = arith.mulf %315, %319 : vector<2x32xf32>
    %321 = vector.broadcast %c3_i32 : i32 to vector<2x32xi32>
    %322 = arith.cmpi slt, %321, %6 : vector<2x32xi32>
    %323 = vector.broadcast %258 : i32 to vector<2x32xi32>
    %324 = arith.cmpi slt, %323, %6 : vector<2x32xi32>
    %325 = arith.select %322, %293, %244 : vector<2x32xi1>, vector<2x32xf32>
    %326 = arith.select %322, %291, %245 : vector<2x32xi1>, vector<2x32xf32>
    %327 = arith.select %324, %320, %246 : vector<2x32xi1>, vector<2x32xf32>
    %328 = arith.select %324, %318, %247 : vector<2x32xi1>, vector<2x32xf32>
    %cst_85 = arith.constant 0.000000e+00 : f32
    %329 = vector.broadcast %cst_85 : f32 to vector<2x32xf32>
    %330 = arith.select %322, %293, %329 : vector<2x32xi1>, vector<2x32xf32>
    %331 = vector.shape_cast %330 : vector<2x32xf32> to vector<1x2x32xf32>
    %332 = arith.index_cast %c3_i32 : i32 to index
    %c0_86 = arith.constant 0 : index
    %c0_87 = arith.constant 0 : index
    %333 = vector.load %arg6[%332, %c0_86, %c0_87] : memref<8x2x64xf32, #tpu.memory_space<vmem>>, vector<1x2x32xf32>
    tpu.vector_store %arg6[%332, %c0_86, %c0_87], %331 {strides = array<i32>} : memref<8x2x64xf32, #tpu.memory_space<vmem>>, vector<1x2x32xf32>,
    %cst_88 = arith.constant 0.000000e+00 : f32
    %334 = vector.broadcast %cst_88 : f32 to vector<2x32xf32>
    %335 = arith.select %324, %320, %334 : vector<2x32xi1>, vector<2x32xf32>
    %336 = vector.shape_cast %335 : vector<2x32xf32> to vector<1x2x32xf32>
    %337 = arith.index_cast %258 : i32 to index
    %c0_89 = arith.constant 0 : index
    %c32_90 = arith.constant 32 : index
    %338 = vector.load %arg6[%337, %c0_89, %c32_90] : memref<8x2x64xf32, #tpu.memory_space<vmem>>, vector<1x2x32xf32>
    tpu.vector_store %arg6[%337, %c0_89, %c32_90], %336 {strides = array<i32>} : memref<8x2x64xf32, #tpu.memory_space<vmem>>, vector<1x2x32xf32>,
    %c4_i32 = arith.constant 4 : i32
    %c7_i32_91 = arith.constant 7 : i32
    %339 = arith.subi %c7_i32_91, %c4_i32 : i32
    %340 = arith.index_cast %c4_i32 : i32 to index
    %c0_92 = arith.constant 0 : index
    %c0_93 = arith.constant 0 : index
    %341 = vector.load %arg1[%340, %c0_92, %c0_93] : memref<8x2x256xf32, #tpu.memory_space<vmem>>, vector<1x2x256xf32>
    %342 = vector.shape_cast %341 : vector<1x2x256xf32> to vector<2x256xf32>
    %343 = vector.extract_strided_slice %342 {offsets = [0, 0], sizes = [2, 128], strides = [1, 1]} : vector<2x256xf32> to vector<2x128xf32>
    %344 = arith.index_cast %339 : i32 to index
    %c0_94 = arith.constant 0 : index
    %c0_95 = arith.constant 0 : index
    %345 = vector.load %arg1[%344, %c0_94, %c0_95] : memref<8x2x256xf32, #tpu.memory_space<vmem>>, vector<1x2x256xf32>
    %346 = vector.shape_cast %345 : vector<1x2x256xf32> to vector<2x256xf32>
    %347 = vector.extract_strided_slice %346 {offsets = [0, 128], sizes = [2, 128], strides = [1, 1]} : vector<2x256xf32> to vector<2x128xf32>
    %cst_96 = arith.constant dense<0.000000e+00> : vector<2x128xf32>
    %348 = tpu.matmul %325, %1, %cst_96 {dimension_numbers = #tpu.dot_dimension_numbers<[1], [0], [0], [1], [0, 0, 1, 1], [], []>} : vector<2x32xf32>, vector<32x128xf32>, vector<2x128xf32> -> vector<2x128xf32>
    %349 = arith.addf %343, %348 : vector<2x128xf32>
    %350 = vector.extract_strided_slice %349 {offsets = [0, 0], sizes = [2, 32], strides = [1, 1]} : vector<2x128xf32> to vector<2x32xf32>
    %351 = arith.negf %350 : vector<2x32xf32>
    %352 = math.exp %351 : vector<2x32xf32>
    %cst_97 = arith.constant 1.000000e+00 : f32
    %353 = vector.broadcast %cst_97 : f32 to vector<2x32xf32>
    %354 = arith.addf %353, %352 : vector<2x32xf32>
    %355 = arith.divf %353, %354 : vector<2x32xf32>
    %356 = vector.extract_strided_slice %349 {offsets = [0, 32], sizes = [2, 32], strides = [1, 1]} : vector<2x128xf32> to vector<2x32xf32>
    %357 = arith.negf %356 : vector<2x32xf32>
    %358 = math.exp %357 : vector<2x32xf32>
    %cst_98 = arith.constant 1.000000e+00 : f32
    %359 = vector.broadcast %cst_98 : f32 to vector<2x32xf32>
    %360 = arith.addf %359, %358 : vector<2x32xf32>
    %361 = arith.divf %359, %360 : vector<2x32xf32>
    %362 = vector.extract_strided_slice %349 {offsets = [0, 64], sizes = [2, 32], strides = [1, 1]} : vector<2x128xf32> to vector<2x32xf32>
    %363 = math.tanh %362 : vector<2x32xf32>
    %364 = vector.extract_strided_slice %349 {offsets = [0, 96], sizes = [2, 32], strides = [1, 1]} : vector<2x128xf32> to vector<2x32xf32>
    %365 = arith.negf %364 : vector<2x32xf32>
    %366 = math.exp %365 : vector<2x32xf32>
    %cst_99 = arith.constant 1.000000e+00 : f32
    %367 = vector.broadcast %cst_99 : f32 to vector<2x32xf32>
    %368 = arith.addf %367, %366 : vector<2x32xf32>
    %369 = arith.divf %367, %368 : vector<2x32xf32>
    %370 = arith.mulf %361, %326 : vector<2x32xf32>
    %371 = arith.mulf %355, %363 : vector<2x32xf32>
    %372 = arith.addf %370, %371 : vector<2x32xf32>
    %373 = math.tanh %372 : vector<2x32xf32>
    %374 = arith.mulf %369, %373 : vector<2x32xf32>
    %cst_100 = arith.constant dense<0.000000e+00> : vector<2x128xf32>
    %375 = tpu.matmul %327, %3, %cst_100 {dimension_numbers = #tpu.dot_dimension_numbers<[1], [0], [0], [1], [0, 0, 1, 1], [], []>} : vector<2x32xf32>, vector<32x128xf32>, vector<2x128xf32> -> vector<2x128xf32>
    %376 = arith.addf %347, %375 : vector<2x128xf32>
    %377 = vector.extract_strided_slice %376 {offsets = [0, 0], sizes = [2, 32], strides = [1, 1]} : vector<2x128xf32> to vector<2x32xf32>
    %378 = arith.negf %377 : vector<2x32xf32>
    %379 = math.exp %378 : vector<2x32xf32>
    %cst_101 = arith.constant 1.000000e+00 : f32
    %380 = vector.broadcast %cst_101 : f32 to vector<2x32xf32>
    %381 = arith.addf %380, %379 : vector<2x32xf32>
    %382 = arith.divf %380, %381 : vector<2x32xf32>
    %383 = vector.extract_strided_slice %376 {offsets = [0, 32], sizes = [2, 32], strides = [1, 1]} : vector<2x128xf32> to vector<2x32xf32>
    %384 = arith.negf %383 : vector<2x32xf32>
    %385 = math.exp %384 : vector<2x32xf32>
    %cst_102 = arith.constant 1.000000e+00 : f32
    %386 = vector.broadcast %cst_102 : f32 to vector<2x32xf32>
    %387 = arith.addf %386, %385 : vector<2x32xf32>
    %388 = arith.divf %386, %387 : vector<2x32xf32>
    %389 = vector.extract_strided_slice %376 {offsets = [0, 64], sizes = [2, 32], strides = [1, 1]} : vector<2x128xf32> to vector<2x32xf32>
    %390 = math.tanh %389 : vector<2x32xf32>
    %391 = vector.extract_strided_slice %376 {offsets = [0, 96], sizes = [2, 32], strides = [1, 1]} : vector<2x128xf32> to vector<2x32xf32>
    %392 = arith.negf %391 : vector<2x32xf32>
    %393 = math.exp %392 : vector<2x32xf32>
    %cst_103 = arith.constant 1.000000e+00 : f32
    %394 = vector.broadcast %cst_103 : f32 to vector<2x32xf32>
    %395 = arith.addf %394, %393 : vector<2x32xf32>
    %396 = arith.divf %394, %395 : vector<2x32xf32>
    %397 = arith.mulf %388, %328 : vector<2x32xf32>
    %398 = arith.mulf %382, %390 : vector<2x32xf32>
    %399 = arith.addf %397, %398 : vector<2x32xf32>
    %400 = math.tanh %399 : vector<2x32xf32>
    %401 = arith.mulf %396, %400 : vector<2x32xf32>
    %402 = vector.broadcast %c4_i32 : i32 to vector<2x32xi32>
    %403 = arith.cmpi slt, %402, %6 : vector<2x32xi32>
    %404 = vector.broadcast %339 : i32 to vector<2x32xi32>
    %405 = arith.cmpi slt, %404, %6 : vector<2x32xi32>
    %406 = arith.select %403, %374, %325 : vector<2x32xi1>, vector<2x32xf32>
    %407 = arith.select %403, %372, %326 : vector<2x32xi1>, vector<2x32xf32>
    %408 = arith.select %405, %401, %327 : vector<2x32xi1>, vector<2x32xf32>
    %409 = arith.select %405, %399, %328 : vector<2x32xi1>, vector<2x32xf32>
    %cst_104 = arith.constant 0.000000e+00 : f32
    %410 = vector.broadcast %cst_104 : f32 to vector<2x32xf32>
    %411 = arith.select %403, %374, %410 : vector<2x32xi1>, vector<2x32xf32>
    %412 = vector.shape_cast %411 : vector<2x32xf32> to vector<1x2x32xf32>
    %413 = arith.index_cast %c4_i32 : i32 to index
    %c0_105 = arith.constant 0 : index
    %c0_106 = arith.constant 0 : index
    %414 = vector.load %arg6[%413, %c0_105, %c0_106] : memref<8x2x64xf32, #tpu.memory_space<vmem>>, vector<1x2x32xf32>
    tpu.vector_store %arg6[%413, %c0_105, %c0_106], %412 {strides = array<i32>} : memref<8x2x64xf32, #tpu.memory_space<vmem>>, vector<1x2x32xf32>,
    %cst_107 = arith.constant 0.000000e+00 : f32
    %415 = vector.broadcast %cst_107 : f32 to vector<2x32xf32>
    %416 = arith.select %405, %401, %415 : vector<2x32xi1>, vector<2x32xf32>
    %417 = vector.shape_cast %416 : vector<2x32xf32> to vector<1x2x32xf32>
    %418 = arith.index_cast %339 : i32 to index
    %c0_108 = arith.constant 0 : index
    %c32_109 = arith.constant 32 : index
    %419 = vector.load %arg6[%418, %c0_108, %c32_109] : memref<8x2x64xf32, #tpu.memory_space<vmem>>, vector<1x2x32xf32>
    tpu.vector_store %arg6[%418, %c0_108, %c32_109], %417 {strides = array<i32>} : memref<8x2x64xf32, #tpu.memory_space<vmem>>, vector<1x2x32xf32>,
    %c5_i32 = arith.constant 5 : i32
    %c7_i32_110 = arith.constant 7 : i32
    %420 = arith.subi %c7_i32_110, %c5_i32 : i32
    %421 = arith.index_cast %c5_i32 : i32 to index
    %c0_111 = arith.constant 0 : index
    %c0_112 = arith.constant 0 : index
    %422 = vector.load %arg1[%421, %c0_111, %c0_112] : memref<8x2x256xf32, #tpu.memory_space<vmem>>, vector<1x2x256xf32>
    %423 = vector.shape_cast %422 : vector<1x2x256xf32> to vector<2x256xf32>
    %424 = vector.extract_strided_slice %423 {offsets = [0, 0], sizes = [2, 128], strides = [1, 1]} : vector<2x256xf32> to vector<2x128xf32>
    %425 = arith.index_cast %420 : i32 to index
    %c0_113 = arith.constant 0 : index
    %c0_114 = arith.constant 0 : index
    %426 = vector.load %arg1[%425, %c0_113, %c0_114] : memref<8x2x256xf32, #tpu.memory_space<vmem>>, vector<1x2x256xf32>
    %427 = vector.shape_cast %426 : vector<1x2x256xf32> to vector<2x256xf32>
    %428 = vector.extract_strided_slice %427 {offsets = [0, 128], sizes = [2, 128], strides = [1, 1]} : vector<2x256xf32> to vector<2x128xf32>
    %cst_115 = arith.constant dense<0.000000e+00> : vector<2x128xf32>
    %429 = tpu.matmul %406, %1, %cst_115 {dimension_numbers = #tpu.dot_dimension_numbers<[1], [0], [0], [1], [0, 0, 1, 1], [], []>} : vector<2x32xf32>, vector<32x128xf32>, vector<2x128xf32> -> vector<2x128xf32>
    %430 = arith.addf %424, %429 : vector<2x128xf32>
    %431 = vector.extract_strided_slice %430 {offsets = [0, 0], sizes = [2, 32], strides = [1, 1]} : vector<2x128xf32> to vector<2x32xf32>
    %432 = arith.negf %431 : vector<2x32xf32>
    %433 = math.exp %432 : vector<2x32xf32>
    %cst_116 = arith.constant 1.000000e+00 : f32
    %434 = vector.broadcast %cst_116 : f32 to vector<2x32xf32>
    %435 = arith.addf %434, %433 : vector<2x32xf32>
    %436 = arith.divf %434, %435 : vector<2x32xf32>
    %437 = vector.extract_strided_slice %430 {offsets = [0, 32], sizes = [2, 32], strides = [1, 1]} : vector<2x128xf32> to vector<2x32xf32>
    %438 = arith.negf %437 : vector<2x32xf32>
    %439 = math.exp %438 : vector<2x32xf32>
    %cst_117 = arith.constant 1.000000e+00 : f32
    %440 = vector.broadcast %cst_117 : f32 to vector<2x32xf32>
    %441 = arith.addf %440, %439 : vector<2x32xf32>
    %442 = arith.divf %440, %441 : vector<2x32xf32>
    %443 = vector.extract_strided_slice %430 {offsets = [0, 64], sizes = [2, 32], strides = [1, 1]} : vector<2x128xf32> to vector<2x32xf32>
    %444 = math.tanh %443 : vector<2x32xf32>
    %445 = vector.extract_strided_slice %430 {offsets = [0, 96], sizes = [2, 32], strides = [1, 1]} : vector<2x128xf32> to vector<2x32xf32>
    %446 = arith.negf %445 : vector<2x32xf32>
    %447 = math.exp %446 : vector<2x32xf32>
    %cst_118 = arith.constant 1.000000e+00 : f32
    %448 = vector.broadcast %cst_118 : f32 to vector<2x32xf32>
    %449 = arith.addf %448, %447 : vector<2x32xf32>
    %450 = arith.divf %448, %449 : vector<2x32xf32>
    %451 = arith.mulf %442, %407 : vector<2x32xf32>
    %452 = arith.mulf %436, %444 : vector<2x32xf32>
    %453 = arith.addf %451, %452 : vector<2x32xf32>
    %454 = math.tanh %453 : vector<2x32xf32>
    %455 = arith.mulf %450, %454 : vector<2x32xf32>
    %cst_119 = arith.constant dense<0.000000e+00> : vector<2x128xf32>
    %456 = tpu.matmul %408, %3, %cst_119 {dimension_numbers = #tpu.dot_dimension_numbers<[1], [0], [0], [1], [0, 0, 1, 1], [], []>} : vector<2x32xf32>, vector<32x128xf32>, vector<2x128xf32> -> vector<2x128xf32>
    %457 = arith.addf %428, %456 : vector<2x128xf32>
    %458 = vector.extract_strided_slice %457 {offsets = [0, 0], sizes = [2, 32], strides = [1, 1]} : vector<2x128xf32> to vector<2x32xf32>
    %459 = arith.negf %458 : vector<2x32xf32>
    %460 = math.exp %459 : vector<2x32xf32>
    %cst_120 = arith.constant 1.000000e+00 : f32
    %461 = vector.broadcast %cst_120 : f32 to vector<2x32xf32>
    %462 = arith.addf %461, %460 : vector<2x32xf32>
    %463 = arith.divf %461, %462 : vector<2x32xf32>
    %464 = vector.extract_strided_slice %457 {offsets = [0, 32], sizes = [2, 32], strides = [1, 1]} : vector<2x128xf32> to vector<2x32xf32>
    %465 = arith.negf %464 : vector<2x32xf32>
    %466 = math.exp %465 : vector<2x32xf32>
    %cst_121 = arith.constant 1.000000e+00 : f32
    %467 = vector.broadcast %cst_121 : f32 to vector<2x32xf32>
    %468 = arith.addf %467, %466 : vector<2x32xf32>
    %469 = arith.divf %467, %468 : vector<2x32xf32>
    %470 = vector.extract_strided_slice %457 {offsets = [0, 64], sizes = [2, 32], strides = [1, 1]} : vector<2x128xf32> to vector<2x32xf32>
    %471 = math.tanh %470 : vector<2x32xf32>
    %472 = vector.extract_strided_slice %457 {offsets = [0, 96], sizes = [2, 32], strides = [1, 1]} : vector<2x128xf32> to vector<2x32xf32>
    %473 = arith.negf %472 : vector<2x32xf32>
    %474 = math.exp %473 : vector<2x32xf32>
    %cst_122 = arith.constant 1.000000e+00 : f32
    %475 = vector.broadcast %cst_122 : f32 to vector<2x32xf32>
    %476 = arith.addf %475, %474 : vector<2x32xf32>
    %477 = arith.divf %475, %476 : vector<2x32xf32>
    %478 = arith.mulf %469, %409 : vector<2x32xf32>
    %479 = arith.mulf %463, %471 : vector<2x32xf32>
    %480 = arith.addf %478, %479 : vector<2x32xf32>
    %481 = math.tanh %480 : vector<2x32xf32>
    %482 = arith.mulf %477, %481 : vector<2x32xf32>
    %483 = vector.broadcast %c5_i32 : i32 to vector<2x32xi32>
    %484 = arith.cmpi slt, %483, %6 : vector<2x32xi32>
    %485 = vector.broadcast %420 : i32 to vector<2x32xi32>
    %486 = arith.cmpi slt, %485, %6 : vector<2x32xi32>
    %487 = arith.select %484, %455, %406 : vector<2x32xi1>, vector<2x32xf32>
    %488 = arith.select %484, %453, %407 : vector<2x32xi1>, vector<2x32xf32>
    %489 = arith.select %486, %482, %408 : vector<2x32xi1>, vector<2x32xf32>
    %490 = arith.select %486, %480, %409 : vector<2x32xi1>, vector<2x32xf32>
    %cst_123 = arith.constant 0.000000e+00 : f32
    %491 = vector.broadcast %cst_123 : f32 to vector<2x32xf32>
    %492 = arith.select %484, %455, %491 : vector<2x32xi1>, vector<2x32xf32>
    %493 = vector.shape_cast %492 : vector<2x32xf32> to vector<1x2x32xf32>
    %494 = arith.index_cast %c5_i32 : i32 to index
    %c0_124 = arith.constant 0 : index
    %c0_125 = arith.constant 0 : index
    %495 = vector.load %arg6[%494, %c0_124, %c0_125] : memref<8x2x64xf32, #tpu.memory_space<vmem>>, vector<1x2x32xf32>
    tpu.vector_store %arg6[%494, %c0_124, %c0_125], %493 {strides = array<i32>} : memref<8x2x64xf32, #tpu.memory_space<vmem>>, vector<1x2x32xf32>,
    %cst_126 = arith.constant 0.000000e+00 : f32
    %496 = vector.broadcast %cst_126 : f32 to vector<2x32xf32>
    %497 = arith.select %486, %482, %496 : vector<2x32xi1>, vector<2x32xf32>
    %498 = vector.shape_cast %497 : vector<2x32xf32> to vector<1x2x32xf32>
    %499 = arith.index_cast %420 : i32 to index
    %c0_127 = arith.constant 0 : index
    %c32_128 = arith.constant 32 : index
    %500 = vector.load %arg6[%499, %c0_127, %c32_128] : memref<8x2x64xf32, #tpu.memory_space<vmem>>, vector<1x2x32xf32>
    tpu.vector_store %arg6[%499, %c0_127, %c32_128], %498 {strides = array<i32>} : memref<8x2x64xf32, #tpu.memory_space<vmem>>, vector<1x2x32xf32>,
    %c6_i32 = arith.constant 6 : i32
    %c7_i32_129 = arith.constant 7 : i32
    %501 = arith.subi %c7_i32_129, %c6_i32 : i32
    %502 = arith.index_cast %c6_i32 : i32 to index
    %c0_130 = arith.constant 0 : index
    %c0_131 = arith.constant 0 : index
    %503 = vector.load %arg1[%502, %c0_130, %c0_131] : memref<8x2x256xf32, #tpu.memory_space<vmem>>, vector<1x2x256xf32>
    %504 = vector.shape_cast %503 : vector<1x2x256xf32> to vector<2x256xf32>
    %505 = vector.extract_strided_slice %504 {offsets = [0, 0], sizes = [2, 128], strides = [1, 1]} : vector<2x256xf32> to vector<2x128xf32>
    %506 = arith.index_cast %501 : i32 to index
    %c0_132 = arith.constant 0 : index
    %c0_133 = arith.constant 0 : index
    %507 = vector.load %arg1[%506, %c0_132, %c0_133] : memref<8x2x256xf32, #tpu.memory_space<vmem>>, vector<1x2x256xf32>
    %508 = vector.shape_cast %507 : vector<1x2x256xf32> to vector<2x256xf32>
    %509 = vector.extract_strided_slice %508 {offsets = [0, 128], sizes = [2, 128], strides = [1, 1]} : vector<2x256xf32> to vector<2x128xf32>
    %cst_134 = arith.constant dense<0.000000e+00> : vector<2x128xf32>
    %510 = tpu.matmul %487, %1, %cst_134 {dimension_numbers = #tpu.dot_dimension_numbers<[1], [0], [0], [1], [0, 0, 1, 1], [], []>} : vector<2x32xf32>, vector<32x128xf32>, vector<2x128xf32> -> vector<2x128xf32>
    %511 = arith.addf %505, %510 : vector<2x128xf32>
    %512 = vector.extract_strided_slice %511 {offsets = [0, 0], sizes = [2, 32], strides = [1, 1]} : vector<2x128xf32> to vector<2x32xf32>
    %513 = arith.negf %512 : vector<2x32xf32>
    %514 = math.exp %513 : vector<2x32xf32>
    %cst_135 = arith.constant 1.000000e+00 : f32
    %515 = vector.broadcast %cst_135 : f32 to vector<2x32xf32>
    %516 = arith.addf %515, %514 : vector<2x32xf32>
    %517 = arith.divf %515, %516 : vector<2x32xf32>
    %518 = vector.extract_strided_slice %511 {offsets = [0, 32], sizes = [2, 32], strides = [1, 1]} : vector<2x128xf32> to vector<2x32xf32>
    %519 = arith.negf %518 : vector<2x32xf32>
    %520 = math.exp %519 : vector<2x32xf32>
    %cst_136 = arith.constant 1.000000e+00 : f32
    %521 = vector.broadcast %cst_136 : f32 to vector<2x32xf32>
    %522 = arith.addf %521, %520 : vector<2x32xf32>
    %523 = arith.divf %521, %522 : vector<2x32xf32>
    %524 = vector.extract_strided_slice %511 {offsets = [0, 64], sizes = [2, 32], strides = [1, 1]} : vector<2x128xf32> to vector<2x32xf32>
    %525 = math.tanh %524 : vector<2x32xf32>
    %526 = vector.extract_strided_slice %511 {offsets = [0, 96], sizes = [2, 32], strides = [1, 1]} : vector<2x128xf32> to vector<2x32xf32>
    %527 = arith.negf %526 : vector<2x32xf32>
    %528 = math.exp %527 : vector<2x32xf32>
    %cst_137 = arith.constant 1.000000e+00 : f32
    %529 = vector.broadcast %cst_137 : f32 to vector<2x32xf32>
    %530 = arith.addf %529, %528 : vector<2x32xf32>
    %531 = arith.divf %529, %530 : vector<2x32xf32>
    %532 = arith.mulf %523, %488 : vector<2x32xf32>
    %533 = arith.mulf %517, %525 : vector<2x32xf32>
    %534 = arith.addf %532, %533 : vector<2x32xf32>
    %535 = math.tanh %534 : vector<2x32xf32>
    %536 = arith.mulf %531, %535 : vector<2x32xf32>
    %cst_138 = arith.constant dense<0.000000e+00> : vector<2x128xf32>
    %537 = tpu.matmul %489, %3, %cst_138 {dimension_numbers = #tpu.dot_dimension_numbers<[1], [0], [0], [1], [0, 0, 1, 1], [], []>} : vector<2x32xf32>, vector<32x128xf32>, vector<2x128xf32> -> vector<2x128xf32>
    %538 = arith.addf %509, %537 : vector<2x128xf32>
    %539 = vector.extract_strided_slice %538 {offsets = [0, 0], sizes = [2, 32], strides = [1, 1]} : vector<2x128xf32> to vector<2x32xf32>
    %540 = arith.negf %539 : vector<2x32xf32>
    %541 = math.exp %540 : vector<2x32xf32>
    %cst_139 = arith.constant 1.000000e+00 : f32
    %542 = vector.broadcast %cst_139 : f32 to vector<2x32xf32>
    %543 = arith.addf %542, %541 : vector<2x32xf32>
    %544 = arith.divf %542, %543 : vector<2x32xf32>
    %545 = vector.extract_strided_slice %538 {offsets = [0, 32], sizes = [2, 32], strides = [1, 1]} : vector<2x128xf32> to vector<2x32xf32>
    %546 = arith.negf %545 : vector<2x32xf32>
    %547 = math.exp %546 : vector<2x32xf32>
    %cst_140 = arith.constant 1.000000e+00 : f32
    %548 = vector.broadcast %cst_140 : f32 to vector<2x32xf32>
    %549 = arith.addf %548, %547 : vector<2x32xf32>
    %550 = arith.divf %548, %549 : vector<2x32xf32>
    %551 = vector.extract_strided_slice %538 {offsets = [0, 64], sizes = [2, 32], strides = [1, 1]} : vector<2x128xf32> to vector<2x32xf32>
    %552 = math.tanh %551 : vector<2x32xf32>
    %553 = vector.extract_strided_slice %538 {offsets = [0, 96], sizes = [2, 32], strides = [1, 1]} : vector<2x128xf32> to vector<2x32xf32>
    %554 = arith.negf %553 : vector<2x32xf32>
    %555 = math.exp %554 : vector<2x32xf32>
    %cst_141 = arith.constant 1.000000e+00 : f32
    %556 = vector.broadcast %cst_141 : f32 to vector<2x32xf32>
    %557 = arith.addf %556, %555 : vector<2x32xf32>
    %558 = arith.divf %556, %557 : vector<2x32xf32>
    %559 = arith.mulf %550, %490 : vector<2x32xf32>
    %560 = arith.mulf %544, %552 : vector<2x32xf32>
    %561 = arith.addf %559, %560 : vector<2x32xf32>
    %562 = math.tanh %561 : vector<2x32xf32>
    %563 = arith.mulf %558, %562 : vector<2x32xf32>
    %564 = vector.broadcast %c6_i32 : i32 to vector<2x32xi32>
    %565 = arith.cmpi slt, %564, %6 : vector<2x32xi32>
    %566 = vector.broadcast %501 : i32 to vector<2x32xi32>
    %567 = arith.cmpi slt, %566, %6 : vector<2x32xi32>
    %568 = arith.select %565, %536, %487 : vector<2x32xi1>, vector<2x32xf32>
    %569 = arith.select %565, %534, %488 : vector<2x32xi1>, vector<2x32xf32>
    %570 = arith.select %567, %563, %489 : vector<2x32xi1>, vector<2x32xf32>
    %571 = arith.select %567, %561, %490 : vector<2x32xi1>, vector<2x32xf32>
    %cst_142 = arith.constant 0.000000e+00 : f32
    %572 = vector.broadcast %cst_142 : f32 to vector<2x32xf32>
    %573 = arith.select %565, %536, %572 : vector<2x32xi1>, vector<2x32xf32>
    %574 = vector.shape_cast %573 : vector<2x32xf32> to vector<1x2x32xf32>
    %575 = arith.index_cast %c6_i32 : i32 to index
    %c0_143 = arith.constant 0 : index
    %c0_144 = arith.constant 0 : index
    %576 = vector.load %arg6[%575, %c0_143, %c0_144] : memref<8x2x64xf32, #tpu.memory_space<vmem>>, vector<1x2x32xf32>
    tpu.vector_store %arg6[%575, %c0_143, %c0_144], %574 {strides = array<i32>} : memref<8x2x64xf32, #tpu.memory_space<vmem>>, vector<1x2x32xf32>,
    %cst_145 = arith.constant 0.000000e+00 : f32
    %577 = vector.broadcast %cst_145 : f32 to vector<2x32xf32>
    %578 = arith.select %567, %563, %577 : vector<2x32xi1>, vector<2x32xf32>
    %579 = vector.shape_cast %578 : vector<2x32xf32> to vector<1x2x32xf32>
    %580 = arith.index_cast %501 : i32 to index
    %c0_146 = arith.constant 0 : index
    %c32_147 = arith.constant 32 : index
    %581 = vector.load %arg6[%580, %c0_146, %c32_147] : memref<8x2x64xf32, #tpu.memory_space<vmem>>, vector<1x2x32xf32>
    tpu.vector_store %arg6[%580, %c0_146, %c32_147], %579 {strides = array<i32>} : memref<8x2x64xf32, #tpu.memory_space<vmem>>, vector<1x2x32xf32>,
    %c7_i32_148 = arith.constant 7 : i32
    %c7_i32_149 = arith.constant 7 : i32
    %582 = arith.subi %c7_i32_149, %c7_i32_148 : i32
    %583 = arith.index_cast %c7_i32_148 : i32 to index
    %c0_150 = arith.constant 0 : index
    %c0_151 = arith.constant 0 : index
    %584 = vector.load %arg1[%583, %c0_150, %c0_151] : memref<8x2x256xf32, #tpu.memory_space<vmem>>, vector<1x2x256xf32>
    %585 = vector.shape_cast %584 : vector<1x2x256xf32> to vector<2x256xf32>
    %586 = vector.extract_strided_slice %585 {offsets = [0, 0], sizes = [2, 128], strides = [1, 1]} : vector<2x256xf32> to vector<2x128xf32>
    %587 = arith.index_cast %582 : i32 to index
    %c0_152 = arith.constant 0 : index
    %c0_153 = arith.constant 0 : index
    %588 = vector.load %arg1[%587, %c0_152, %c0_153] : memref<8x2x256xf32, #tpu.memory_space<vmem>>, vector<1x2x256xf32>
    %589 = vector.shape_cast %588 : vector<1x2x256xf32> to vector<2x256xf32>
    %590 = vector.extract_strided_slice %589 {offsets = [0, 128], sizes = [2, 128], strides = [1, 1]} : vector<2x256xf32> to vector<2x128xf32>
    %cst_154 = arith.constant dense<0.000000e+00> : vector<2x128xf32>
    %591 = tpu.matmul %568, %1, %cst_154 {dimension_numbers = #tpu.dot_dimension_numbers<[1], [0], [0], [1], [0, 0, 1, 1], [], []>} : vector<2x32xf32>, vector<32x128xf32>, vector<2x128xf32> -> vector<2x128xf32>
    %592 = arith.addf %586, %591 : vector<2x128xf32>
    %593 = vector.extract_strided_slice %592 {offsets = [0, 0], sizes = [2, 32], strides = [1, 1]} : vector<2x128xf32> to vector<2x32xf32>
    %594 = arith.negf %593 : vector<2x32xf32>
    %595 = math.exp %594 : vector<2x32xf32>
    %cst_155 = arith.constant 1.000000e+00 : f32
    %596 = vector.broadcast %cst_155 : f32 to vector<2x32xf32>
    %597 = arith.addf %596, %595 : vector<2x32xf32>
    %598 = arith.divf %596, %597 : vector<2x32xf32>
    %599 = vector.extract_strided_slice %592 {offsets = [0, 32], sizes = [2, 32], strides = [1, 1]} : vector<2x128xf32> to vector<2x32xf32>
    %600 = arith.negf %599 : vector<2x32xf32>
    %601 = math.exp %600 : vector<2x32xf32>
    %cst_156 = arith.constant 1.000000e+00 : f32
    %602 = vector.broadcast %cst_156 : f32 to vector<2x32xf32>
    %603 = arith.addf %602, %601 : vector<2x32xf32>
    %604 = arith.divf %602, %603 : vector<2x32xf32>
    %605 = vector.extract_strided_slice %592 {offsets = [0, 64], sizes = [2, 32], strides = [1, 1]} : vector<2x128xf32> to vector<2x32xf32>
    %606 = math.tanh %605 : vector<2x32xf32>
    %607 = vector.extract_strided_slice %592 {offsets = [0, 96], sizes = [2, 32], strides = [1, 1]} : vector<2x128xf32> to vector<2x32xf32>
    %608 = arith.negf %607 : vector<2x32xf32>
    %609 = math.exp %608 : vector<2x32xf32>
    %cst_157 = arith.constant 1.000000e+00 : f32
    %610 = vector.broadcast %cst_157 : f32 to vector<2x32xf32>
    %611 = arith.addf %610, %609 : vector<2x32xf32>
    %612 = arith.divf %610, %611 : vector<2x32xf32>
    %613 = arith.mulf %604, %569 : vector<2x32xf32>
    %614 = arith.mulf %598, %606 : vector<2x32xf32>
    %615 = arith.addf %613, %614 : vector<2x32xf32>
    %616 = math.tanh %615 : vector<2x32xf32>
    %617 = arith.mulf %612, %616 : vector<2x32xf32>
    %cst_158 = arith.constant dense<0.000000e+00> : vector<2x128xf32>
    %618 = tpu.matmul %570, %3, %cst_158 {dimension_numbers = #tpu.dot_dimension_numbers<[1], [0], [0], [1], [0, 0, 1, 1], [], []>} : vector<2x32xf32>, vector<32x128xf32>, vector<2x128xf32> -> vector<2x128xf32>
    %619 = arith.addf %590, %618 : vector<2x128xf32>
    %620 = vector.extract_strided_slice %619 {offsets = [0, 0], sizes = [2, 32], strides = [1, 1]} : vector<2x128xf32> to vector<2x32xf32>
    %621 = arith.negf %620 : vector<2x32xf32>
    %622 = math.exp %621 : vector<2x32xf32>
    %cst_159 = arith.constant 1.000000e+00 : f32
    %623 = vector.broadcast %cst_159 : f32 to vector<2x32xf32>
    %624 = arith.addf %623, %622 : vector<2x32xf32>
    %625 = arith.divf %623, %624 : vector<2x32xf32>
    %626 = vector.extract_strided_slice %619 {offsets = [0, 32], sizes = [2, 32], strides = [1, 1]} : vector<2x128xf32> to vector<2x32xf32>
    %627 = arith.negf %626 : vector<2x32xf32>
    %628 = math.exp %627 : vector<2x32xf32>
    %cst_160 = arith.constant 1.000000e+00 : f32
    %629 = vector.broadcast %cst_160 : f32 to vector<2x32xf32>
    %630 = arith.addf %629, %628 : vector<2x32xf32>
    %631 = arith.divf %629, %630 : vector<2x32xf32>
    %632 = vector.extract_strided_slice %619 {offsets = [0, 64], sizes = [2, 32], strides = [1, 1]} : vector<2x128xf32> to vector<2x32xf32>
    %633 = math.tanh %632 : vector<2x32xf32>
    %634 = vector.extract_strided_slice %619 {offsets = [0, 96], sizes = [2, 32], strides = [1, 1]} : vector<2x128xf32> to vector<2x32xf32>
    %635 = arith.negf %634 : vector<2x32xf32>
    %636 = math.exp %635 : vector<2x32xf32>
    %cst_161 = arith.constant 1.000000e+00 : f32
    %637 = vector.broadcast %cst_161 : f32 to vector<2x32xf32>
    %638 = arith.addf %637, %636 : vector<2x32xf32>
    %639 = arith.divf %637, %638 : vector<2x32xf32>
    %640 = arith.mulf %631, %571 : vector<2x32xf32>
    %641 = arith.mulf %625, %633 : vector<2x32xf32>
    %642 = arith.addf %640, %641 : vector<2x32xf32>
    %643 = math.tanh %642 : vector<2x32xf32>
    %644 = arith.mulf %639, %643 : vector<2x32xf32>
    %645 = vector.broadcast %c7_i32_148 : i32 to vector<2x32xi32>
    %646 = arith.cmpi slt, %645, %6 : vector<2x32xi32>
    %647 = vector.broadcast %582 : i32 to vector<2x32xi32>
    %648 = arith.cmpi slt, %647, %6 : vector<2x32xi32>
    %649 = arith.select %646, %617, %568 : vector<2x32xi1>, vector<2x32xf32>
    %650 = arith.select %646, %615, %569 : vector<2x32xi1>, vector<2x32xf32>
    %651 = arith.select %648, %644, %570 : vector<2x32xi1>, vector<2x32xf32>
    %652 = arith.select %648, %642, %571 : vector<2x32xi1>, vector<2x32xf32>
    %cst_162 = arith.constant 0.000000e+00 : f32
    %653 = vector.broadcast %cst_162 : f32 to vector<2x32xf32>
    %654 = arith.select %646, %617, %653 : vector<2x32xi1>, vector<2x32xf32>
    %655 = vector.shape_cast %654 : vector<2x32xf32> to vector<1x2x32xf32>
    %656 = arith.index_cast %c7_i32_148 : i32 to index
    %c0_163 = arith.constant 0 : index
    %c0_164 = arith.constant 0 : index
    %657 = vector.load %arg6[%656, %c0_163, %c0_164] : memref<8x2x64xf32, #tpu.memory_space<vmem>>, vector<1x2x32xf32>
    tpu.vector_store %arg6[%656, %c0_163, %c0_164], %655 {strides = array<i32>} : memref<8x2x64xf32, #tpu.memory_space<vmem>>, vector<1x2x32xf32>,
    %cst_165 = arith.constant 0.000000e+00 : f32
    %658 = vector.broadcast %cst_165 : f32 to vector<2x32xf32>
    %659 = arith.select %648, %644, %658 : vector<2x32xi1>, vector<2x32xf32>
    %660 = vector.shape_cast %659 : vector<2x32xf32> to vector<1x2x32xf32>
    %661 = arith.index_cast %582 : i32 to index
    %c0_166 = arith.constant 0 : index
    %c32_167 = arith.constant 32 : index
    %662 = vector.load %arg6[%661, %c0_166, %c32_167] : memref<8x2x64xf32, #tpu.memory_space<vmem>>, vector<1x2x32xf32>
    tpu.vector_store %arg6[%661, %c0_166, %c32_167], %660 {strides = array<i32>} : memref<8x2x64xf32, #tpu.memory_space<vmem>>, vector<1x2x32xf32>,
    %c8_i32 = arith.constant 8 : i32
    return
  }
  func.func @transform_0(%arg0: i32) -> (i32, i32, i32) {
    %c0_i32 = arith.constant 0 : i32
    %c0_i32_0 = arith.constant 0 : i32
    %c0_i32_1 = arith.constant 0 : i32
    %c0_i32_2 = arith.constant 0 : i32
    return %c0_i32, %c0_i32_0, %c0_i32_1 : i32, i32, i32
  }
  func.func @transform_1(%arg0: i32) -> (i32, i32, i32) {
    %c0_i32 = arith.constant 0 : i32
    %c0_i32_0 = arith.constant 0 : i32
    %c0_i32_1 = arith.constant 0 : i32
    %c0_i32_2 = arith.constant 0 : i32
    return %c0_i32, %c0_i32_0, %c0_i32_1 : i32, i32, i32
  }
  func.func @transform_2(%arg0: i32) -> (i32, i32, i32) {
    %c0_i32 = arith.constant 0 : i32
    %c0_i32_0 = arith.constant 0 : i32
    %c0_i32_1 = arith.constant 0 : i32
    %c0_i32_2 = arith.constant 0 : i32
    return %c0_i32, %c0_i32_0, %c0_i32_1 : i32, i32, i32
  }
  func.func @transform_3(%arg0: i32) -> (i32, i32, i32) {
    %c0_i32 = arith.constant 0 : i32
    %c0_i32_0 = arith.constant 0 : i32
    %c0_i32_1 = arith.constant 0 : i32
    %c0_i32_2 = arith.constant 0 : i32
    return %c0_i32, %c0_i32_0, %c0_i32_1 : i32, i32, i32
  }
  func.func @transform_4(%arg0: i32) -> (i32, i32) {
    %c0_i32 = arith.constant 0 : i32
    %c0_i32_0 = arith.constant 0 : i32
    %c0_i32_1 = arith.constant 0 : i32
    return %c0_i32, %c0_i32_0 : i32, i32
  }
  func.func @transform_5(%arg0: i32) -> (i32, i32, i32) {
    %c0_i32 = arith.constant 0 : i32
    %c0_i32_0 = arith.constant 0 : i32
    %c0_i32_1 = arith.constant 0 : i32
    %c0_i32_2 = arith.constant 0 : i32
    return %c0_i32, %c0_i32_0, %c0_i32_1 : i32, i32, i32
  }
}

</mosaic_0001>

<bundles_post_ra>
// kernel: tagger_forward.3
= control target key start
LH: loop header
LB: loop body
LE: loop exit
PB: predicated region body
PF: predicated region fallthrough
CT: control target
= control target key end

     0   :  { %vm30_vm0 = vcmask 261120   ;;  %s168_s1 = inlined_call_operand.vmem [shape: f32[32,256], index: 1, kind: input, shape index: {}]   ;;  %s169_s0 = inlined_call_operand.vmem [shape: f32[16,32], index: 0, kind: input, shape index: {}]   ;;  %s170_s2 = inlined_call_operand.vmem [shape: f32[1,256], index: 2, kind: input, shape index: {}]   ;;  %s171_s3 = inlined_call_operand.vmem [shape: f32[16,256], index: 3, kind: output, shape index: {}]  }
   0x1   :  { %v22_v0 = vld [vmem:[%s168_s1 + $0x30] sm:$0xff]  ;;  %v23_v1 = vld [vmem:[%s168_s1 + $0x38] sm:$0xff]  ;;  %v20_v2 = vld [vmem:[%s168_s1 + $0x20] sm:$0xff] }
   0x2   :  { %95 = vmatpush.msra.mxu2 %v22_v0  ;;  %99 = vmatpush.msra.mxu3 %v23_v1  ;;  %v21_v3 = vld [vmem:[%s168_s1 + $0x28] sm:$0xff]  ;;  %v18_v4 = vld [vmem:[%s168_s1 + $0x10] sm:$0xff]  ;;  %v19_v5 = vld [vmem:[%s168_s1 + $0x18] sm:$0xff] }
   0x3   :  { %49 = vmatpush.msra.mxu0 %v22_v0  ;;  %72 = vmatpush.msra.mxu1 %v23_v1  ;;  %v16_v6 = vld [vmem:[%s168_s1] sm:$0xff]  ;;  %v17_v7 = vld [vmem:[%s168_s1 + $0x8] sm:$0xff] }
   0x4   :  { %96 = vmatpush.msra.mxu2 %v20_v2  ;;  %100 = vmatpush.msra.mxu3 %v21_v3  ;;  %v15_v8 = vld [vmem:[%s169_s0 + $0x8] sm:$0xff]  ;;  %v14_v9 = vld [vmem:[%s169_s0] sm:$0xff] }
   0x5   :  { %50 = vmatpush.msra.mxu0 %v20_v2  ;;  %73 = vmatpush.msra.mxu1 %v21_v3  ;;  %v24_v10 = vld [vmem:[%s170_s2] sm:$0x3] }
   0x6   :  { %97 = vmatpush.msra.mxu2 %v18_v4  ;;  %101 = vmatpush.msra.mxu3 %v19_v5  ;;  %v26_v11 = vperm.slane %v24_v10, 0  ;;  %v27_v12 = vperm.slane %v24_v10, 1 }
   0x7   :  { %51 = vmatpush.msra.mxu0 %v18_v4  ;;  %74 = vmatpush.msra.mxu1 %v19_v5 }
   0x8   :  { %98 = vmatpush.msra.mxu2 %v16_v6  ;;  %102 = vmatpush.msra.mxu3 %v17_v7 }
   0x9   :  { %92 = vmatmul.msk.f32.vlgmr.msra.gmra.mxu2 %vm30_vm0, %v15_v8  ;;  %94 = vmatmul.msk.f32.vlgmr.msra.gmra.mxu3 %vm30_vm0, %v15_v8 }
   0xa   :  { %52 = vmatpush.msra.mxu0 %v16_v6  ;;  %75 = vmatpush.msra.mxu1 %v17_v7 }
   0xb   :  { %91 = vmatmul.msk.f32.vlgmr.msra.gmra.mxu0 %vm30_vm0, %v14_v9  ;;  %93 = vmatmul.msk.f32.vlgmr.msra.gmra.mxu1 %vm30_vm0, %v14_v9 }
  0x88   :  { %v54_v13 = vpop.f32.mrf.mxu0  ;;  %v77_v14 = vpop.f32.mrf.mxu1 }
  0x89   :  { %v55_v15 = vadd.f32 %v54_v13, %v26_v11  ;;  %v78_v16 = vadd.f32 %v77_v14, %v27_v12 }
  0x8b   :  { %83 = vst [vmem:[%s171_s3] sm:$0xff] %v55_v15 }
  0x8c   :  { %v57_v17 = vpop.f32.mrf.mxu2  ;;  %84 = vst [vmem:[%s171_s3 + $0x8] sm:$0xff] %v78_v16  ;;  %v80_v18 = vpop.f32.mrf.mxu3 }
  0x8d   :  { %v58_v19 = vadd.f32 %v57_v17, %v26_v11  ;;  %v81_v20 = vadd.f32 %v80_v18, %v27_v12 }
  0x8f   :  { %85 = vst [vmem:[%s171_s3 + $0x10] sm:$0xff] %v58_v19 }
  0x90   :  { %86 = vst [vmem:[%s171_s3 + $0x18] sm:$0xff] %v81_v20 }

// kernel: tagger_forward.5
= control target key start
LH: loop header
LB: loop body
LE: loop exit
PB: predicated region body
PF: predicated region fallthrough
CT: control target
= control target key end

     0   :  { %vm34_vm0 = vcmask 523264   ;;  %s235_s1 = inlined_call_operand.vmem [shape: f32[64,64], index: 1, kind: input, shape index: {}]   ;;  %s236_s3 = inlined_call_operand.vmem [shape: f32[64,128], index: 3, kind: input, shape index: {}]   ;;  %s237_s2 = inlined_call_operand.vmem [shape: f32[1,64], index: 2, kind: input, shape index: {}]   ;;  %s238_s0 = inlined_call_operand.vmem [shape: f32[16,64], index: 0, kind: input, shape index: {}]   ;;  %s239_s4 = inlined_call_operand.vmem [shape: f32[1,128], index: 4, kind: input, shape index: {}]   ;;  %s240_s5 = inlined_call_operand.vmem [shape: f32[16,128], index: 5, kind: output, shape index: {}]  }
   0x1   :  { %v29_v0 = vld [vmem:[%s235_s1 + $0x38] sm:$0xff]  ;;  %v28_v1 = vld [vmem:[%s235_s1 + $0x30] sm:$0xff]  ;;  %v27_v2 = vld [vmem:[%s235_s1 + $0x28] sm:$0xff] }
   0x2   :  { %117 = vmatpush.msra.mxu2 %v29_v0  ;;  %49 = vmatpush.msra.mxu0 %v29_v0  ;;  %v73_v3 = vld [vmem:[%s236_s3 + $0x38] sm:$0xff]  ;;  %v72_v4 = vld [vmem:[%s236_s3 + $0x30] sm:$0xff]  ;;  %v26_v5 = vld [vmem:[%s235_s1 + $0x20] sm:$0xff] }
   0x3   :  { %125 = vmatpush.msra.mxu3 %v73_v3  ;;  %92 = vmatpush.msra.mxu1 %v73_v3  ;;  %v71_v6 = vld [vmem:[%s236_s3 + $0x28] sm:$0xff]  ;;  %v25_v7 = vld [vmem:[%s235_s1 + $0x18] sm:$0xff]  ;;  %v70_v8 = vld [vmem:[%s236_s3 + $0x20] sm:$0xff] }
   0x4   :  { %118 = vmatpush.msra.mxu2 %v28_v1  ;;  %50 = vmatpush.msra.mxu0 %v28_v1  ;;  %v24_v9 = vld [vmem:[%s235_s1 + $0x10] sm:$0xff]  ;;  %v69_v10 = vld [vmem:[%s236_s3 + $0x18] sm:$0xff]  ;;  %v23_v11 = vld [vmem:[%s235_s1 + $0x8] sm:$0xff] }
   0x5   :  { %126 = vmatpush.msra.mxu3 %v72_v4  ;;  %93 = vmatpush.msra.mxu1 %v72_v4  ;;  %v22_v12 = vld [vmem:[%s235_s1] sm:$0xff]  ;;  %v21_v13 = vld [vmem:[%s238_s0 + $0x8] sm:$0xff]  ;;  %v68_v15 = vld [vmem:[%s236_s3 + $0x10] sm:$0xff] }
   0x6   :  { %119 = vmatpush.msra.mxu2 %v27_v2  ;;  %51 = vmatpush.msra.mxu0 %v27_v2  ;;  %v20_v14 = vld [vmem:[%s238_s0] sm:$0xff]  ;;  %v67_v16 = vld [vmem:[%s236_s3 + $0x8] sm:$0xff] }
   0x7   :  { %127 = vmatpush.msra.mxu3 %v71_v6  ;;  %94 = vmatpush.msra.mxu1 %v71_v6  ;;  %v66_v17 = vld [vmem:[%s236_s3] sm:$0xff] }
   0x8   :  { %120 = vmatpush.msra.mxu2 %v26_v5  ;;  %52 = vmatpush.msra.mxu0 %v26_v5  ;;  %v133_v18 = vld [vmem:[%s237_s2] ss:$0 sm:$0xff] }
   0x9   :  { %128 = vmatpush.msra.mxu3 %v70_v8  ;;  %95 = vmatpush.msra.mxu1 %v70_v8  ;;  %v134_v25 = vld [vmem:[%s239_s4] ss:$0 sm:$0xff] }
   0xa   :  { %121 = vmatpush.msra.mxu2 %v25_v7  ;;  %53 = vmatpush.msra.mxu0 %v25_v7 }
   0xb   :  { %129 = vmatpush.msra.mxu3 %v69_v10  ;;  %96 = vmatpush.msra.mxu1 %v69_v10 }
   0xc   :  { %122 = vmatpush.msra.mxu2 %v24_v9  ;;  %54 = vmatpush.msra.mxu0 %v24_v9 }
   0xd   :  { %130 = vmatpush.msra.mxu3 %v68_v15  ;;  %97 = vmatpush.msra.mxu1 %v68_v15 }
   0xe   :  { %123 = vmatpush.msra.mxu2 %v23_v11  ;;  %55 = vmatpush.msra.mxu0 %v23_v11 }
   0xf   :  { %131 = vmatpush.msra.mxu3 %v67_v16  ;;  %98 = vmatpush.msra.mxu1 %v67_v16 }
  0x10   :  { %124 = vmatpush.msra.mxu2 %v22_v12  ;;  %56 = vmatpush.msra.mxu0 %v22_v12 }
  0x11   :  { %114 = vmatmul.msk.f32.vlgmr.msra.gmra.mxu2 %vm34_vm0, %v21_v13  ;;  %113 = vmatmul.msk.f32.vlgmr.msra.gmra.mxu0 %vm34_vm0, %v20_v14 }
  0x12   :  { %132 = vmatpush.msra.mxu3 %v66_v17  ;;  %99 = vmatpush.msra.mxu1 %v66_v17 }
  0x8e   :  { %v58_v19 = vpop.f32.mrf.mxu0 }
  0x8f   :  { %v59_v20 = vadd.f32 %v133_v18, %v58_v19 }
  0x91   :  { %v64_v21 = vmax.f32 %v59_v20, 0.0 }
  0x93   :  { %115 = vmatmul.msk.f32.vlgmr.msra.gmra.mxu1 %vm34_vm0, %v64_v21 }
  0x94   :  { %v61_v22 = vpop.f32.mrf.mxu2 }
  0x95   :  { %v62_v23 = vadd.f32 %v133_v18, %v61_v22 }
  0x97   :  { %v65_v24 = vmax.f32 %v62_v23, 0.0 }
  0x99   :  { %116 = vmatmul.msk.f32.vlgmr.msra.gmra.mxu3 %vm34_vm0, %v65_v24 }
 0x110   :  { %v101_v26 = vpop.f32.mrf.mxu1 }
 0x111   :  { %v102_v27 = vadd.f32 %v134_v25, %v101_v26 }
 0x113   :  { %107 = vst [vmem:[%s240_s5] sm:$0xff] %v102_v27 }
 0x11c   :  { %v104_v28 = vpop.f32.mrf.mxu3 }
 0x11d   :  { %v105_v29 = vadd.f32 %v134_v25, %v104_v28 }
 0x11f   :  { %108 = vst [vmem:[%s240_s5 + $0x8] sm:$0xff] %v105_v29 }

// kernel: tagger_forward.4
= control target key start
LH: loop header
LB: loop body
LE: loop exit
PB: predicated region body
PF: predicated region fallthrough
CT: control target
= control target key end

     0   :  { %s1690_s9 = smov 32   ;;  %vm42_vm0 = vcmask 261120   ;;  %s1691_s18 = smov 64   ;;  %v1692_v61 = vmov 0   ;;  %s2341_s1 = inlined_call_operand.vmem [shape: f32[2,32,128], index: 1, kind: input, shape index: {}]   ;;  %s2342_s3 = inlined_call_operand.vmem [shape: f32[2,2,32], index: 3, kind: input, shape index: {}]   ;;  %s2343_s2 = inlined_call_operand.vmem [shape: f32[2,2,32], index: 2, kind: input, shape index: {}]   ;;  %s2344_s0 = inlined_call_operand.vmem [shape: f32[8,2,256], index: 0, kind: input, shape index: {}]   ;;  %s2345_s4 = inlined_call_operand.vmem [shape: s32[2,1], index: 4, kind: input, shape index: {}]   ;;  %s2346_s5 = inlined_call_operand.vmem [shape: f32[8,2,64], index: 5, kind: output, shape index: {}]  }
   0x1   :  { %v1727_v0 = vld [vmem:[%s2341_s1 + $0x18] sm:$0xff]  ;;  %v1732_v1 = vld [vmem:[%s2341_s1 + $0x10] sm:$0xff]  ;;  %v1744_v3 = vld [vmem:[%s2341_s1 + $0x8] sm:$0xff]  ;;  %1560 = vset.pattern.permute.xlu2 %v1692_v61  ;;  %1561 = vset.pattern.permute.xlu0 %v1692_v61  ;;  %s1693_s22 = smov 96  }
   0x2   :  { %58 = vmatpush.msra.mxu0 %v1727_v0  ;;  %v1738_v2 = vld [vmem:[%s2341_s1 + $0x38] sm:$0xff]  ;;  %246 = vmatpush.msra.mxu2 %v1727_v0  ;;  %v1750_v4 = vld [vmem:[%s2341_s1 + $0x30] sm:$0xff]  ;;  %v1757_v5 = vld [vmem:[%s2341_s1 + $0x28] sm:$0xff] }
   0x3   :  { %123 = vmatpush.msra.mxu1 %v1738_v2  ;;  %311 = vmatpush.msra.mxu3 %v1738_v2  ;;  %v1762_v6 = vld [vmem:[%s2342_s3] sm:$0x3]  ;;  %v1789_v10 = vld [vmem:[%s2343_s2 + $0x2] sm:$0x3]  ;;  %v1496_v12 = vld [vmem:[%s2344_s0 + $0x1c] sm:$0xf] }
   0x4   :  { %59 = vmatpush.msra.mxu0 %v1732_v1  ;;  %247 = vmatpush.msra.mxu2 %v1732_v1  ;;  %v1768_v7 = vld [vmem:[%s2341_s1] sm:$0xff]  ;;  %v132_v15 = vrot.slane %v1496_v12, 2 }
   0x5   :  { %124 = vmatpush.msra.mxu1 %v1750_v4  ;;  %88 = vrot.lane.b32.xlu1 %v1762_v6, %s1690_s9  ;;  %v1777_v8 = vld [vmem:[%s2343_s2] sm:$0x3]  ;;  %v1836_v24 = vld [vmem:[%s2342_s3 + $0x2] sm:$0x3] }
   0x6   :  { %60 = vmatpush.msra.mxu0 %v1744_v3  ;;  %v1782_v9 = vld [vmem:[%s2341_s1 + $0x20] sm:$0xff]  ;;  %248 = vmatpush.msra.mxu2 %v1744_v3 }
   0x7   :  { %125 = vmatpush.msra.mxu1 %v1757_v5  ;;  %312 = vmatpush.msra.mxu3 %v1750_v4  ;;  %v39_v11 = vld [vmem:[%s2344_s0] sm:$0xf] }
   0x8   :  { %61 = vmatpush.msra.mxu0 %v1768_v7  ;;  %249 = vmatpush.msra.mxu2 %v1768_v7  ;;  %v29_v62 = vld [vmem:[%s2345_s4] sm:$0x3] }
   0x9   :  { %1497 = vmatmul.msk.f32.vlgmr.msra.gmra.mxu0 %vm42_vm0, %v1777_v8  ;;  %126 = vmatpush.msra.mxu1 %v1782_v9 }
   0xa   :  { %1499 = vmatmul.msk.f32.vlgmr.msra.gmra.mxu1 %vm42_vm0, %v1789_v10  ;;  %313 = vmatpush.msra.mxu3 %v1757_v5 }
   0xb   :  { %433 = vmatpush.msrb.mxu0 %v1727_v0  ;;  %498 = vmatpush.msrb.mxu1 %v1738_v2 }
   0xc   :  { %314 = vmatpush.msra.mxu3 %v1782_v9  ;;  %620 = vmatpush.msrb.mxu2 %v1727_v0 }
   0xd   :  { %434 = vmatpush.msrb.mxu0 %v1732_v1  ;;  %499 = vmatpush.msrb.mxu1 %v1750_v4 }
   0xe   :  { %621 = vmatpush.msrb.mxu2 %v1732_v1  ;;  %685 = vmatpush.msrb.mxu3 %v1738_v2 }
   0xf   :  { %435 = vmatpush.msrb.mxu0 %v1744_v3  ;;  %500 = vmatpush.msrb.mxu1 %v1757_v5 }
  0x10   :  { %622 = vmatpush.msrb.mxu2 %v1744_v3  ;;  %686 = vmatpush.msrb.mxu3 %v1750_v4 }
  0x11   :  { %436 = vmatpush.msrb.mxu0 %v1768_v7  ;;  %501 = vmatpush.msrb.mxu1 %v1782_v9 }
  0x12   :  { %623 = vmatpush.msrb.mxu2 %v1768_v7  ;;  %687 = vmatpush.msrb.mxu3 %v1757_v5 }
  0x13   :  { %805 = vmatpush.msra.mxu0 %v1727_v0  ;;  %870 = vmatpush.msra.mxu1 %v1738_v2 }
  0x14   :  { %688 = vmatpush.msrb.mxu3 %v1782_v9  ;;  %156 = vrot.lane.b32.xlu2 %v1836_v24, %s1690_s9 }
  0x15   :  { %806 = vmatpush.msra.mxu0 %v1732_v1  ;;  %871 = vmatpush.msra.mxu1 %v1750_v4 }
  0x17   :  { %807 = vmatpush.msra.mxu0 %v1744_v3  ;;  %872 = vmatpush.msra.mxu1 %v1757_v5 }
  0x19   :  { %808 = vmatpush.msra.mxu0 %v1768_v7  ;;  %873 = vmatpush.msra.mxu1 %v1782_v9 }
  0x6e   :  { %v157_v51 = vpop.permute.xlu2 %156 }
  0x77   :  { %v89_v55 = vpop.permute.xlu1 %88 }
  0x86   :  { %v63_v13 = vpop.f32.mrf.mxu0 }
  0x87   :  { %v66_v14 = vadd.f32 %v63_v13, %v39_v11  ;;  %v128_v16 = vpop.f32.mrf.mxu1 }
  0x88   :  { %v134_v17 = vadd.f32 %v132_v15, %v128_v16 }
  0x89   :  { %1562 = vtanh.f32 %v66_v14  ;;  %v1498_v20 = vmul.f32 -1.442695, %v66_v14 }
  0x8a   :  { %1564 = vtanh.f32 %v134_v17  ;;  %v1500_v21 = vmul.f32 -1.442695, %v134_v17 }
  0x8b   :  { %1566 = vpow2.f32 %v1498_v20 }
  0x8c   :  { %1568 = vpow2.f32 %v1500_v21 }
  0x8f   :  { %v1563_v18 = vpop.eup %1562 }
  0x90   :  { %93 = vrot.lane.b32.xlu0 %v1563_v18, %s1691_s18  ;;  %v1565_v19 = vpop.eup %1564 }
  0x91   :  { %v1567_v22 = vpop.eup %1566 }
  0x92   :  { %v70_v23 = vadd.f32 1.0, %v1567_v22  ;;  %v1569_v25 = vpop.eup %1568 }
  0x93   :  { %v138_v26 = vadd.f32 1.0, %v1569_v25 }
  0x94   :  { %1570 = vrcp.f32 %v70_v23  ;;  %v82_v35 = vand.u32 2147483648, %v70_v23  ;;  %vm76_vm2 = vweird.f32 %v70_v23  ;;  %v80_v36 = vand.u32 2147483647, %v70_v23 }
  0x95   :  { %1572 = vrcp.f32 %v138_v26  ;;  %vm144_vm4 = vweird.f32 %v138_v26  ;;  %v150_v40 = vand.u32 2147483648, %v138_v26  ;;  %v148_v42 = vand.u32 2147483647, %v138_v26 }
  0x96   :  { %v83_v39 = vor.u32 1.1754944e-38, %v82_v35  ;;  %vm81_vm6 = vcmp.eq.f32.partialorder %v80_v36, 8.507059e+37 }
  0x97   :  { %v151_v46 = vor.u32 1.1754944e-38, %v150_v40  ;;  %vm149_vm8 = vcmp.eq.f32.partialorder %v148_v42, 8.507059e+37 }
  0x98   :  { %161 = vrot.lane.b32.xlu0 %v1565_v19, %s1691_s18 }
  0x9a   :  { %v1571_v27 = vpop.eup %1570 }
  0x9b   :  { %v72_v28 = vmul.f32 %v1571_v27, %v70_v23  ;;  %v1573_v29 = vpop.eup %1572  ;;  %vm77_vm1 = vweird.f32 %v1571_v27 }
  0x9c   :  { %v140_v31 = vmul.f32 %v1573_v29, %v138_v26  ;;  %vm78_vm3 = vmor %vm76_vm2, %vm77_vm1  ;;  %vm145_vm5 = vweird.f32 %v1573_v29 }
  0x9d   :  { %v73_v30 = vsub.f32 1.0, %v72_v28  ;;  %vm146_vm7 = vmor %vm144_vm4, %vm145_vm5 }
  0x9e   :  { %v141_v33 = vsub.f32 1.0, %v140_v31 }
  0x9f   :  { %v74_v32 = vmul.f32 %v1571_v27, %v73_v30 }
  0xa0   :  { %v142_v37 = vmul.f32 %v1573_v29, %v141_v33 }
  0xa1   :  { %v75_v34 = vadd.f32 %v1571_v27, %v74_v32 }
  0xa2   :  { %v143_v41 = vadd.f32 %v1573_v29, %v142_v37 }
  0xa3   :  { %v79_v38 = vsel %vm78_vm3, %v1571_v27, %v75_v34  ;;  %v1503_v27 = vld [vmem:[%s2344_s0 + $0x18] sm:$0xf] }
  0xa4   :  { %v84_v43 = vsel %vm81_vm6, %v83_v39, %v79_v38  ;;  %v147_v47 = vsel %vm146_vm7, %v1573_v29, %v143_v41  ;;  %v320_v28 = vrot.slane %v1503_v27, 2 }
  0xa5   :  { %v152_v48 = vsel %vm149_vm8, %v151_v46, %v147_v47  ;;  %v91_v57 = vmul.f32 %v89_v55, %v84_v43 }
  0xa6   :  { %v159_v52 = vmul.f32 %v157_v51, %v152_v48 }
 0x102   :  { %v94_v44 = vpop.permute.xlu0 %93 }
 0x103   :  { %v96_v45 = vmul.f32 %v94_v44, %v84_v43 }
 0x105   :  { %98 = vrot.lane.b32.xlu1 %v96_v45, %s1690_s9 }
 0x10a   :  { %v162_v49 = vpop.permute.xlu0 %161 }
 0x10b   :  { %v164_v50 = vmul.f32 %v162_v49, %v152_v48 }
 0x10d   :  { %166 = vrot.lane.b32.xlu2 %v164_v50, %s1690_s9 }
 0x115   :  { %31 = vperm.xlu2 %1560, %v29_v62  }
 0x167   :  { %v167_v53 = vpop.permute.xlu2 %166 }
 0x168   :  { %v169_v54 = vadd.f32 %v167_v53, %v159_v52 }
 0x16a   :  { %1574 = vtanh.f32 %v169_v54 }
 0x16f   :  { %v1853_v19 = vpop.permute.xlu2 %31 }
 0x170   :  { %v1575_v56 = vpop.eup %1574  ;;  %vm2347_vm9 = vcmp.gt.s32.totalorder %v1853_v19, 0  ;;  %vm177_vm10 = vcmp.gt.s32.totalorder %v1853_v19, 7  ;;  %vm364_vm4 = vcmp.gt.s32.totalorder %v1853_v19, 1  ;;  %vm365_vm5 = vcmp.gt.s32.totalorder %v1853_v19, 6 }
 0x171   :  { %172 = vrot.lane.b32.xlu1 %v1575_v56, %s1691_s18 }
 0x177   :  { %v99_v58 = vpop.permute.xlu1 %98 }
 0x178   :  { %v101_v59 = vadd.f32 %v99_v58, %v91_v57 }
 0x17a   :  { %1576 = vtanh.f32 %v101_v59 }
 0x180   :  { %v1577_v60 = vpop.eup %1576 }
 0x181   :  { %104 = vrot.lane.b32.xlu0 %v1577_v60, %s1691_s18 }
 0x1e3   :  { %v173_v13 = vpop.permute.xlu1 %172 }
 0x1e4   :  { %v175_v14 = vmul.f32 %v173_v13, %v152_v48 }
 0x1f3   :  { %v105_v63 = vpop.permute.xlu0 %104 }
 0x1f4   :  { %v107_v11 = vmul.f32 %v105_v63, %v84_v43 }
 0x1f6   :  { %179 = vst [vmem:[#allocation1] ss:$4 sm:$0xff] %v107_v11 }
 0x1fd   :  { %v180_v12 = vld.sshfl [vmem:[#allocation1] sm:$0xff pattern:$0x73625140] }
 0x1fe   :  { %186 = vst [vmem:[#allocation1] ss:$4 sm:$0xff] %v101_v59  ;;  %181 = vrot.lane.b32.xlu0 %v180_v12, %s1690_s9 }
 0x205   :  { %v187_v15 = vld.sshfl [vmem:[#allocation1] sm:$0xff pattern:$0x73625140] }
 0x206   :  { %193 = vst [vmem:[#allocation1] ss:$4 sm:$0xff] %v175_v14  ;;  %188 = vrot.lane.b32.xlu2 %v187_v15, %s1693_s22 }
 0x20d   :  { %v194_v16 = vld.sshfl [vmem:[#allocation1] sm:$0xff pattern:$0x73625140] }
 0x20e   :  { %200 = vst [vmem:[#allocation1] ss:$4 sm:$0xff] %v169_v54  ;;  %195 = vrot.lane.b32.xlu1 %v194_v16, %s1690_s9 }
 0x215   :  { %v201_v17 = vld.sshfl [vmem:[#allocation1] sm:$0xff pattern:$0x73625140] }
 0x216   :  { %206 = vst [vmem:[#allocation1] ss:$4 sm:$0xff] %v107_v11  ;;  %202 = vrot.lane.b32.xlu1 %v201_v17, %s1693_s22 }
 0x21d   :  { %v1851_v18 = vld.sshfl [vmem:[#allocation1] sm:$0xff pattern:$0x73625140] }
 0x21e   :  { %214 = vst [vmem:[#allocation1] ss:$4 sm:$0xff] %v175_v14 }
 0x260   :  { %v189_v29 = vpop.permute.xlu2 %188 }
 0x261   :  { %v1889_v32 = vsel %vm2347_vm9, %v189_v29, %v1762_v6 }
 0x270   :  { %v182_v20 = vpop.permute.xlu0 %181 }
 0x271   :  { %v1859_v21 = vsel %vm2347_vm9, %v182_v20, %v1777_v8  ;;  %v1502_v8 = vld [vmem:[%s2344_s0 + $0x4] sm:$0xf] }
 0x272   :  { %1504 = vmatmul.msk.f32.vlgmr.msra.gmra.mxu2 %vm42_vm0, %v1859_v21 }
 0x273   :  { %986 = vmatpush.msra.mxu2 %v1727_v0 }
 0x275   :  { %987 = vmatpush.msra.mxu2 %v1732_v1 }
 0x277   :  { %988 = vmatpush.msra.mxu2 %v1744_v3 }
 0x279   :  { %989 = vmatpush.msra.mxu2 %v1768_v7 }
 0x280   :  { %v196_v22 = vpop.permute.xlu1 %195 }
 0x281   :  { %v1871_v23 = vsel %vm177_vm10, %v196_v22, %v1789_v10 }
 0x282   :  { %1506 = vmatmul.msk.f32.vlgmr.msra.gmra.mxu3 %vm42_vm0, %v1871_v23 }
 0x283   :  { %1051 = vmatpush.msra.mxu3 %v1738_v2 }
 0x285   :  { %1052 = vmatpush.msra.mxu3 %v1750_v4 }
 0x287   :  { %1053 = vmatpush.msra.mxu3 %v1757_v5 }
 0x288   :  { %v203_v34 = vpop.permute.xlu1 %202 }
 0x289   :  { %1054 = vmatpush.msra.mxu3 %v1782_v9  ;;  %v1897_v35 = vsel %vm177_vm10, %v203_v34, %v1836_v24 }
 0x2f5   :  { %v251_v25 = vpop.f32.mrf.mxu2 }
 0x2f6   :  { %v254_v26 = vadd.f32 %v1502_v8, %v251_v25 }
 0x2f8   :  { %1578 = vtanh.f32 %v254_v26  ;;  %v1505_v6 = vmul.f32 -1.442695, %v254_v26 }
 0x2fe   :  { %v1579_v10 = vpop.eup %1578 }
 0x2ff   :  { %281 = vrot.lane.b32.xlu0 %v1579_v10, %s1691_s18  ;;  %v1905_v10 = vld.sshfl [vmem:[#allocation1] sm:$0xff pattern:$0x73625140] }
 0x305   :  { %v316_v30 = vpop.f32.mrf.mxu3 }
 0x306   :  { %v322_v31 = vadd.f32 %v320_v28, %v316_v30 }
 0x307   :  { %276 = vrot.lane.b32.xlu0 %v1889_v32, %s1690_s9 }
 0x308   :  { %1580 = vtanh.f32 %v322_v31  ;;  %v1507_v36 = vmul.f32 -1.442695, %v322_v31 }
 0x30a   :  { %1582 = vpow2.f32 %v1507_v36 }
 0x30b   :  { %1584 = vpow2.f32 %v1505_v6 }
 0x30e   :  { %v1581_v33 = vpop.eup %1580 }
 0x30f   :  { %349 = vrot.lane.b32.xlu2 %v1581_v33, %s1691_s18 }
 0x310   :  { %v1583_v37 = vpop.eup %1582 }
 0x311   :  { %v326_v38 = vadd.f32 1.0, %v1583_v37  ;;  %v1585_v39 = vpop.eup %1584 }
 0x312   :  { %v258_v40 = vadd.f32 1.0, %v1585_v39 }
 0x313   :  { %1586 = vrcp.f32 %v326_v38  ;;  %v338_v48 = vand.u32 2147483648, %v326_v38  ;;  %vm332_vm12 = vweird.f32 %v326_v38  ;;  %v336_v49 = vand.u32 2147483647, %v326_v38 }
 0x314   :  { %1588 = vrcp.f32 %v258_v40  ;;  %v270_v57 = vand.u32 2147483648, %v258_v40  ;;  %vm264_vm1 = vweird.f32 %v258_v40  ;;  %v268_v58 = vand.u32 2147483647, %v258_v40 }
 0x315   :  { %v339_v52 = vor.u32 1.1754944e-38, %v338_v48  ;;  %vm337_vm14 = vcmp.eq.f32.partialorder %v336_v49, 8.507059e+37 }
 0x316   :  { %v271_v60 = vor.u32 1.1754944e-38, %v270_v57  ;;  %vm269_vm3 = vcmp.eq.f32.partialorder %v268_v58, 8.507059e+37 }
 0x317   :  { %344 = vrot.lane.b32.xlu2 %v1897_v35, %s1690_s9 }
 0x319   :  { %v1587_v41 = vpop.eup %1586 }
 0x31a   :  { %v328_v42 = vmul.f32 %v1587_v41, %v326_v38  ;;  %v1589_v44 = vpop.eup %1588  ;;  %vm333_vm11 = vweird.f32 %v1587_v41 }
 0x31b   :  { %v260_v24 = vmul.f32 %v1589_v44, %v258_v40  ;;  %vm334_vm13 = vmor %vm332_vm12, %vm333_vm11  ;;  %vm265_vm15 = vweird.f32 %v1589_v44 }
 0x31c   :  { %v329_v43 = vsub.f32 1.0, %v328_v42  ;;  %vm266_vm2 = vmor %vm264_vm1, %vm265_vm15  ;;  %vm551_vm1 = vcmp.gt.s32.totalorder %v1853_v19, 2 }
 0x31d   :  { %v261_v47 = vsub.f32 1.0, %v260_v24 }
 0x31e   :  { %v330_v45 = vmul.f32 %v1587_v41, %v329_v43 }
 0x31f   :  { %v262_v51 = vmul.f32 %v1589_v44, %v261_v47 }
 0x320   :  { %v331_v46 = vadd.f32 %v1587_v41, %v330_v45 }
 0x321   :  { %v263_v56 = vadd.f32 %v1589_v44, %v262_v51 }
 0x322   :  { %v335_v50 = vsel %vm334_vm13, %v1587_v41, %v331_v46  ;;  %v1511_v41 = vld [vmem:[%s2344_s0 + $0x14] sm:$0xf] }
 0x323   :  { %v340_v54 = vsel %vm337_vm14, %v339_v52, %v335_v50  ;;  %v267_v59 = vsel %vm266_vm2, %v1589_v44, %v263_v56  ;;  %v507_v42 = vrot.slane %v1511_v41, 2  ;;  %vm552_vm2 = vcmp.gt.s32.totalorder %v1853_v19, 5 }
 0x324   :  { %v272_v62 = vsel %vm269_vm3, %v271_v60, %v267_v59 }
 0x369   :  { %v350_v53 = vpop.permute.xlu2 %349 }
 0x36a   :  { %v352_v55 = vmul.f32 %v350_v53, %v340_v54 }
 0x36c   :  { %354 = vrot.lane.b32.xlu0 %v352_v55, %s1690_s9 }
 0x371   :  { %v282_v61 = vpop.permute.xlu0 %281  ;;  %v345_v12 = vpop.permute.xlu2 %344 }
 0x372   :  { %v284_v63 = vmul.f32 %v282_v61, %v272_v62  ;;  %v347_v13 = vmul.f32 %v345_v12, %v340_v54 }
 0x374   :  { %286 = vrot.lane.b32.xlu1 %v284_v63, %s1690_s9 }
 0x379   :  { %v277_v11 = vpop.permute.xlu0 %276 }
 0x37a   :  { %v279_v16 = vmul.f32 %v277_v11, %v272_v62 }
 0x3de   :  { %v355_v14 = vpop.permute.xlu0 %354 }
 0x3df   :  { %v357_v15 = vadd.f32 %v355_v14, %v347_v13 }
 0x3e1   :  { %1590 = vtanh.f32 %v357_v15 }
 0x3e6   :  { %v287_v17 = vpop.permute.xlu1 %286 }
 0x3e7   :  { %v1591_v20 = vpop.eup %1590  ;;  %v289_v22 = vadd.f32 %v287_v17, %v279_v16 }
 0x3e8   :  { %360 = vrot.lane.b32.xlu2 %v1591_v20, %s1691_s18 }
 0x3e9   :  { %1592 = vtanh.f32 %v289_v22 }
 0x3ef   :  { %v1593_v8 = vpop.eup %1592 }
 0x3f0   :  { %292 = vrot.lane.b32.xlu1 %v1593_v8, %s1691_s18 }
 0x442   :  { %v361_v28 = vpop.permute.xlu2 %360 }
 0x443   :  { %v363_v29 = vmul.f32 %v361_v28, %v340_v54 }
 0x462   :  { %v293_v25 = vpop.permute.xlu1 %292 }
 0x463   :  { %v295_v26 = vmul.f32 %v293_v25, %v272_v62 }
 0x465   :  { %367 = vst [vmem:[#allocation1] ss:$4 sm:$0xff] %v295_v26 }
 0x46c   :  { %v368_v27 = vld.sshfl [vmem:[#allocation1] sm:$0xff pattern:$0x73625140] }
 0x46d   :  { %374 = vst [vmem:[#allocation1] ss:$4 sm:$0xff] %v289_v22  ;;  %369 = vrot.lane.b32.xlu0 %v368_v27, %s1690_s9 }
 0x474   :  { %v375_v30 = vld.sshfl [vmem:[#allocation1] sm:$0xff pattern:$0x73625140] }
 0x475   :  { %381 = vst [vmem:[#allocation1] ss:$4 sm:$0xff] %v363_v29  ;;  %376 = vrot.lane.b32.xlu2 %v375_v30, %s1693_s22 }
 0x47c   :  { %v382_v31 = vld.sshfl [vmem:[#allocation1] sm:$0xff pattern:$0x73625140] }
 0x47d   :  { %388 = vst [vmem:[#allocation1] ss:$4 sm:$0xff] %v357_v15  ;;  %383 = vrot.lane.b32.xlu1 %v382_v31, %s1690_s9 }
 0x484   :  { %v389_v33 = vld.sshfl [vmem:[#allocation1] sm:$0xff pattern:$0x73625140] }
 0x485   :  { %394 = vst [vmem:[#allocation1] ss:$4 sm:$0xff] %v295_v26  ;;  %390 = vrot.lane.b32.xlu1 %v389_v33, %s1693_s22 }
 0x48c   :  { %v1911_v34 = vld.sshfl [vmem:[#allocation1] sm:$0xff pattern:$0x73625140] }
 0x48d   :  { %402 = vst [vmem:[#allocation1] ss:$4 sm:$0xff] %v363_v29 }
 0x4cf   :  { %v377_v43 = vpop.permute.xlu2 %376 }
 0x4d0   :  { %v1947_v24 = vsel %vm364_vm4, %v377_v43, %v1889_v32 }
 0x4df   :  { %v370_v36 = vpop.permute.xlu0 %369 }
 0x4e0   :  { %v1917_v6 = vsel %vm364_vm4, %v370_v36, %v1859_v21  ;;  %v1510_v21 = vld [vmem:[%s2344_s0 + $0x8] sm:$0xf] }
 0x4e1   :  { %1512 = vmatmul.msk.f32.vlgmr.msrb.gmra.mxu0 %vm42_vm0, %v1917_v6 }
 0x4e2   :  { %1167 = vmatpush.msrb.mxu0 %v1727_v0 }
 0x4e4   :  { %1168 = vmatpush.msrb.mxu0 %v1732_v1 }
 0x4e6   :  { %1169 = vmatpush.msrb.mxu0 %v1744_v3 }
 0x4e8   :  { %1170 = vmatpush.msrb.mxu0 %v1768_v7 }
 0x4ef   :  { %v384_v37 = vpop.permute.xlu1 %383 }
 0x4f0   :  { %v1929_v38 = vsel %vm365_vm5, %v384_v37, %v1871_v23 }
 0x4f1   :  { %1514 = vmatmul.msk.f32.vlgmr.msrb.gmra.mxu1 %vm42_vm0, %v1929_v38 }
 0x4f2   :  { %1232 = vmatpush.msrb.mxu1 %v1738_v2 }
 0x4f4   :  { %1233 = vmatpush.msrb.mxu1 %v1750_v4 }
 0x4f6   :  { %1234 = vmatpush.msrb.mxu1 %v1757_v5 }
 0x4f7   :  { %v391_v47 = vpop.permute.xlu1 %390 }
 0x4f8   :  { %1235 = vmatpush.msrb.mxu1 %v1782_v9  ;;  %v1955_v48 = vsel %vm365_vm5, %v391_v47, %v1897_v35 }
 0x55e   :  { %v438_v39 = vpop.f32.mrf.mxu0 }
 0x55f   :  { %v441_v40 = vadd.f32 %v1510_v21, %v438_v39 }
 0x561   :  { %1594 = vtanh.f32 %v441_v40  ;;  %v1513_v32 = vmul.f32 -1.442695, %v441_v40 }
 0x567   :  { %v1595_v23 = vpop.eup %1594 }
 0x568   :  { %468 = vrot.lane.b32.xlu0 %v1595_v23, %s1691_s18 }
 0x56e   :  { %v503_v44 = vpop.f32.mrf.mxu1 }
 0x56f   :  { %v509_v45 = vadd.f32 %v507_v42, %v503_v44  ;;  %v1963_v42 = vld.sshfl [vmem:[#allocation1] sm:$0xff pattern:$0x73625140] }
 0x570   :  { %463 = vrot.lane.b32.xlu0 %v1947_v24, %s1690_s9 }
 0x571   :  { %1596 = vtanh.f32 %v509_v45  ;;  %v1515_v49 = vmul.f32 -1.442695, %v509_v45 }
 0x573   :  { %1598 = vpow2.f32 %v1515_v49 }
 0x574   :  { %1600 = vpow2.f32 %v1513_v32 }
 0x577   :  { %v1597_v46 = vpop.eup %1596 }
 0x578   :  { %536 = vrot.lane.b32.xlu2 %v1597_v46, %s1691_s18 }
 0x579   :  { %v1599_v50 = vpop.eup %1598 }
 0x57a   :  { %v513_v51 = vadd.f32 1.0, %v1599_v50  ;;  %v1601_v52 = vpop.eup %1600 }
 0x57b   :  { %v445_v53 = vadd.f32 1.0, %v1601_v52 }
 0x57c   :  { %1602 = vrcp.f32 %v513_v51  ;;  %v525_v61 = vand.u32 2147483648, %v513_v51  ;;  %vm519_vm7 = vweird.f32 %v513_v51  ;;  %v523_v62 = vand.u32 2147483647, %v513_v51 }
 0x57d   :  { %1604 = vrcp.f32 %v445_v53  ;;  %v457_v17 = vand.u32 2147483648, %v445_v53  ;;  %vm451_vm13 = vweird.f32 %v445_v53  ;;  %v455_v20 = vand.u32 2147483647, %v445_v53 }
 0x57e   :  { %v526_v12 = vor.u32 1.1754944e-38, %v525_v61  ;;  %vm524_vm11 = vcmp.eq.f32.partialorder %v523_v62, 8.507059e+37 }
 0x57f   :  { %v458_v8 = vor.u32 1.1754944e-38, %v457_v17  ;;  %vm456_vm15 = vcmp.eq.f32.partialorder %v455_v20, 8.507059e+37 }
 0x580   :  { %531 = vrot.lane.b32.xlu2 %v1955_v48, %s1690_s9 }
 0x582   :  { %v1603_v54 = vpop.eup %1602 }
 0x583   :  { %v515_v55 = vmul.f32 %v1603_v54, %v513_v51  ;;  %v1605_v57 = vpop.eup %1604  ;;  %vm520_vm6 = vweird.f32 %v1603_v54 }
 0x584   :  { %v447_v35 = vmul.f32 %v1605_v57, %v445_v53  ;;  %vm521_vm8 = vmor %vm519_vm7, %vm520_vm6  ;;  %vm452_vm12 = vweird.f32 %v1605_v57 }
 0x585   :  { %v516_v56 = vsub.f32 1.0, %v515_v55  ;;  %vm453_vm14 = vmor %vm451_vm13, %vm452_vm12 }
 0x586   :  { %v448_v60 = vsub.f32 1.0, %v447_v35 }
 0x587   :  { %v517_v58 = vmul.f32 %v1603_v54, %v516_v56 }
 0x588   :  { %v449_v11 = vmul.f32 %v1605_v57, %v448_v60 }
 0x589   :  { %v518_v59 = vadd.f32 %v1603_v54, %v517_v58 }
 0x58a   :  { %v450_v16 = vadd.f32 %v1605_v57, %v449_v11 }
 0x58b   :  { %v522_v63 = vsel %vm521_vm8, %v1603_v54, %v518_v59 }
 0x58c   :  { %v527_v14 = vsel %vm524_vm11, %v526_v12, %v522_v63  ;;  %v454_v22 = vsel %vm453_vm14, %v1605_v57, %v450_v16 }
 0x58d   :  { %v459_v26 = vsel %vm456_vm15, %v458_v8, %v454_v22  ;;  %vm738_vm15 = vcmp.gt.s32.totalorder %v1853_v19, 3 }
 0x5d2   :  { %v537_v13 = vpop.permute.xlu2 %536 }
 0x5d3   :  { %v539_v15 = vmul.f32 %v537_v13, %v527_v14 }
 0x5d5   :  { %541 = vrot.lane.b32.xlu0 %v539_v15, %s1690_s9 }
 0x5da   :  { %v469_v25 = vpop.permute.xlu0 %468  ;;  %v532_v29 = vpop.permute.xlu2 %531 }
 0x5db   :  { %v471_v27 = vmul.f32 %v469_v25, %v459_v26  ;;  %v534_v30 = vmul.f32 %v532_v29, %v527_v14 }
 0x5dd   :  { %473 = vrot.lane.b32.xlu1 %v471_v27, %s1690_s9 }
 0x5e2   :  { %v464_v28 = vpop.permute.xlu0 %463 }
 0x5e3   :  { %v466_v36 = vmul.f32 %v464_v28, %v459_v26 }
 0x647   :  { %v542_v31 = vpop.permute.xlu0 %541 }
 0x648   :  { %v544_v33 = vadd.f32 %v542_v31, %v534_v30 }
 0x64a   :  { %1606 = vtanh.f32 %v544_v33 }
 0x64f   :  { %v474_v37 = vpop.permute.xlu1 %473 }
 0x650   :  { %v1607_v21 = vpop.eup %1606  ;;  %v476_v39 = vadd.f32 %v474_v37, %v466_v36 }
 0x651   :  { %547 = vrot.lane.b32.xlu2 %v1607_v21, %s1691_s18 }
 0x652   :  { %1608 = vtanh.f32 %v476_v39 }
 0x658   :  { %v1609_v40 = vpop.eup %1608 }
 0x659   :  { %479 = vrot.lane.b32.xlu1 %v1609_v40, %s1691_s18 }
 0x6ab   :  { %v548_v44 = vpop.permute.xlu2 %547 }
 0x6ac   :  { %v550_v45 = vmul.f32 %v548_v44, %v527_v14 }
 0x6cb   :  { %v480_v23 = vpop.permute.xlu1 %479 }
 0x6cc   :  { %v482_v41 = vmul.f32 %v480_v23, %v459_v26 }
 0x6ce   :  { %554 = vst [vmem:[#allocation1] ss:$4 sm:$0xff] %v482_v41 }
 0x6d5   :  { %v555_v43 = vld.sshfl [vmem:[#allocation1] sm:$0xff pattern:$0x73625140] }
 0x6d6   :  { %561 = vst [vmem:[#allocation1] ss:$4 sm:$0xff] %v476_v39  ;;  %556 = vrot.lane.b32.xlu0 %v555_v43, %s1690_s9 }
 0x6dd   :  { %v562_v46 = vld.sshfl [vmem:[#allocation1] sm:$0xff pattern:$0x73625140] }
 0x6de   :  { %568 = vst [vmem:[#allocation1] ss:$4 sm:$0xff] %v550_v45  ;;  %563 = vrot.lane.b32.xlu2 %v562_v46, %s1693_s22 }
 0x6e5   :  { %v569_v47 = vld.sshfl [vmem:[#allocation1] sm:$0xff pattern:$0x73625140] }
 0x6e6   :  { %575 = vst [vmem:[#allocation1] ss:$4 sm:$0xff] %v544_v33  ;;  %570 = vrot.lane.b32.xlu1 %v569_v47, %s1690_s9 }
 0x6ed   :  { %v576_v49 = vld.sshfl [vmem:[#allocation1] sm:$0xff pattern:$0x73625140] }
 0x6ee   :  { %581 = vst [vmem:[#allocation1] ss:$4 sm:$0xff] %v482_v41  ;;  %577 = vrot.lane.b32.xlu1 %v576_v49, %s1693_s22 }
 0x6f5   :  { %v1969_v32 = vld.sshfl [vmem:[#allocation1] sm:$0xff pattern:$0x73625140] }
 0x6f6   :  { %589 = vst [vmem:[#allocation1] ss:$4 sm:$0xff] %v550_v45 }
 0x748   :  { %v557_v50 = vpop.permute.xlu0 %556 }
 0x749   :  { %v1975_v51 = vsel %vm551_vm1, %v557_v50, %v1917_v6 }
 0x74a   :  { %1520 = vmatmul.msk.f32.vlgmr.msrb.gmra.mxu2 %vm42_vm0, %v1975_v51 }
 0x74b   :  { %1348 = vmatpush.msrb.mxu2 %v1727_v0  ;;  %v1518_v0 = vld [vmem:[%s2344_s0 + $0xc] sm:$0xf] }
 0x74d   :  { %1349 = vmatpush.msrb.mxu2 %v1732_v1 }
 0x74f   :  { %1350 = vmatpush.msrb.mxu2 %v1744_v3 }
 0x751   :  { %1351 = vmatpush.msrb.mxu2 %v1768_v7 }
 0x758   :  { %v571_v52 = vpop.permute.xlu1 %570 }
 0x759   :  { %v1987_v53 = vsel %vm552_vm2, %v571_v52, %v1929_v38  ;;  %v2021_v52 = vld.sshfl [vmem:[#allocation1] sm:$0xff pattern:$0x73625140] }
 0x75a   :  { %1522 = vmatmul.msk.f32.vlgmr.msrb.gmra.mxu3 %vm42_vm0, %v1987_v53 }
 0x75b   :  { %1413 = vmatpush.msrb.mxu3 %v1738_v2  ;;  %v1519_v2 = vld [vmem:[%s2344_s0 + $0x10] sm:$0xf] }
 0x75c   :  { %v694_v6 = vrot.slane %v1519_v2, 2 }
 0x75d   :  { %1414 = vmatpush.msrb.mxu3 %v1750_v4  ;;  %v564_v4 = vpop.permute.xlu2 %563 }
 0x75f   :  { %1415 = vmatpush.msrb.mxu3 %v1757_v5 }
 0x760   :  { %v578_v55 = vpop.permute.xlu1 %577 }
 0x761   :  { %1416 = vmatpush.msrb.mxu3 %v1782_v9  ;;  %v2005_v9 = vsel %vm551_vm1, %v564_v4, %v1947_v24  ;;  %v2013_v56 = vsel %vm552_vm2, %v578_v55, %v1955_v48 }
 0x7cd   :  { %v625_v1 = vpop.f32.mrf.mxu2 }
 0x7ce   :  { %v628_v3 = vadd.f32 %v1518_v0, %v625_v1 }
 0x7d0   :  { %1610 = vtanh.f32 %v628_v3  ;;  %v1521_v24 = vmul.f32 -1.442695, %v628_v3 }
 0x7d6   :  { %v1611_v7 = vpop.eup %1610 }
 0x7d7   :  { %655 = vrot.lane.b32.xlu0 %v1611_v7, %s1691_s18 }
 0x7dd   :  { %v690_v38 = vpop.f32.mrf.mxu3 }
 0x7de   :  { %v696_v5 = vadd.f32 %v694_v6, %v690_v38 }
 0x7df   :  { %650 = vrot.lane.b32.xlu0 %v2005_v9, %s1690_s9 }
 0x7e0   :  { %1612 = vtanh.f32 %v696_v5  ;;  %v1523_v57 = vmul.f32 -1.442695, %v696_v5 }
 0x7e2   :  { %1614 = vpow2.f32 %v1523_v57  ;;  %v1526_v57 = vld [vmem:[%s2344_s0 + $0x10] sm:$0xf] }
 0x7e3   :  { %1616 = vpow2.f32 %v1521_v24 }
 0x7e6   :  { %v1613_v54 = vpop.eup %1612 }
 0x7e7   :  { %723 = vrot.lane.b32.xlu2 %v1613_v54, %s1691_s18 }
 0x7e8   :  { %v1615_v58 = vpop.eup %1614 }
 0x7e9   :  { %v700_v35 = vadd.f32 1.0, %v1615_v58  ;;  %v1617_v59 = vpop.eup %1616 }
 0x7ea   :  { %v632_v60 = vadd.f32 1.0, %v1617_v59 }
 0x7eb   :  { %1618 = vrcp.f32 %v700_v35  ;;  %v712_v15 = vand.u32 2147483648, %v700_v35  ;;  %vm706_vm6 = vweird.f32 %v700_v35  ;;  %v710_v16 = vand.u32 2147483647, %v700_v35 }
 0x7ec   :  { %1620 = vrcp.f32 %v632_v60  ;;  %v644_v28 = vand.u32 2147483648, %v632_v60  ;;  %vm638_vm12 = vweird.f32 %v632_v60  ;;  %v642_v29 = vand.u32 2147483647, %v632_v60 }
 0x7ed   :  { %v713_v22 = vor.u32 1.1754944e-38, %v712_v15  ;;  %vm711_vm8 = vcmp.eq.f32.partialorder %v710_v16, 8.507059e+37 }
 0x7ee   :  { %v645_v31 = vor.u32 1.1754944e-38, %v644_v28  ;;  %vm643_vm14 = vcmp.eq.f32.partialorder %v642_v29, 8.507059e+37 }
 0x7ef   :  { %718 = vrot.lane.b32.xlu2 %v2013_v56, %s1690_s9 }
 0x7f1   :  { %v1619_v61 = vpop.eup %1618 }
 0x7f2   :  { %v702_v62 = vmul.f32 %v1619_v61, %v700_v35  ;;  %v1621_v11 = vpop.eup %1620  ;;  %vm707_vm3 = vweird.f32 %v1619_v61  ;;  %v1527_v35 = vld [vmem:[%s2344_s0 + $0xc] sm:$0xf] }
 0x7f3   :  { %v634_v48 = vmul.f32 %v1621_v11, %v632_v60  ;;  %vm708_vm7 = vmor %vm706_vm6, %vm707_vm3  ;;  %vm639_vm11 = vweird.f32 %v1621_v11  ;;  %vm739_vm3 = vcmp.gt.s32.totalorder %v1853_v19, 4  ;;  %v879_v59 = vrot.slane %v1527_v35, 2 }
 0x7f4   :  { %v703_v63 = vsub.f32 1.0, %v702_v62  ;;  %vm640_vm13 = vmor %vm638_vm12, %vm639_vm11 }
 0x7f5   :  { %v635_v14 = vsub.f32 1.0, %v634_v48 }
 0x7f6   :  { %v704_v12 = vmul.f32 %v1619_v61, %v703_v63 }
 0x7f7   :  { %v636_v20 = vmul.f32 %v1621_v11, %v635_v14 }
 0x7f8   :  { %v705_v13 = vadd.f32 %v1619_v61, %v704_v12 }
 0x7f9   :  { %v637_v27 = vadd.f32 %v1621_v11, %v636_v20 }
 0x7fa   :  { %v709_v17 = vsel %vm708_vm7, %v1619_v61, %v705_v13 }
 0x7fb   :  { %v714_v25 = vsel %vm711_vm8, %v713_v22, %v709_v17  ;;  %v641_v30 = vsel %vm640_vm13, %v1621_v11, %v637_v27 }
 0x7fc   :  { %v646_v36 = vsel %vm643_vm14, %v645_v31, %v641_v30 }
 0x841   :  { %v724_v8 = vpop.permute.xlu2 %723 }
 0x842   :  { %v726_v26 = vmul.f32 %v724_v8, %v714_v25 }
 0x844   :  { %728 = vrot.lane.b32.xlu0 %v726_v26, %s1690_s9 }
 0x849   :  { %v656_v33 = vpop.permute.xlu0 %655  ;;  %v719_v39 = vpop.permute.xlu2 %718 }
 0x84a   :  { %v658_v37 = vmul.f32 %v656_v33, %v646_v36  ;;  %v721_v40 = vmul.f32 %v719_v39, %v714_v25 }
 0x84c   :  { %660 = vrot.lane.b32.xlu1 %v658_v37, %s1690_s9 }
 0x851   :  { %v651_v21 = vpop.permute.xlu0 %650 }
 0x852   :  { %v653_v43 = vmul.f32 %v651_v21, %v646_v36 }
 0x8b6   :  { %v729_v23 = vpop.permute.xlu0 %728 }
 0x8b7   :  { %v731_v41 = vadd.f32 %v729_v23, %v721_v40 }
 0x8b9   :  { %1622 = vtanh.f32 %v731_v41 }
 0x8be   :  { %v661_v44 = vpop.permute.xlu1 %660 }
 0x8bf   :  { %v1623_v45 = vpop.eup %1622  ;;  %v663_v46 = vadd.f32 %v661_v44, %v653_v43 }
 0x8c0   :  { %734 = vrot.lane.b32.xlu2 %v1623_v45, %s1691_s18 }
 0x8c1   :  { %1624 = vtanh.f32 %v663_v46 }
 0x8c7   :  { %v1625_v47 = vpop.eup %1624 }
 0x8c8   :  { %666 = vrot.lane.b32.xlu1 %v1625_v47, %s1691_s18 }
 0x91a   :  { %v735_v1 = vpop.permute.xlu2 %734 }
 0x91b   :  { %v737_v3 = vmul.f32 %v735_v1, %v714_v25 }
 0x93a   :  { %v667_v49 = vpop.permute.xlu1 %666 }
 0x93b   :  { %v669_v50 = vmul.f32 %v667_v49, %v646_v36 }
 0x93d   :  { %741 = vst [vmem:[#allocation1] ss:$4 sm:$0xff] %v669_v50 }
 0x944   :  { %v742_v0 = vld.sshfl [vmem:[#allocation1] sm:$0xff pattern:$0x73625140] }
 0x945   :  { %743 = vrot.lane.b32.xlu0 %v742_v0, %s1690_s9  ;;  %748 = vst [vmem:[#allocation1] ss:$4 sm:$0xff] %v663_v46 }
 0x94c   :  { %v749_v7 = vld.sshfl [vmem:[#allocation1] sm:$0xff pattern:$0x73625140] }
 0x94d   :  { %750 = vrot.lane.b32.xlu2 %v749_v7, %s1693_s22  ;;  %755 = vst [vmem:[#allocation1] ss:$4 sm:$0xff] %v737_v3 }
 0x954   :  { %v756_v2 = vld.sshfl [vmem:[#allocation1] sm:$0xff pattern:$0x73625140] }
 0x955   :  { %757 = vrot.lane.b32.xlu1 %v756_v2, %s1690_s9  ;;  %762 = vst [vmem:[#allocation1] ss:$4 sm:$0xff] %v731_v41 }
 0x95c   :  { %v763_v6 = vld.sshfl [vmem:[#allocation1] sm:$0xff pattern:$0x73625140] }
 0x95d   :  { %764 = vrot.lane.b32.xlu1 %v763_v6, %s1693_s22  ;;  %768 = vst [vmem:[#allocation1] ss:$4 sm:$0xff] %v669_v50 }
 0x964   :  { %v2027_v4 = vld.sshfl [vmem:[#allocation1] sm:$0xff pattern:$0x73625140] }
 0x965   :  { %776 = vst [vmem:[#allocation1] ss:$4 sm:$0xff] %v737_v3 }
 0x9b7   :  { %v744_v38 = vpop.permute.xlu0 %743 }
 0x9b8   :  { %v2033_v5 = vsel %vm738_vm15, %v744_v38, %v1975_v51 }
 0x9b9   :  { %1528 = vmatmul.msk.f32.vlgmr.msra.gmra.mxu0 %vm42_vm0, %v2033_v5 }
 0x9c7   :  { %v758_v54 = vpop.permute.xlu1 %757 }
 0x9c8   :  { %v2041_v55 = vsel %vm739_vm3, %v758_v54, %v1987_v53  ;;  %v751_v53 = vpop.permute.xlu2 %750 }
 0x9c9   :  { %1530 = vmatmul.msk.f32.vlgmr.msra.gmra.mxu1 %vm42_vm0, %v2041_v55  ;;  %v2055_v62 = vsel %vm738_vm15, %v751_v53, %v2005_v9 }
 0x9cf   :  { %v765_v11 = vpop.permute.xlu1 %764 }
 0x9d0   :  { %v2063_v12 = vsel %vm739_vm3, %v765_v11, %v2013_v56 }
 0xa36   :  { %v810_v51 = vpop.f32.mrf.mxu0 }
 0xa37   :  { %v813_v24 = vadd.f32 %v1526_v57, %v810_v51  ;;  %v2071_v51 = vld.sshfl [vmem:[#allocation1] sm:$0xff pattern:$0x73625140] }
 0xa39   :  { %1626 = vtanh.f32 %v813_v24  ;;  %v1529_v9 = vmul.f32 -1.442695, %v813_v24 }
 0xa3f   :  { %v1627_v58 = vpop.eup %1626 }
 0xa40   :  { %840 = vrot.lane.b32.xlu0 %v1627_v58, %s1691_s18 }
 0xa46   :  { %v875_v60 = vpop.f32.mrf.mxu1 }
 0xa47   :  { %v881_v61 = vadd.f32 %v879_v59, %v875_v60 }
 0xa48   :  { %835 = vrot.lane.b32.xlu0 %v2055_v62, %s1690_s9 }
 0xa49   :  { %1628 = vtanh.f32 %v881_v61  ;;  %v1531_v48 = vmul.f32 -1.442695, %v881_v61 }
 0xa4b   :  { %1630 = vpow2.f32 %v1531_v48 }
 0xa4c   :  { %1632 = vpow2.f32 %v1529_v9 }
 0xa4f   :  { %v1629_v63 = vpop.eup %1628 }
 0xa50   :  { %908 = vrot.lane.b32.xlu2 %v1629_v63, %s1691_s18 }
 0xa51   :  { %v1631_v13 = vpop.eup %1630 }
 0xa52   :  { %v885_v14 = vadd.f32 1.0, %v1631_v13  ;;  %v1633_v15 = vpop.eup %1632  ;;  %v1534_v13 = vld [vmem:[%s2344_s0 + $0x14] sm:$0xf] }
 0xa53   :  { %v817_v16 = vadd.f32 1.0, %v1633_v15 }
 0xa54   :  { %1634 = vrcp.f32 %v885_v14  ;;  %v897_v28 = vand.u32 2147483648, %v885_v14  ;;  %vm891_vm7 = vweird.f32 %v885_v14  ;;  %v895_v29 = vand.u32 2147483647, %v885_v14 }
 0xa55   :  { %1636 = vrcp.f32 %v817_v16  ;;  %v829_v40 = vand.u32 2147483648, %v817_v16  ;;  %vm823_vm13 = vweird.f32 %v817_v16  ;;  %v827_v23 = vand.u32 2147483647, %v817_v16 }
 0xa56   :  { %v898_v33 = vor.u32 1.1754944e-38, %v897_v28  ;;  %vm896_vm11 = vcmp.eq.f32.partialorder %v895_v29, 8.507059e+37 }
 0xa57   :  { %v830_v43 = vor.u32 1.1754944e-38, %v829_v40  ;;  %vm828_vm9 = vcmp.eq.f32.partialorder %v827_v23, 8.507059e+37 }
 0xa58   :  { %903 = vrot.lane.b32.xlu2 %v2063_v12, %s1690_s9 }
 0xa5a   :  { %v1635_v17 = vpop.eup %1634 }
 0xa5b   :  { %v887_v20 = vmul.f32 %v1635_v17, %v885_v14  ;;  %v1637_v8 = vpop.eup %1636  ;;  %vm892_vm6 = vweird.f32 %v1635_v17 }
 0xa5c   :  { %v819_v56 = vmul.f32 %v1637_v8, %v817_v16  ;;  %vm893_vm8 = vmor %vm891_vm7, %vm892_vm6  ;;  %vm824_vm12 = vweird.f32 %v1637_v8  ;;  %v1535_v16 = vld [vmem:[%s2344_s0 + $0x8] sm:$0xf] }
 0xa5d   :  { %v888_v22 = vsub.f32 1.0, %v887_v20  ;;  %vm825_vm14 = vmor %vm823_vm13, %vm824_vm12 }
 0xa5e   :  { %v820_v27 = vsub.f32 1.0, %v819_v56 }
 0xa5f   :  { %v889_v25 = vmul.f32 %v1635_v17, %v888_v22 }
 0xa60   :  { %v821_v31 = vmul.f32 %v1637_v8, %v820_v27 }
 0xa61   :  { %v890_v26 = vadd.f32 %v1635_v17, %v889_v25 }
 0xa62   :  { %v822_v39 = vadd.f32 %v1637_v8, %v821_v31 }
 0xa63   :  { %v894_v30 = vsel %vm893_vm8, %v1635_v17, %v890_v26  ;;  %v1060_v17 = vrot.slane %v1535_v16, 2 }
 0xa64   :  { %v899_v37 = vsel %vm896_vm11, %v898_v33, %v894_v30  ;;  %v826_v41 = vsel %vm825_vm14, %v1637_v8, %v822_v39 }
 0xa65   :  { %v831_v45 = vsel %vm828_vm9, %v830_v43, %v826_v41 }
 0xaaa   :  { %v909_v36 = vpop.permute.xlu2 %908 }
 0xaab   :  { %v911_v21 = vmul.f32 %v909_v36, %v899_v37 }
 0xaad   :  { %913 = vrot.lane.b32.xlu0 %v911_v21, %s1690_s9 }
 0xab2   :  { %v841_v44 = vpop.permute.xlu0 %840  ;;  %v904_v49 = vpop.permute.xlu2 %903 }
 0xab3   :  { %v843_v46 = vmul.f32 %v841_v44, %v831_v45  ;;  %v906_v50 = vmul.f32 %v904_v49, %v899_v37 }
 0xab5   :  { %845 = vrot.lane.b32.xlu1 %v843_v46, %s1690_s9 }
 0xaba   :  { %v836_v47 = vpop.permute.xlu0 %835 }
 0xabb   :  { %v838_v3 = vmul.f32 %v836_v47, %v831_v45 }
 0xb1f   :  { %v914_v0 = vpop.permute.xlu0 %913 }
 0xb20   :  { %v916_v1 = vadd.f32 %v914_v0, %v906_v50 }
 0xb22   :  { %1638 = vtanh.f32 %v916_v1 }
 0xb27   :  { %v846_v7 = vpop.permute.xlu1 %845 }
 0xb28   :  { %v1639_v2 = vpop.eup %1638  ;;  %v848_v6 = vadd.f32 %v846_v7, %v838_v3 }
 0xb29   :  { %919 = vrot.lane.b32.xlu2 %v1639_v2, %s1691_s18 }
 0xb2a   :  { %1640 = vtanh.f32 %v848_v6 }
 0xb30   :  { %v1641_v38 = vpop.eup %1640 }
 0xb31   :  { %851 = vrot.lane.b32.xlu1 %v1641_v38, %s1691_s18 }
 0xb83   :  { %v920_v58 = vpop.permute.xlu2 %919 }
 0xb84   :  { %v922_v35 = vmul.f32 %v920_v58, %v899_v37 }
 0xba3   :  { %v852_v54 = vpop.permute.xlu1 %851 }
 0xba4   :  { %v854_v57 = vmul.f32 %v852_v54, %v831_v45 }
 0xba6   :  { %924 = vst [vmem:[#allocation1] ss:$4 sm:$0xff] %v854_v57 }
 0xbad   :  { %v925_v24 = vld.sshfl [vmem:[#allocation1] sm:$0xff pattern:$0x73625140] }
 0xbae   :  { %926 = vrot.lane.b32.xlu0 %v925_v24, %s1690_s9  ;;  %931 = vst [vmem:[#allocation1] ss:$4 sm:$0xff] %v848_v6 }
 0xbb5   :  { %v932_v59 = vld.sshfl [vmem:[#allocation1] sm:$0xff pattern:$0x73625140] }
 0xbb6   :  { %933 = vrot.lane.b32.xlu2 %v932_v59, %s1693_s22  ;;  %938 = vst [vmem:[#allocation1] ss:$4 sm:$0xff] %v922_v35 }
 0xbbd   :  { %v939_v53 = vld.sshfl [vmem:[#allocation1] sm:$0xff pattern:$0x73625140] }
 0xbbe   :  { %940 = vrot.lane.b32.xlu1 %v939_v53, %s1690_s9  ;;  %945 = vst [vmem:[#allocation1] ss:$4 sm:$0xff] %v916_v1 }
 0xbc5   :  { %v946_v60 = vld.sshfl [vmem:[#allocation1] sm:$0xff pattern:$0x73625140] }
 0xbc6   :  { %947 = vrot.lane.b32.xlu1 %v946_v60, %s1693_s22  ;;  %951 = vst [vmem:[#allocation1] ss:$4 sm:$0xff] %v854_v57 }
 0xbcd   :  { %v2077_v61 = vld.sshfl [vmem:[#allocation1] sm:$0xff pattern:$0x73625140] }
 0xbce   :  { %958 = vst [vmem:[#allocation1] ss:$4 sm:$0xff] %v922_v35 }
 0xc20   :  { %v927_v63 = vpop.permute.xlu0 %926 }
 0xc21   :  { %v2082_v11 = vsel %vm739_vm3, %v927_v63, %v2033_v5 }
 0xc22   :  { %1536 = vmatmul.msk.f32.vlgmr.msra.gmra.mxu2 %vm42_vm0, %v2082_v11 }
 0xc30   :  { %v941_v48 = vpop.permute.xlu1 %940 }
 0xc31   :  { %v2089_v9 = vsel %vm738_vm15, %v941_v48, %v2041_v55  ;;  %v934_v55 = vpop.permute.xlu2 %933 }
 0xc32   :  { %1538 = vmatmul.msk.f32.vlgmr.msra.gmra.mxu3 %vm42_vm0, %v2089_v9  ;;  %v2103_v8 = vsel %vm739_vm3, %v934_v55, %v2055_v62 }
 0xc38   :  { %v948_v56 = vpop.permute.xlu1 %947 }
 0xc39   :  { %v2111_v26 = vsel %vm738_vm15, %v948_v56, %v2063_v12 }
 0xca5   :  { %v991_v14 = vpop.f32.mrf.mxu2 }
 0xca6   :  { %v994_v15 = vadd.f32 %v1534_v13, %v991_v14 }
 0xca8   :  { %1642 = vtanh.f32 %v994_v15  ;;  %v1537_v62 = vmul.f32 -1.442695, %v994_v15 }
 0xcae   :  { %v1643_v5 = vpop.eup %1642 }
 0xcaf   :  { %1021 = vrot.lane.b32.xlu0 %v1643_v5, %s1691_s18  ;;  %v2119_v5 = vld.sshfl [vmem:[#allocation1] sm:$0xff pattern:$0x73625140] }
 0xcb5   :  { %v1056_v20 = vpop.f32.mrf.mxu3 }
 0xcb6   :  { %v1062_v22 = vadd.f32 %v1060_v17, %v1056_v20 }
 0xcb7   :  { %1016 = vrot.lane.b32.xlu0 %v2103_v8, %s1690_s9 }
 0xcb8   :  { %1644 = vtanh.f32 %v1062_v22  ;;  %v1539_v27 = vmul.f32 -1.442695, %v1062_v22 }
 0xcba   :  { %1646 = vpow2.f32 %v1539_v27 }
 0xcbb   :  { %1648 = vpow2.f32 %v1537_v62 }
 0xcbe   :  { %v1645_v25 = vpop.eup %1644 }
 0xcbf   :  { %1089 = vrot.lane.b32.xlu2 %v1645_v25, %s1691_s18 }
 0xcc0   :  { %v1647_v28 = vpop.eup %1646 }
 0xcc1   :  { %v1066_v29 = vadd.f32 1.0, %v1647_v28  ;;  %v1649_v30 = vpop.eup %1648 }
 0xcc2   :  { %v998_v31 = vadd.f32 1.0, %v1649_v30  ;;  %v1542_v30 = vld [vmem:[%s2344_s0 + $0x18] sm:$0xf] }
 0xcc3   :  { %1650 = vrcp.f32 %v1066_v29  ;;  %v1078_v41 = vand.u32 2147483648, %v1066_v29  ;;  %vm1072_vm6 = vweird.f32 %v1066_v29  ;;  %v1076_v43 = vand.u32 2147483647, %v1066_v29 }
 0xcc4   :  { %1652 = vrcp.f32 %v998_v31  ;;  %v1010_v1 = vand.u32 2147483648, %v998_v31  ;;  %vm1004_vm12 = vweird.f32 %v998_v31  ;;  %v1008_v3 = vand.u32 2147483647, %v998_v31 }
 0xcc5   :  { %v1079_v46 = vor.u32 1.1754944e-38, %v1078_v41  ;;  %vm1077_vm8 = vcmp.eq.f32.partialorder %v1076_v43, 8.507059e+37 }
 0xcc6   :  { %v1011_v2 = vor.u32 1.1754944e-38, %v1010_v1  ;;  %vm1009_vm14 = vcmp.eq.f32.partialorder %v1008_v3, 8.507059e+37 }
 0xcc7   :  { %1084 = vrot.lane.b32.xlu2 %v2111_v26, %s1690_s9 }
 0xcc9   :  { %v1651_v33 = vpop.eup %1650 }
 0xcca   :  { %v1068_v36 = vmul.f32 %v1651_v33, %v1066_v29  ;;  %v1653_v21 = vpop.eup %1652  ;;  %vm1073_vm9 = vweird.f32 %v1651_v33 }
 0xccb   :  { %v1000_v12 = vmul.f32 %v1653_v21, %v998_v31  ;;  %vm1074_vm7 = vmor %vm1072_vm6, %vm1073_vm9  ;;  %vm1005_vm11 = vweird.f32 %v1653_v21 }
 0xccc   :  { %v1069_v37 = vsub.f32 1.0, %v1068_v36  ;;  %vm1006_vm13 = vmor %vm1004_vm12, %vm1005_vm11  ;;  %v1543_v36 = vld [vmem:[%s2344_s0 + $0x4] sm:$0xf] }
 0xccd   :  { %v1001_v23 = vsub.f32 1.0, %v1000_v12 }
 0xcce   :  { %v1070_v39 = vmul.f32 %v1651_v33, %v1069_v37  ;;  %v1241_v37 = vrot.slane %v1543_v36, 2 }
 0xccf   :  { %v1002_v45 = vmul.f32 %v1653_v21, %v1001_v23 }
 0xcd0   :  { %v1071_v40 = vadd.f32 %v1651_v33, %v1070_v39 }
 0xcd1   :  { %v1003_v0 = vadd.f32 %v1653_v21, %v1002_v45 }
 0xcd2   :  { %v1075_v44 = vsel %vm1074_vm7, %v1651_v33, %v1071_v40 }
 0xcd3   :  { %v1080_v49 = vsel %vm1077_vm8, %v1079_v46, %v1075_v44  ;;  %v1007_v7 = vsel %vm1006_vm13, %v1653_v21, %v1003_v0 }
 0xcd4   :  { %v1012_v38 = vsel %vm1009_vm14, %v1011_v2, %v1007_v7 }
 0xd19   :  { %v1090_v47 = vpop.permute.xlu2 %1089 }
 0xd1a   :  { %v1092_v50 = vmul.f32 %v1090_v47, %v1080_v49 }
 0xd1c   :  { %1094 = vrot.lane.b32.xlu0 %v1092_v50, %s1690_s9 }
 0xd21   :  { %v1022_v6 = vpop.permute.xlu0 %1021  ;;  %v1085_v24 = vpop.permute.xlu2 %1084 }
 0xd22   :  { %v1024_v54 = vmul.f32 %v1022_v6, %v1012_v38  ;;  %v1087_v58 = vmul.f32 %v1085_v24, %v1080_v49 }
 0xd24   :  { %1026 = vrot.lane.b32.xlu1 %v1024_v54, %s1690_s9 }
 0xd29   :  { %v1017_v57 = vpop.permute.xlu0 %1016 }
 0xd2a   :  { %v1019_v53 = vmul.f32 %v1017_v57, %v1012_v38 }
 0xd8e   :  { %v1095_v35 = vpop.permute.xlu0 %1094 }
 0xd8f   :  { %v1097_v59 = vadd.f32 %v1095_v35, %v1087_v58 }
 0xd91   :  { %1654 = vtanh.f32 %v1097_v59 }
 0xd96   :  { %v1027_v60 = vpop.permute.xlu1 %1026 }
 0xd97   :  { %v1655_v63 = vpop.eup %1654  ;;  %v1029_v48 = vadd.f32 %v1027_v60, %v1019_v53 }
 0xd98   :  { %1100 = vrot.lane.b32.xlu2 %v1655_v63, %s1691_s18 }
 0xd99   :  { %1656 = vtanh.f32 %v1029_v48 }
 0xd9f   :  { %v1657_v13 = vpop.eup %1656 }
 0xda0   :  { %1032 = vrot.lane.b32.xlu1 %v1657_v13, %s1691_s18 }
 0xdf2   :  { %v1101_v17 = vpop.permute.xlu2 %1100 }
 0xdf3   :  { %v1103_v55 = vmul.f32 %v1101_v17, %v1080_v49 }
 0xe12   :  { %v1033_v14 = vpop.permute.xlu1 %1032 }
 0xe13   :  { %v1035_v15 = vmul.f32 %v1033_v14, %v1012_v38 }
 0xe15   :  { %1105 = vst [vmem:[#allocation1] ss:$4 sm:$0xff] %v1035_v15 }
 0xe1c   :  { %v1106_v16 = vld.sshfl [vmem:[#allocation1] sm:$0xff pattern:$0x73625140] }
 0xe1d   :  { %1107 = vrot.lane.b32.xlu0 %v1106_v16, %s1690_s9  ;;  %1112 = vst [vmem:[#allocation1] ss:$4 sm:$0xff] %v1029_v48 }
 0xe24   :  { %v1113_v20 = vld.sshfl [vmem:[#allocation1] sm:$0xff pattern:$0x73625140] }
 0xe25   :  { %1114 = vrot.lane.b32.xlu2 %v1113_v20, %s1693_s22  ;;  %1119 = vst [vmem:[#allocation1] ss:$4 sm:$0xff] %v1103_v55 }
 0xe2c   :  { %v1120_v22 = vld.sshfl [vmem:[#allocation1] sm:$0xff pattern:$0x73625140] }
 0xe2d   :  { %1121 = vrot.lane.b32.xlu1 %v1120_v22, %s1690_s9  ;;  %1126 = vst [vmem:[#allocation1] ss:$4 sm:$0xff] %v1097_v59 }
 0xe34   :  { %v1127_v25 = vld.sshfl [vmem:[#allocation1] sm:$0xff pattern:$0x73625140] }
 0xe35   :  { %1128 = vrot.lane.b32.xlu1 %v1127_v25, %s1693_s22  ;;  %1132 = vst [vmem:[#allocation1] ss:$4 sm:$0xff] %v1035_v15 }
 0xe3c   :  { %v2125_v56 = vld.sshfl [vmem:[#allocation1] sm:$0xff pattern:$0x73625140] }
 0xe3d   :  { %1139 = vst [vmem:[#allocation1] ss:$4 sm:$0xff] %v1103_v55 }
 0xe8f   :  { %v1108_v27 = vpop.permute.xlu0 %1107 }
 0xe90   :  { %v2130_v62 = vsel %vm552_vm2, %v1108_v27, %v2082_v11 }
 0xe91   :  { %1544 = vmatmul.msk.f32.vlgmr.msrb.gmra.mxu0 %vm42_vm0, %v2130_v62 }
 0xe9f   :  { %v1122_v28 = vpop.permute.xlu1 %1121 }
 0xea0   :  { %v2137_v29 = vsel %vm551_vm1, %v1122_v28, %v2089_v9  ;;  %v1115_v9 = vpop.permute.xlu2 %1114 }
 0xea1   :  { %1546 = vmatmul.msk.f32.vlgmr.msrb.gmra.mxu1 %vm42_vm0, %v2137_v29  ;;  %v2151_v12 = vsel %vm552_vm2, %v1115_v9, %v2103_v8 }
 0xea7   :  { %v1129_v23 = vpop.permute.xlu1 %1128 }
 0xea8   :  { %v2159_v41 = vsel %vm551_vm1, %v1129_v23, %v2111_v26 }
 0xf0e   :  { %v1172_v31 = vpop.f32.mrf.mxu0 }
 0xf0f   :  { %v1175_v33 = vadd.f32 %v1542_v30, %v1172_v31 }
 0xf11   :  { %1658 = vtanh.f32 %v1175_v33  ;;  %v1545_v8 = vmul.f32 -1.442695, %v1175_v33 }
 0xf17   :  { %v1659_v11 = vpop.eup %1658 }
 0xf18   :  { %1202 = vrot.lane.b32.xlu0 %v1659_v11, %s1691_s18 }
 0xf1e   :  { %v1237_v21 = vpop.f32.mrf.mxu1 }
 0xf1f   :  { %v1243_v39 = vadd.f32 %v1241_v37, %v1237_v21  ;;  %v2167_v37 = vld.sshfl [vmem:[#allocation1] sm:$0xff pattern:$0x73625140] }
 0xf20   :  { %1197 = vrot.lane.b32.xlu0 %v2151_v12, %s1690_s9 }
 0xf21   :  { %1660 = vtanh.f32 %v1243_v39  ;;  %v1547_v43 = vmul.f32 -1.442695, %v1243_v39 }
 0xf23   :  { %1662 = vpow2.f32 %v1547_v43 }
 0xf24   :  { %1664 = vpow2.f32 %v1545_v8 }
 0xf27   :  { %v1661_v40 = vpop.eup %1660 }
 0xf28   :  { %1270 = vrot.lane.b32.xlu2 %v1661_v40, %s1691_s18 }
 0xf29   :  { %v1663_v44 = vpop.eup %1662 }
 0xf2a   :  { %v1247_v45 = vadd.f32 1.0, %v1663_v44  ;;  %v1665_v46 = vpop.eup %1664 }
 0xf2b   :  { %v1179_v47 = vadd.f32 1.0, %v1665_v46 }
 0xf2c   :  { %1666 = vrcp.f32 %v1247_v45  ;;  %v1259_v6 = vand.u32 2147483648, %v1247_v45  ;;  %vm1253_vm6 = vweird.f32 %v1247_v45  ;;  %v1257_v38 = vand.u32 2147483647, %v1247_v45 }
 0xf2d   :  { %1668 = vrcp.f32 %v1179_v47  ;;  %v1191_v60 = vand.u32 2147483648, %v1179_v47  ;;  %vm1185_vm12 = vweird.f32 %v1179_v47  ;;  %v1189_v63 = vand.u32 2147483647, %v1179_v47 }
 0xf2e   :  { %v1260_v24 = vor.u32 1.1754944e-38, %v1259_v6  ;;  %vm1258_vm8 = vcmp.eq.f32.partialorder %v1257_v38, 8.507059e+37 }
 0xf2f   :  { %v1192_v13 = vor.u32 1.1754944e-38, %v1191_v60  ;;  %vm1190_vm14 = vcmp.eq.f32.partialorder %v1189_v63, 8.507059e+37 }
 0xf30   :  { %1265 = vrot.lane.b32.xlu2 %v2159_v41, %s1690_s9 }
 0xf32   :  { %v1667_v49 = vpop.eup %1666 }
 0xf33   :  { %v1249_v50 = vmul.f32 %v1667_v49, %v1247_v45  ;;  %v1669_v1 = vpop.eup %1668  ;;  %vm1254_vm9 = vweird.f32 %v1667_v49 }
 0xf34   :  { %v1181_v26 = vmul.f32 %v1669_v1, %v1179_v47  ;;  %vm1255_vm7 = vmor %vm1253_vm6, %vm1254_vm9  ;;  %vm1186_vm11 = vweird.f32 %v1669_v1 }
 0xf35   :  { %v1250_v0 = vsub.f32 1.0, %v1249_v50  ;;  %vm1187_vm13 = vmor %vm1185_vm12, %vm1186_vm11 }
 0xf36   :  { %v1182_v2 = vsub.f32 1.0, %v1181_v26 }
 0xf37   :  { %v1251_v3 = vmul.f32 %v1667_v49, %v1250_v0 }
 0xf38   :  { %v1183_v57 = vmul.f32 %v1669_v1, %v1182_v2 }
 0xf39   :  { %v1252_v7 = vadd.f32 %v1667_v49, %v1251_v3 }
 0xf3a   :  { %v1184_v53 = vadd.f32 %v1669_v1, %v1183_v57 }
 0xf3b   :  { %v1256_v54 = vsel %vm1255_vm7, %v1667_v49, %v1252_v7  ;;  %v1550_v49 = vld [vmem:[%s2344_s0 + $0x1c] sm:$0xf] }
 0xf3c   :  { %v1261_v35 = vsel %vm1258_vm8, %v1260_v24, %v1256_v54  ;;  %v1188_v48 = vsel %vm1187_vm13, %v1669_v1, %v1184_v53 }
 0xf3d   :  { %v1193_v15 = vsel %vm1190_vm14, %v1192_v13, %v1188_v48  ;;  %vm225_vm14 = vcmask 517376  }
 0xf82   :  { %v1271_v58 = vpop.permute.xlu2 %1270 }
 0xf83   :  { %v1273_v59 = vmul.f32 %v1271_v58, %v1261_v35 }
 0xf85   :  { %1275 = vrot.lane.b32.xlu0 %v1273_v59, %s1690_s9 }
 0xf8a   :  { %v1203_v14 = vpop.permute.xlu0 %1202  ;;  %v1266_v55 = vpop.permute.xlu2 %1265 }
 0xf8b   :  { %v1205_v16 = vmul.f32 %v1203_v14, %v1193_v15  ;;  %v1268_v20 = vmul.f32 %v1266_v55, %v1261_v35 }
 0xf8d   :  { %1207 = vrot.lane.b32.xlu1 %v1205_v16, %s1690_s9 }
 0xf92   :  { %v1198_v17 = vpop.permute.xlu0 %1197 }
 0xf93   :  { %v1200_v27 = vmul.f32 %v1198_v17, %v1193_v15 }
 0xff7   :  { %v1276_v22 = vpop.permute.xlu0 %1275 }
 0xff8   :  { %v1278_v25 = vadd.f32 %v1276_v22, %v1268_v20 }
 0xffa   :  { %1670 = vtanh.f32 %v1278_v25 }
 0xfff   :  { %v1208_v28 = vpop.permute.xlu1 %1207 }
0x1000   :  { %v1671_v30 = vpop.eup %1670  ;;  %v1210_v31 = vadd.f32 %v1208_v28, %v1200_v27 }
0x1001   :  { %1281 = vrot.lane.b32.xlu2 %v1671_v30, %s1691_s18 }
0x1002   :  { %1672 = vtanh.f32 %v1210_v31 }
0x1008   :  { %v1673_v33 = vpop.eup %1672 }
0x1009   :  { %1213 = vrot.lane.b32.xlu1 %v1673_v33, %s1691_s18 }
0x105b   :  { %v1282_v21 = vpop.permute.xlu2 %1281 }
0x105c   :  { %v1284_v39 = vmul.f32 %v1282_v21, %v1261_v35 }
0x107b   :  { %v1214_v11 = vpop.permute.xlu1 %1213 }
0x107c   :  { %v1216_v36 = vmul.f32 %v1214_v11, %v1193_v15 }
0x107e   :  { %1286 = vst [vmem:[#allocation1] ss:$4 sm:$0xff] %v1216_v36 }
0x1085   :  { %v1287_v9 = vld.sshfl [vmem:[#allocation1] sm:$0xff pattern:$0x73625140] }
0x1086   :  { %1288 = vrot.lane.b32.xlu0 %v1287_v9, %s1690_s9  ;;  %1293 = vst [vmem:[#allocation1] ss:$4 sm:$0xff] %v1210_v31 }
0x108d   :  { %v1294_v40 = vld.sshfl [vmem:[#allocation1] sm:$0xff pattern:$0x73625140] }
0x108e   :  { %1295 = vrot.lane.b32.xlu2 %v1294_v40, %s1693_s22  ;;  %1300 = vst [vmem:[#allocation1] ss:$4 sm:$0xff] %v1284_v39 }
0x1095   :  { %v1301_v23 = vld.sshfl [vmem:[#allocation1] sm:$0xff pattern:$0x73625140] }
0x1096   :  { %1302 = vrot.lane.b32.xlu1 %v1301_v23, %s1690_s9  ;;  %1307 = vst [vmem:[#allocation1] ss:$4 sm:$0xff] %v1278_v25 }
0x109d   :  { %v1308_v43 = vld.sshfl [vmem:[#allocation1] sm:$0xff pattern:$0x73625140] }
0x109e   :  { %1309 = vrot.lane.b32.xlu1 %v1308_v43, %s1693_s22  ;;  %1313 = vst [vmem:[#allocation1] ss:$4 sm:$0xff] %v1216_v36 }
0x10a5   :  { %v2173_v8 = vld.sshfl [vmem:[#allocation1] sm:$0xff pattern:$0x73625140] }
0x10a6   :  { %1320 = vst [vmem:[#allocation1] ss:$4 sm:$0xff] %v1284_v39 }
0x10ad   :  { %v1321_v40 = vld.sshfl [vmem:[#allocation1] sm:$0xff pattern:$0x73625140] }
0x10e8   :  { %v1296_v26 = vpop.permute.xlu2 %1295 }
0x10e9   :  { %v1298_v2 = vsel %vm365_vm5, %v1296_v26, %v2151_v12 }
0x10f8   :  { %v1289_v44 = vpop.permute.xlu0 %1288 }
0x10f9   :  { %v1291_v45 = vsel %vm365_vm5, %v1289_v44, %v2130_v62  ;;  %v1332_v62 = vld [vmem:[%s2344_s0] sm:$0xf] }
0x10fa   :  { %1551 = vmatmul.msk.f32.vlgmr.msrb.gmra.mxu2 %vm42_vm0, %v1291_v45  ;;  %v1422_v3 = vrot.slane %v1332_v62, 2 }
0x1108   :  { %v1303_v46 = vpop.permute.xlu1 %1302 }
0x1109   :  { %v1305_v47 = vsel %vm364_vm4, %v1303_v46, %v2137_v29 }
0x110a   :  { %1553 = vmatmul.msk.f32.vlgmr.msrb.gmra.mxu3 %vm42_vm0, %v1305_v47 }
0x1110   :  { %v1310_v38 = vpop.permute.xlu1 %1309 }
0x1111   :  { %v1312_v54 = vsel %vm364_vm4, %v1310_v38, %v2159_v41 }
0x117d   :  { %v1353_v50 = vpop.f32.mrf.mxu2 }
0x117e   :  { %v1356_v0 = vadd.f32 %v1550_v49, %v1353_v50 }
0x1180   :  { %1674 = vtanh.f32 %v1356_v0  ;;  %v1552_v24 = vmul.f32 -1.442695, %v1356_v0 }
0x1186   :  { %v1675_v1 = vpop.eup %1674 }
0x1187   :  { %1383 = vrot.lane.b32.xlu0 %v1675_v1, %s1691_s18 }
0x118d   :  { %v1418_v7 = vpop.f32.mrf.mxu3 }
0x118e   :  { %v1424_v29 = vadd.f32 %v1422_v3, %v1418_v7 }
0x118f   :  { %1378 = vrot.lane.b32.xlu0 %v1298_v2, %s1690_s9 }
0x1190   :  { %1676 = vtanh.f32 %v1424_v29  ;;  %v1554_v57 = vmul.f32 -1.442695, %v1424_v29 }
0x1192   :  { %1678 = vpow2.f32 %v1554_v57 }
0x1193   :  { %1680 = vpow2.f32 %v1552_v24 }
0x1196   :  { %v1677_v6 = vpop.eup %1676 }
0x1197   :  { %1451 = vrot.lane.b32.xlu2 %v1677_v6, %s1691_s18 }
0x1198   :  { %v1679_v58 = vpop.eup %1678 }
0x1199   :  { %v1428_v35 = vadd.f32 1.0, %v1679_v58  ;;  %v1681_v12 = vpop.eup %1680 }
0x119a   :  { %v1360_v59 = vadd.f32 1.0, %v1681_v12 }
0x119b   :  { %1682 = vrcp.f32 %v1428_v35  ;;  %v1440_v16 = vand.u32 2147483648, %v1428_v35  ;;  %vm1434_vm9 = vweird.f32 %v1428_v35  ;;  %v1438_v17 = vand.u32 2147483647, %v1428_v35 }
0x119c   :  { %1684 = vrcp.f32 %v1360_v59  ;;  %v1372_v31 = vand.u32 2147483648, %v1360_v59  ;;  %vm1366_vm11 = vweird.f32 %v1360_v59  ;;  %v1370_v33 = vand.u32 2147483647, %v1360_v59 }
0x119d   :  { %v1441_v22 = vor.u32 1.1754944e-38, %v1440_v16  ;;  %vm1439_vm7 = vcmp.eq.f32.partialorder %v1438_v17, 8.507059e+37 }
0x119e   :  { %v1373_v36 = vor.u32 1.1754944e-38, %v1372_v31  ;;  %vm1371_vm13 = vcmp.eq.f32.partialorder %v1370_v33, 8.507059e+37 }
0x119f   :  { %1446 = vrot.lane.b32.xlu2 %v1312_v54, %s1690_s9 }
0x11a1   :  { %v1683_v53 = vpop.eup %1682 }
0x11a2   :  { %v1430_v60 = vmul.f32 %v1683_v53, %v1428_v35  ;;  %v1685_v48 = vpop.eup %1684  ;;  %vm1435_vm0 = vweird.f32 %v1683_v53 }
0x11a3   :  { %v1362_v14 = vmul.f32 %v1685_v48, %v1360_v59  ;;  %vm1436_vm6 = vmor %vm1434_vm9, %vm1435_vm0  ;;  %vm1367_vm8 = vweird.f32 %v1685_v48  ;;  %vm212_vm0 = vcmask 254976   ;;  %vm2348_vm9 = vcmp.gt.s32.totalorder %v1853_v19, 0 }
0x11a4   :  { %v1431_v63 = vsub.f32 1.0, %v1430_v60  ;;  %vm1368_vm12 = vmor %vm1366_vm11, %vm1367_vm8 }
0x11a5   :  { %v1363_v41 = vsub.f32 1.0, %v1362_v14 }
0x11a6   :  { %v1432_v13 = vmul.f32 %v1683_v53, %v1431_v63 }
0x11a7   :  { %v1364_v20 = vmul.f32 %v1685_v48, %v1363_v41 }
0x11a8   :  { %v1433_v15 = vadd.f32 %v1683_v53, %v1432_v13 }
0x11a9   :  { %v1365_v30 = vadd.f32 %v1685_v48, %v1364_v20 }
0x11aa   :  { %v1437_v55 = vsel %vm1436_vm6, %v1683_v53, %v1433_v15 }
0x11ab   :  { %v2199_v27 = vsel %vm1439_vm7, %v1441_v22, %v1437_v55  ;;  %v1369_v11 = vsel %vm1368_vm12, %v1685_v48, %v1365_v30 }
0x11ac   :  { %v1374_v21 = vsel %vm1371_vm13, %v1373_v36, %v1369_v11 }
0x11f1   :  { %v1452_v25 = vpop.permute.xlu2 %1451 }
0x11f2   :  { %v1454_v28 = vmul.f32 %v1452_v25, %v2199_v27 }
0x11f4   :  { %1456 = vrot.lane.b32.xlu0 %v1454_v28, %s1690_s9 }
0x11f9   :  { %v1384_v9 = vpop.permute.xlu0 %1383  ;;  %v1447_v43 = vpop.permute.xlu2 %1446 }
0x11fa   :  { %v1386_v39 = vmul.f32 %v1384_v9, %v1374_v21  ;;  %v1449_v44 = vmul.f32 %v1447_v43, %v2199_v27 }
0x11fc   :  { %216 = vrot.lane.b32.xlu0 %v1905_v10, %s1690_s9  ;;  %1388 = vrot.lane.b32.xlu1 %v1386_v39, %s1690_s9 }
0x1201   :  { %v1379_v23 = vpop.permute.xlu0 %1378 }
0x1202   :  { %v1381_v47 = vmul.f32 %v1379_v23, %v1374_v21 }
0x1204   :  { %778 = vrot.lane.b32.xlu0 %v2071_v51, %s1690_s9 }
0x120c   :  { %1322 = vrot.lane.b32.xlu0 %v1321_v40, %s1690_s9 }
0x1266   :  { %v1457_v45 = vpop.permute.xlu0 %1456 }
0x1267   :  { %v1459_v46 = vadd.f32 %v1457_v45, %v1449_v44 }
0x1269   :  { %1686 = vtanh.f32 %v1459_v46 }
0x126e   :  { %v217_v49 = vpop.permute.xlu0 %216  ;;  %v1389_v50 = vpop.permute.xlu1 %1388 }
0x126f   :  { %v1687_v0 = vpop.eup %1686  ;;  %v219_v10 = vsel %vm177_vm10, %v217_v49, 0.0  ;;  %v1391_v1 = vadd.f32 %v1389_v50, %v1381_v47 }
0x1270   :  { %1462 = vrot.lane.b32.xlu2 %v1687_v0, %s1691_s18  ;;  %221 = vrot.lane.b32.xlu0 %v219_v10, %s1690_s9 }
0x1271   :  { %1688 = vtanh.f32 %v1391_v1 }
0x1276   :  { %v779_v62 = vpop.permute.xlu0 %778 }
0x1277   :  { %v1689_v51 = vpop.eup %1688  ;;  %v781_v3 = vsel %vm739_vm3, %v779_v62, 0.0 }
0x1278   :  { %591 = vrot.lane.b32.xlu2 %v2021_v52, %s1690_s9  ;;  %1394 = vrot.lane.b32.xlu1 %v1689_v51, %s1691_s18 }
0x1279   :  { %770 = vrot.lane.b32.xlu0 %v2027_v4, %s1690_s9 }
0x1280   :  { %1141 = vrot.lane.b32.xlu2 %v2167_v37, %s1690_s9  ;;  %404 = vrot.lane.b32.xlu1 %v1963_v42, %s1690_s9  ;;  %v1323_v42 = vpop.permute.xlu0 %1322 }
0x1281   :  { %783 = vrot.lane.b32.xlu0 %v781_v3, %s1690_s9  ;;  %v1325_v60 = vsel %vm364_vm4, %v1323_v42, 0.0 }
0x1288   :  { %208 = vrot.lane.b32.xlu2 %v1851_v18, %s1690_s9  ;;  %960 = vrot.lane.b32.xlu1 %v2119_v5, %s1690_s9 }
0x1289   :  { %1315 = vrot.lane.b32.xlu0 %v2173_v8, %s1690_s9 }
0x1290   :  { %583 = vrot.lane.b32.xlu2 %v1969_v32, %s1690_s9 }
0x12ca   :  { %v1463_v52 = vpop.permute.xlu2 %1462 }
0x12cb   :  { %v1465_v57 = vmul.f32 %v1463_v52, %v2199_v27 }
0x12d2   :  { %v592_v4 = vpop.permute.xlu2 %591 }
0x12d3   :  { %v594_v37 = vsel %vm552_vm2, %v592_v4, 0.0 }
0x12d4   :  { %596 = vrot.lane.b32.xlu2 %v594_v37, %s1690_s9 }
0x12da   :  { %v1142_v26 = vpop.permute.xlu2 %1141 }
0x12db   :  { %v1144_v18 = vsel %vm551_vm1, %v1142_v26, 0.0 }
0x12dc   :  { %1134 = vrot.lane.b32.xlu2 %v2125_v56, %s1690_s9  ;;  %1146 = vrot.lane.b32.xlu0 %v1144_v18, %s1690_s9 }
0x12e2   :  { %v209_v32 = vpop.permute.xlu2 %208  ;;  %v222_v5 = vpop.permute.xlu0 %221 }
0x12e3   :  { %v211_v8 = vsel %vm2348_vm9, %v209_v32, 0.0  ;;  %1501 = vst.msk [vmem:[%s2346_s5 + $0xe] sm:$0x3] %vm225_vm14, %v222_v5 }
0x12e4   :  { %213 = vst.msk [vmem:[%s2346_s5] sm:$0x3] %vm212_vm0, %v211_v8 }
0x12ea   :  { %v584_v56 = vpop.permute.xlu2 %583  ;;  %v1395_v7 = vpop.permute.xlu1 %1394 }
0x12eb   :  { %v586_v29 = vsel %vm551_vm1, %v584_v56, 0.0  ;;  %v1397_v2 = vmul.f32 %v1395_v7, %v1374_v21  ;;  %v771_v6 = vpop.permute.xlu0 %770  ;;  %vm2349_vm1 = vmmov %vm2348_vm9 }
0x12ec   :  { %1516 = vst.msk [vmem:[%s2346_s5 + $0x4] sm:$0x3] %vm212_vm0, %v586_v29  ;;  %v773_v38 = vsel %vm738_vm15, %v771_v6, 0.0 }
0x12ed   :  { %1467 = vst [vmem:[#allocation1] ss:$4 sm:$0xff] %v1397_v2 }
0x12ee   :  { %1524 = vst.msk [vmem:[%s2346_s5 + $0x6] sm:$0x3] %vm212_vm0, %v773_v38 }
0x12f2   :  { %v405_v54 = vpop.permute.xlu1 %404 }
0x12f3   :  { %v784_v24 = vpop.permute.xlu0 %783  ;;  %v407_v53 = vsel %vm365_vm5, %v405_v54, 0.0 }
0x12f4   :  { %1525 = vst.msk [vmem:[%s2346_s5 + $0x8] sm:$0x3] %vm225_vm14, %v784_v24  ;;  %v1468_v58 = vld.sshfl [vmem:[#allocation1] sm:$0xff pattern:$0x73625140] }
0x12f5   :  { %1475 = vst [vmem:[#allocation1] ss:$4 sm:$0xff] %v1465_v57 }
0x12fa   :  { %v961_v35 = vpop.permute.xlu1 %960 }
0x12fb   :  { %v963_v12 = vsel %vm738_vm15, %v961_v35, 0.0 }
0x12fc   :  { %965 = vrot.lane.b32.xlu2 %v963_v12, %s1690_s9  ;;  %v1476_v59 = vld.sshfl [vmem:[#allocation1] sm:$0xff pattern:$0x73625140] }
0x12fd   :  { %1477 = vrot.lane.b32.xlu1 %v1476_v59, %s1690_s9 }
0x1305   :  { %396 = vrot.lane.b32.xlu1 %v1911_v34, %s1690_s9 }
0x130d   :  { %409 = vrot.lane.b32.xlu1 %v407_v53, %s1690_s9 }
0x1315   :  { %953 = vrot.lane.b32.xlu1 %v2077_v61, %s1690_s9  ;;  %v1316_v61 = vpop.permute.xlu0 %1315 }
0x1316   :  { %v1318_v20 = vsel %vm365_vm5, %v1316_v61, 0.0 }
0x131d   :  { %1469 = vrot.lane.b32.xlu1 %v1468_v58, %s1690_s9 }
0x1325   :  { %1327 = vrot.lane.b32.xlu1 %v1325_v60, %s1690_s9 }
0x132e   :  { %v597_v63 = vpop.permute.xlu2 %596 }
0x132f   :  { %1517 = vst.msk [vmem:[%s2346_s5 + $0xa] sm:$0x3] %vm225_vm14, %v597_v63 }
0x1336   :  { %v1135_v34 = vpop.permute.xlu2 %1134 }
0x1337   :  { %v1137_v48 = vsel %vm552_vm2, %v1135_v34, 0.0 }
0x1338   :  { %1540 = vst.msk [vmem:[%s2346_s5 + $0xa] sm:$0x3] %vm212_vm0, %v1137_v48 }
0x134e   :  { %v1147_v13 = vpop.permute.xlu0 %1146 }
0x134f   :  { %1541 = vst.msk [vmem:[%s2346_s5 + $0x4] sm:$0x3] %vm225_vm14, %v1147_v13 }
0x1356   :  { %v966_v14 = vpop.permute.xlu2 %965 }
0x1357   :  { %1533 = vst.msk [vmem:[%s2346_s5 + $0x6] sm:$0x3] %vm225_vm14, %v966_v14 }
0x136f   :  { %v1478_v15 = vpop.permute.xlu1 %1477 }
0x1370   :  { %v1480_v41 = vsel %vm2349_vm1, %v1478_v15, 0.0 }
0x1371   :  { %1482 = vrot.lane.b32.xlu2 %v1480_v41, %s1690_s9 }
0x1377   :  { %v397_v16 = vpop.permute.xlu1 %396 }
0x1378   :  { %v399_v17 = vsel %vm364_vm4, %v397_v16, 0.0 }
0x1379   :  { %1508 = vst.msk [vmem:[%s2346_s5 + $0x2] sm:$0x3] %vm212_vm0, %v399_v17 }
0x137f   :  { %v410_v55 = vpop.permute.xlu1 %409 }
0x1380   :  { %1509 = vst.msk [vmem:[%s2346_s5 + $0xc] sm:$0x3] %vm225_vm14, %v410_v55 }
0x1381   :  { %1548 = vst.msk [vmem:[%s2346_s5 + $0xc] sm:$0x3] %vm212_vm0, %v1318_v20 }
0x1387   :  { %v954_v22 = vpop.permute.xlu1 %953 }
0x1388   :  { %v956_v25 = vsel %vm739_vm3, %v954_v22, 0.0 }
0x1389   :  { %1532 = vst.msk [vmem:[%s2346_s5 + $0x8] sm:$0x3] %vm212_vm0, %v956_v25 }
0x138f   :  { %v1470_v27 = vpop.permute.xlu1 %1469 }
0x1390   :  { %v1472_v28 = vsel %vm177_vm10, %v1470_v27, 0.0 }
0x1391   :  { %1555 = vst.msk [vmem:[%s2346_s5 + $0xe] sm:$0x3] %vm212_vm0, %v1472_v28 }
0x1397   :  { %v1328_v30 = vpop.permute.xlu1 %1327 }
0x1398   :  { %1549 = vst.msk [vmem:[%s2346_s5 + $0x2] sm:$0x3] %vm225_vm14, %v1328_v30 }
0x13cb   :  { %v1483_v31 = vpop.permute.xlu2 %1482 }
0x13cc   :  { %1485 = vst.msk [vmem:[%s2346_s5] sm:$0x3] %vm225_vm14, %v1483_v31 }

</bundles_post_ra>
